<compile_context>
chip_gen: v6e
topology: v6e:2x2x1
jax: 0.10.0
libtpu: 0.0.40
codegen_flags: <defaults>
</compile_context>

<pallas_src>
import functools
import math

import jax
import jax.numpy as jnp
from jax.experimental import pallas as pl
from jax.experimental.pallas import tpu as pltpu

VMEM = pltpu.MemorySpace.VMEM
BN_EPS = 1e-5


def _round_up(x, m):
    return ((x + m - 1) // m) * m


# --------------------------------------------------------------------------- #
# Kernel 1: fc1 + ReLU  (single block, ~4 MiB bf16 weight; emits bf16 activations)
# --------------------------------------------------------------------------- #
def fc1_relu_kernel(x_ref, w1_ref, b1_ref, o_ref):
    x = x_ref[...].astype(jnp.bfloat16)
    h = jnp.dot(x, w1_ref[...], preferred_element_type=jnp.float32) + b1_ref[...]
    o_ref[...] = jnp.maximum(h, 0.0).astype(o_ref.dtype)


def fc1_relu(x_pad, w1, b1):
    Bp, Kp = x_pad.shape
    H = w1.shape[1]
    cost = pl.CostEstimate(
        flops=2 * Bp * Kp * H,
        transcendentals=0,
        bytes_accessed=Kp * H * 2 + Bp * Kp * 4 + Bp * H * 2 + H * 4,
    )
    return pl.pallas_call(
        fc1_relu_kernel,
        out_shape=jax.ShapeDtypeStruct((Bp, H), jnp.bfloat16),
        in_specs=[pl.BlockSpec(memory_space=VMEM)] * 3,
        out_specs=pl.BlockSpec(memory_space=VMEM),
        compiler_params=pltpu.CompilerParams(vmem_limit_bytes=12 << 20),
        cost_estimate=cost,
    )(x_pad, w1, b1)


# --------------------------------------------------------------------------- #
# Kernel 2: multi-head self-attention over the batch dimension (the PyTorch module
# attends over seq_len = batch with bsz = 1) WITH out_proj folded in.
# Grid: one step per group of 4 heads; per step one contiguous fused-QKV weight block
# (H, 3*G*dh) and one wo row block (G*dh, H) are streamed; out_proj contributions are
# accumulated into a persistent f32 accumulator (reduction axis -> "arbitrary").
# Padded batch rows are masked out as keys so they cannot contaminate real rows.
# --------------------------------------------------------------------------- #
def attn_outproj_kernel(h_ref, wqkv_ref, bqkv_ref, wo_ref, bo_ref, o_ref, acc_ref,
                        *, heads_per_step, head_dim, valid_b, inv_sqrt_dh):
    g = pl.program_id(0)

    @pl.when(g == 0)
    def _():
        acc_ref[...] = jnp.broadcast_to(bo_ref[...], acc_ref.shape)

    h = h_ref[...]                                             # (Bp, H) bf16
    qkv = jnp.dot(h, wqkv_ref[...],
                  preferred_element_type=jnp.float32) + bqkv_ref[...]   # (Bp, 3*G*dh)
    gdh = heads_per_step * head_dim
    q_all = qkv[:, :gdh]
    k_all = qkv[:, gdh:2 * gdh]
    v_all = qkv[:, 2 * gdh:]

    Bp = q_all.shape[0]
    key_idx = jax.lax.broadcasted_iota(jnp.int32, (Bp, Bp), 1)
    key_mask = key_idx < valid_b                               # mask padded batch rows (keys)

    o_heads = []
    for hh in range(heads_per_step):                           # tiny (8x8) per-head softmax
        sl = slice(hh * head_dim, (hh + 1) * head_dim)
        q, k, v = q_all[:, sl], k_all[:, sl], v_all[:, sl]
        s = jax.lax.dot_general(q, k, (((1,), (1,)), ((), ())),
                                preferred_element_type=jnp.float32) * inv_sqrt_dh
        s = jnp.where(key_mask, s, -1e30)
        s = s - jnp.max(s, axis=-1, keepdims=True)
        p = jnp.exp(s)
        attn = p / jnp.sum(p, axis=-1, keepdims=True)
        o_heads.append(jnp.dot(attn.astype(jnp.bfloat16), v.astype(jnp.bfloat16),
                               preferred_element_type=jnp.float32).astype(jnp.bfloat16))

    o_group = jnp.concatenate(o_heads, axis=-1)                # (Bp, G*dh)
    acc_ref[...] += jnp.dot(o_group, wo_ref[...], preferred_element_type=jnp.float32)
    o_ref[...] = acc_ref[...].astype(o_ref.dtype)


def attention_outproj(h, wqkv, bqkv, wo, bo, *, heads_per_step, head_dim, valid_b):
    Bp, H = h.shape
    n_groups = wqkv.shape[0]
    gdh = heads_per_step * head_dim
    n_heads = n_groups * heads_per_step
    kernel = functools.partial(attn_outproj_kernel,
                               heads_per_step=heads_per_step, head_dim=head_dim,
                               valid_b=valid_b, inv_sqrt_dh=1.0 / math.sqrt(head_dim))
    cost = pl.CostEstimate(
        flops=2 * Bp * H * 3 * H + n_heads * 2 * 2 * Bp * Bp * head_dim + 2 * Bp * H * H,
        transcendentals=n_heads * Bp * Bp,
        bytes_accessed=3 * H * H * 2 + H * H * 2 + 2 * Bp * H * 2 + 4 * H * 4,
    )
    return pl.pallas_call(
        kernel,
        out_shape=jax.ShapeDtypeStruct((Bp, H), jnp.bfloat16),
        grid=(n_groups,),
        in_specs=[
            pl.BlockSpec((Bp, H), lambda g: (0, 0)),            # h (resident)
            pl.BlockSpec((None, H, 3 * gdh), lambda g: (g, 0, 0)),   # fused QKV, contiguous
            pl.BlockSpec((1, 3 * gdh), lambda g: (0, g)),        # fused QKV bias
            pl.BlockSpec((None, gdh, H), lambda g: (g, 0, 0)),   # wo row block, contiguous
            pl.BlockSpec((1, H), lambda g: (0, 0)),              # bo (resident)
        ],
        out_specs=pl.BlockSpec((Bp, H), lambda g: (0, 0)),
        scratch_shapes=[pltpu.VMEM((Bp, H), jnp.float32)],
        compiler_params=pltpu.CompilerParams(
            dimension_semantics=("arbitrary",),   # head axis is a reduction (accumulator)
            vmem_limit_bytes=24 << 20),
        cost_estimate=cost,
    )(h, wqkv, bqkv, wo, bo)


# --------------------------------------------------------------------------- #
# Kernel 3: fc2 + ReLU + Dropout(eval) + BatchNorm1d(eval, folded) + sigmoid + fc3,
# tiled over the fc2 output-feature dimension; fc3 contribution accumulated per tile.
# --------------------------------------------------------------------------- #
def output_head_kernel(a_ref, w2_ref, b2_ref, bns_ref, bnb_ref, w3_ref, b3_ref, o_ref):
    @pl.when(pl.program_id(0) == 0)
    def _():
        o_ref[...] = jnp.broadcast_to(b3_ref[...], o_ref.shape)

    x = jnp.dot(a_ref[...], w2_ref[...], preferred_element_type=jnp.float32) + b2_ref[...]
    x = jnp.maximum(x, 0.0)
    # TODO(synk): Dropout is inference-mode identity; BatchNorm1d uses eval-mode
    # running statistics folded into a per-feature scale/shift at init.
    x = x * bns_ref[...] + bnb_ref[...]
    x = 1.0 / (1.0 + jnp.exp(-x))                              # sigmoid
    o_ref[...] += jnp.dot(x.astype(jnp.bfloat16), w3_ref[...],
                          preferred_element_type=jnp.float32)


def output_head(a, w2, b2, bn_scale, bn_shift, w3, b3):
    Bp, H = a.shape
    n_tiles, _, tile = w2.shape
    Lp = w3.shape[2]
    cost = pl.CostEstimate(
        flops=2 * Bp * H * H + 2 * Bp * H * Lp,
        transcendentals=Bp * H,
        bytes_accessed=H * H * 2 + H * Lp * 2 + Bp * H * 2 + Bp * Lp * 4 + 4 * H * 4,
    )
    return pl.pallas_call(
        output_head_kernel,
        out_shape=jax.ShapeDtypeStruct((Bp, Lp), jnp.float32),
        grid=(n_tiles,),
        in_specs=[
            pl.BlockSpec((Bp, H), lambda j: (0, 0)),             # a (resident)
            pl.BlockSpec((None, H, tile), lambda j: (j, 0, 0)),  # w2 column tile, contiguous
            pl.BlockSpec((1, tile), lambda j: (0, j)),           # b2 tile
            pl.BlockSpec((1, tile), lambda j: (0, j)),           # bn scale tile
            pl.BlockSpec((1, tile), lambda j: (0, j)),           # bn shift tile
            pl.BlockSpec((None, tile, Lp), lambda j: (j, 0, 0)), # w3 row tile, contiguous
            pl.BlockSpec((1, Lp), lambda j: (0, 0)),             # b3 (resident)
        ],
        out_specs=pl.BlockSpec((Bp, Lp), lambda j: (0, 0)),
        compiler_params=pltpu.CompilerParams(
            dimension_semantics=("arbitrary",),   # feature axis is a reduction for fc3
            vmem_limit_bytes=12 << 20),
        cost_estimate=cost,
    )(a, w2, b2, bn_scale, bn_shift, w3, b3)


# --------------------------------------------------------------------------- #
# Parameter init + one-time preprocessing (packing / padding / bf16 / BN folding)
# --------------------------------------------------------------------------- #
def init_params(key, *, in_dim, hidden_dim, num_labels):
    ks = jax.random.split(key, 18)
    s = 0.02
    rn = lambda k, shp: jax.random.normal(k, shp, jnp.float32) * s
    return {
        "w1": rn(ks[0], (in_dim, hidden_dim)), "b1": rn(ks[1], (hidden_dim,)),
        "wq": rn(ks[2], (hidden_dim, hidden_dim)), "bq": rn(ks[3], (hidden_dim,)),
        "wk": rn(ks[4], (hidden_dim, hidden_dim)), "bk": rn(ks[5], (hidden_dim,)),
        "wv": rn(ks[6], (hidden_dim, hidden_dim)), "bv": rn(ks[7], (hidden_dim,)),
        "wo": rn(ks[8], (hidden_dim, hidden_dim)), "bo": rn(ks[9], (hidden_dim,)),
        "w2": rn(ks[10], (hidden_dim, hidden_dim)), "b2": rn(ks[11], (hidden_dim,)),
        "w3": rn(ks[12], (hidden_dim, num_labels)), "b3": rn(ks[13], (num_labels,)),
        "bn_gamma": 1.0 + 0.1 * jax.random.normal(ks[14], (hidden_dim,), jnp.float32),
        "bn_beta": 0.1 * jax.random.normal(ks[15], (hidden_dim,), jnp.float32),
        "bn_mean": 0.05 * jax.random.normal(ks[16], (hidden_dim,), jnp.float32),
        "bn_var": 1.0 + 0.1 * jnp.abs(jax.random.normal(ks[17], (hidden_dim,), jnp.float32)),
    }


def preprocess_params(params, *, num_heads, heads_per_step=4, fc2_tile=512):
    """One-time prep (NOT per call): pad to lane multiples, pack weights into contiguous
    head-major / tile-major 3D blocks, cast streamed weights to bf16, fold BatchNorm
    running stats into a per-feature scale/shift."""
    in_dim, H = params["w1"].shape
    L = params["w3"].shape[1]
    dh = H // num_heads
    assert num_heads % heads_per_step == 0 and H % fc2_tile == 0
    n_groups = num_heads // heads_per_step
    gdh = heads_per_step * dh
    n_tiles = H // fc2_tile
    Kp = _round_up(in_dim, 128)
    Lp = _round_up(L, 128)

    bf = lambda a: a.astype(jnp.bfloat16)
    row = lambda v: v.reshape(1, -1).astype(jnp.float32)

    w1 = jnp.zeros((Kp, H), jnp.bfloat16).at[:in_dim, :].set(bf(params["w1"]))

    def cols_by_group(w):        # (H, H) -> (n_groups, H, gdh), contiguous per group
        return jnp.transpose(w.reshape(H, n_groups, gdh), (1, 0, 2))

    wqkv = jnp.concatenate([cols_by_group(params["wq"]),
                            cols_by_group(params["wk"]),
                            cols_by_group(params["wv"])], axis=-1)   # (n_groups, H, 3*gdh)
    bqkv = jnp.concatenate([params["bq"].reshape(n_groups, gdh),
                            params["bk"].reshape(n_groups, gdh),
                            params["bv"].reshape(n_groups, gdh)], axis=-1).reshape(1, -1)

    wo = params["wo"].reshape(n_groups, gdh, H)                      # row blocks per group

    w2 = jnp.transpose(params["w2"].reshape(H, n_tiles, fc2_tile), (1, 0, 2))
    w3 = jnp.zeros((H, Lp), jnp.float32).at[:, :L].set(params["w3"]).reshape(
        n_tiles, fc2_tile, Lp)
    b3 = jnp.zeros((1, Lp), jnp.float32).at[0, :L].set(params["b3"])

    bn_scale = params["bn_gamma"] / jnp.sqrt(params["bn_var"] + BN_EPS)
    bn_shift = params["bn_beta"] - params["bn_mean"] * bn_scale

    return {
        "w1": w1, "b1": row(params["b1"]),
        "wqkv": bf(wqkv), "bqkv": bqkv.astype(jnp.float32),
        "wo": bf(wo), "bo": row(params["bo"]),
        "w2": bf(w2), "b2": row(params["b2"]),
        "bn_scale": row(bn_scale), "bn_shift": row(bn_shift),
        "w3": bf(w3), "b3": b3,
        "num_heads": num_heads, "heads_per_step": heads_per_step, "head_dim": dh,
        "num_labels": L, "in_dim": in_dim,
    }


# --------------------------------------------------------------------------- #
# Forward pass (matches the PyTorch module, inference mode)
# --------------------------------------------------------------------------- #
def multimodal_atten_forward(text_embeddings, image_embeddings, prep):
    B = text_embeddings.shape[0]
    in_dim = prep["in_dim"]
    Kp = prep["w1"].shape[0]
    Bp = _round_up(B, 8)

    combined = jnp.concatenate([text_embeddings, image_embeddings], axis=1)  # (B, 1003)
    x_pad = jnp.zeros((Bp, Kp), jnp.float32).at[:B, :in_dim].set(combined)

    h = fc1_relu(x_pad, prep["w1"], prep["b1"])                              # (Bp, H) bf16
    a = attention_outproj(h, prep["wqkv"], prep["bqkv"], prep["wo"], prep["bo"],
                          heads_per_step=prep["heads_per_step"],
                          head_dim=prep["head_dim"], valid_b=B)              # (Bp, H) bf16
    out = output_head(a, prep["w2"], prep["b2"], prep["bn_scale"], prep["bn_shift"],
                      prep["w3"], prep["b3"])                                # (Bp, Lp) f32
    return out[:B, :prep["num_labels"]]


def reference_forward(text_embeddings, image_embeddings, params, *, num_heads):
    x = jnp.concatenate([text_embeddings, image_embeddings], axis=1)
    h = jnp.maximum(x @ params["w1"] + params["b1"], 0.0)
    B, H = h.shape
    dh = H // num_heads
    q = (h @ params["wq"] + params["bq"]).reshape(B, num_heads, dh)
    k = (h @ params["wk"] + params["bk"]).reshape(B, num_heads, dh)
    v = (h @ params["wv"] + params["bv"]).reshape(B, num_heads, dh)
    s = jnp.einsum("qhd,khd->hqk", q, k) / math.sqrt(dh)
    attn = jax.nn.softmax(s, axis=-1)
    o = jnp.einsum("hqk,khd->qhd", attn, v).reshape(B, H)
    o = o @ params["wo"] + params["bo"]
    y = jnp.maximum(o @ params["w2"] + params["b2"], 0.0)
    y = (y - params["bn_mean"]) / jnp.sqrt(params["bn_var"] + BN_EPS)
    y = y * params["bn_gamma"] + params["bn_beta"]
    y = jax.nn.sigmoid(y)
    return y @ params["w3"] + params["b3"]


if __name__ == "__main__":
    key = jax.random.PRNGKey(0)
    k_params, k_txt, k_img = jax.random.split(key, 3)

    batch = 4
    text_dim = 3           # bert classification-head logits
    image_dim = 1000       # resnet ImageNet logits -> concat dim 1003
    hidden_dim = 2048
    num_heads = 16
    num_labels = 3

    # TODO(synk): bert_model / resnet_model are external backbone submodules; their
    # outputs are stand-in deterministic embeddings here (not full backbone forwards).
    text_embeddings = jax.random.normal(k_txt, (batch, text_dim), jnp.float32)
    image_embeddings = jax.random.normal(k_img, (batch, image_dim), jnp.float32)

    params = init_params(k_params, in_dim=text_dim + image_dim,
                         hidden_dim=hidden_dim, num_labels=num_labels)
    prep = preprocess_params(params, num_heads=num_heads)   # one-time weight prep/packing

    logits = multimodal_atten_forward(text_embeddings, image_embeddings, prep)
    jax.block_until_ready(logits)

    ref = reference_forward(text_embeddings, image_embeddings, params,
                            num_heads=num_heads)
    assert logits.shape == (batch, num_labels)
    # bf16 weight/activation streaming -> relaxed tolerance vs the f32 reference.
    assert jnp.allclose(logits, ref, atol=5e-2, rtol=5e-2), \
        float(jnp.max(jnp.abs(logits - ref)))

    print("KERNEL_OK")
</pallas_src>

<mosaic_0001>
module attributes {stable_mosaic.version = 11 : i64} {
  func.func @fc1_relu_kernel(%arg0: memref<8x1024xf32, #tpu.memory_space<vmem>>, %arg1: memref<1024x2048xbf16, #tpu.memory_space<vmem>>, %arg2: memref<1x2048xf32, #tpu.memory_space<vmem>>, %arg3: memref<8x2048xbf16, #tpu.memory_space<vmem>>) attributes {dimension_semantics = [], scalar_prefetch = 0 : i64, scratch_operands = 0 : i64, tpu.core_type = #tpu.core_type<tc>} {
    %c0 = arith.constant 0 : index
    %c0_0 = arith.constant 0 : index
    %0 = vector.load %arg0[%c0, %c0_0] : memref<8x1024xf32, #tpu.memory_space<vmem>>, vector<8x1024xf32>
    %1 = arith.truncf %0 : vector<8x1024xf32> to vector<8x1024xbf16>
    %c0_1 = arith.constant 0 : index
    %c0_2 = arith.constant 0 : index
    %2 = vector.load %arg1[%c0_1, %c0_2] : memref<1024x2048xbf16, #tpu.memory_space<vmem>>, vector<1024x2048xbf16>
    %cst = arith.constant dense<0.000000e+00> : vector<8x2048xf32>
    %3 = tpu.matmul %1, %2, %cst {dimension_numbers = #tpu.dot_dimension_numbers<[1], [0], [0], [1], [0, 0, 1, 1], [], []>} : vector<8x1024xbf16>, vector<1024x2048xbf16>, vector<8x2048xf32> -> vector<8x2048xf32>
    %c0_3 = arith.constant 0 : index
    %c0_4 = arith.constant 0 : index
    %4 = vector.load %arg2[%c0_3, %c0_4] : memref<1x2048xf32, #tpu.memory_space<vmem>>, vector<1x2048xf32>
    %5 = vector.broadcast %4 : vector<1x2048xf32> to vector<8x2048xf32>
    %6 = arith.addf %3, %5 : vector<8x2048xf32>
    %cst_5 = arith.constant 0.000000e+00 : f32
    %7 = vector.broadcast %cst_5 : f32 to vector<8x2048xf32>
    %8 = arith.maximumf %6, %7 : vector<8x2048xf32>
    %9 = arith.truncf %8 : vector<8x2048xf32> to vector<8x2048xbf16>
    %c0_6 = arith.constant 0 : index
    %c0_7 = arith.constant 0 : index
    %10 = vector.load %arg3[%c0_6, %c0_7] : memref<8x2048xbf16, #tpu.memory_space<vmem>>, vector<8x2048xbf16>
    tpu.vector_store %arg3[%c0_6, %c0_7], %9 {strides = array<i32>} : memref<8x2048xbf16, #tpu.memory_space<vmem>>, vector<8x2048xbf16>,
    return
  }
}

</mosaic_0001>

<bundles_post_ra>
// kernel: tpu_custom_call.1
= control target key start
LH: loop header
LB: loop body
LE: loop exit
PB: predicated region body
PF: predicated region fallthrough
CT: control target
= control target key end

     0   :  { %8 = vsyncpa [#allocation3], 0  ;;  %s9096_s0 = inlined_call_operand.hbm [shape: f32[8,1024], index: 0, kind: input, shape index: {}]   ;;  %s9097_s1 = inlined_call_operand.hbm [shape: bf16[1024,2048], index: 1, kind: input, shape index: {}]   ;;  %s9098_s2 = inlined_call_operand.hbm [shape: f32[1,2048], index: 2, kind: input, shape index: {}]   ;;  %s9099_s3 = inlined_call_operand.hbm [shape: bf16[8,2048], index: 3, kind: output, shape index: {}]  }
   0x1   :  { %9 = vsyncpa [#allocation6], 0 }
   0x2   :  { %10 = vsyncpa [#allocation4], 0  ;;  %s8846_s12 = smov [#allocation5]  }
   0x3   :  { %s26_s13 = sshll.u32 %s8846_s12, 4  ;;  %s27_s13 = int_to_ptr.vmem [resolvable:$true] %s26_s13 }
   0x4   :  { %s8768_s14 = scalar_lea.vmem %s27_s13, 131072  ;;  %p8773_p1 = scmp.lt.s32.totalorder %s27_s13, %s27_s13 }
   0x5   :  { %p8769_p0 = scmp.ne.s32.totalorder %s27_s13, %s8768_s14  ;;  %p8774_p2 = scmp.lt.s32.totalorder %s8768_s14, %s8768_s14 }
   0x7   :  { %p8775_p3 = por %p8774_p2, %p8773_p1 }
   0x9   :  { %p8776_p4 = pnand %p8775_p3, %p8769_p0 }
   0xb   :  { %8779 = shalt.err (!%p8776_p4)
}
   0xc   :  { %s8847_s15 = smov 1024   ;;  %s8848_s16 = smov 64  }
   0xd   :  { %32 = dma.hbm_to_vmem [thread:$0]  %s9097_s1, 131072, %s27_s13, [#allocation6], %s8847_s15, %s8847_s15, %s8848_s16  }
   0xe   :  { %s8849_s19 = smov [#allocation2]   ;;  %s8850_s21 = smov [#allocation7]  }
   0xf   :  { %s17_s20 = sshll.u32 %s8849_s19, 4  ;;  %s39_s22 = sshll.u32 %s8850_s21, 4  ;;  %s18_s20 = int_to_ptr.vmem [resolvable:$true] %s17_s20  ;;  %s40_s22 = int_to_ptr.vmem [resolvable:$true] %s39_s22 }
  0x10   :  { %s8788_s23 = scalar_lea.vmem %s18_s20, 1024  ;;  %p8793_p6 = scmp.lt.s32.totalorder %s18_s20, %s18_s20 }
  0x11   :  { %p8789_p5 = scmp.ne.s32.totalorder %s18_s20, %s8788_s23  ;;  %p8794_p7 = scmp.lt.s32.totalorder %s8788_s23, %s8788_s23 }
  0x13   :  { %p8795_p8 = por %p8794_p7, %p8793_p6 }
  0x15   :  { %p8796_p9 = pnand %p8795_p8, %p8789_p5 }
  0x17   :  { %8799 = shalt.err (!%p8796_p9)
}
  0x18   :  { %20 = dma.hbm_to_vmem [thread:$0]  %s9096_s0, 1024, %s18_s20, [#allocation3]  }
  0x19   :  { %s8808_s26 = scalar_lea.vmem %s40_s22, 256  ;;  %p8813_p11 = scmp.lt.s32.totalorder %s40_s22, %s40_s22 }
  0x1a   :  { %p8809_p10 = scmp.ne.s32.totalorder %s40_s22, %s8808_s26  ;;  %p8814_p12 = scmp.lt.s32.totalorder %s8808_s26, %s8808_s26 }
  0x1c   :  { %p8815_p13 = por %p8814_p12, %p8813_p11 }
  0x1e   :  { %p8816_p0 = pnand %p8815_p13, %p8809_p10 }
  0x20   :  { %8819 = shalt.err (!%p8816_p0)
}
  0x21   :  { %42 = dma.hbm_to_vmem [thread:$0]  %s9098_s2, 256, %s40_s22, [#allocation6]  }
  0x22   :  { %8840 = dma.done.wait [#allocation3], 1024  }
  0x23   :  { %8841 = vsyncadd [#allocation3], 4294966272 }
  0x24   :  { %8842 = dma.done.wait [#allocation6], 131328  }
  0x25   :  { %8843 = vsyncadd [#allocation6], 4294835968  ;;  %v180_v0 = vld [vmem:[#allocation5 + $0x380] sm:$0xff]  ;;  %v53_v53 = vld [vmem:[#allocation2 + $0x8] sm:$0xff]  ;;  %s8851_s0 = smov [#allocation8]  }
  0x26   :  { %v188_v1 = vld [vmem:[#allocation5 + $0x3c0] sm:$0xff]  ;;  %v55_v54 = vld [vmem:[#allocation2 + $0x18] sm:$0xff]  ;;  %v8881_v58 = vpack.c.bf16 %v53_v53, %v53_v53  ;;  %s7702_s2 = sshll.u32 %s8851_s0, 4  ;;  %s7703_s2 = int_to_ptr.vmem [resolvable:$true] %s7702_s2 }
  0x27   :  { %v436_v2 = vld [vmem:[#allocation5 + $0xb80] sm:$0xff]  ;;  %v7825_v3 = vcombine.high %v180_v0, %v188_v1  ;;  %v7824_v5 = vcombine.low %v180_v0, %v188_v1  ;;  %v8883_v59 = vpack.c.bf16 %v55_v54, %v55_v54  ;;  %s8820_s28 = scalar_lea.vmem %s7703_s2, 1024  ;;  %p8825_p2 = scmp.lt.s32.totalorder %s7703_s2, %s7703_s2 }
  0x28   :  { %v444_v4 = vld [vmem:[#allocation5 + $0xbc0] sm:$0xff]  ;;  %6328 = vmatprep.mubr.bf16.mxu0 %v8881_v58  ;;  %p8821_p1 = scmp.ne.s32.totalorder %s7703_s2, %s8820_s28  ;;  %p8826_p3 = scmp.lt.s32.totalorder %s8820_s28, %s8820_s28 }
  0x29   :  { %v164_v6 = vld [vmem:[#allocation5 + $0x300] sm:$0xff]  ;;  %v8081_v8 = vcombine.high %v436_v2, %v444_v4  ;;  %v8080_v9 = vcombine.low %v436_v2, %v444_v4  ;;  %6296 = vmatprep.subr.bf16.mxu0 %v7825_v3  ;;  %6369 = vmatprep.mubr.bf16.mxu1 %v8883_v59 }
  0x2a   :  { %v172_v7 = vld [vmem:[#allocation5 + $0x340] sm:$0xff]  ;;  %6297 = vmatpush1.bf16.msra.mxu0 %v7824_v5  ;;  %p8827_p4 = por %p8826_p3, %p8825_p2 }
  0x2b   :  { %v7809_v10 = vcombine.high %v164_v6, %v172_v7  ;;  %v420_v11 = vld [vmem:[#allocation5 + $0xb00] sm:$0xff]  ;;  %6337 = vmatprep.subr.bf16.mxu1 %v8081_v8  ;;  %v7808_v18 = vcombine.low %v164_v6, %v172_v7 }
  0x2c   :  { %v428_v12 = vld [vmem:[#allocation5 + $0xb40] sm:$0xff]  ;;  %6338 = vmatpush1.bf16.msra.mxu1 %v8080_v9  ;;  %p8828_p5 = pnand %p8827_p4, %p8821_p1 }
  0x2d   :  { %v148_v13 = vld [vmem:[#allocation5 + $0x280] sm:$0xff]  ;;  %v8065_v14 = vcombine.high %v420_v11, %v428_v12  ;;  %6298 = vmatprep.subr.bf16.mxu0 %v7809_v10  ;;  %v8064_v19 = vcombine.low %v420_v11, %v428_v12 }
  0x2e   :  { %v156_v15 = vld [vmem:[#allocation5 + $0x2c0] sm:$0xff]  ;;  %6299 = vmatpush1.bf16.msra.mxu0 %v7808_v18 }
  0x2f   :  { %v404_v16 = vld [vmem:[#allocation5 + $0xa80] sm:$0xff]  ;;  %v7793_v20 = vcombine.high %v148_v13, %v156_v15  ;;  %6339 = vmatprep.subr.bf16.mxu1 %v8065_v14  ;;  %v7792_v26 = vcombine.low %v148_v13, %v156_v15 }
  0x30   :  { %v412_v17 = vld [vmem:[#allocation5 + $0xac0] sm:$0xff]  ;;  %6340 = vmatpush1.bf16.msra.mxu1 %v8064_v19 }
  0x31   :  { %v8049_v21 = vcombine.high %v404_v16, %v412_v17  ;;  %v132_v22 = vld [vmem:[#allocation5 + $0x200] sm:$0xff]  ;;  %6300 = vmatprep.subr.bf16.mxu0 %v7793_v20  ;;  %v8048_v27 = vcombine.low %v404_v16, %v412_v17 }
  0x32   :  { %v140_v23 = vld [vmem:[#allocation5 + $0x240] sm:$0xff]  ;;  %6301 = vmatpush1.bf16.msra.mxu0 %v7792_v26 }
  0x33   :  { %v388_v24 = vld [vmem:[#allocation5 + $0xa00] sm:$0xff]  ;;  %v7777_v28 = vcombine.high %v132_v22, %v140_v23  ;;  %6341 = vmatprep.subr.bf16.mxu1 %v8049_v21  ;;  %v7776_v34 = vcombine.low %v132_v22, %v140_v23 }
  0x34   :  { %v396_v25 = vld [vmem:[#allocation5 + $0xa40] sm:$0xff]  ;;  %6342 = vmatpush1.bf16.msra.mxu1 %v8048_v27 }
  0x35   :  { %v8033_v29 = vcombine.high %v388_v24, %v396_v25  ;;  %v116_v30 = vld [vmem:[#allocation5 + $0x180] sm:$0xff]  ;;  %6302 = vmatprep.subr.bf16.mxu0 %v7777_v28  ;;  %v8032_v35 = vcombine.low %v388_v24, %v396_v25 }
  0x36   :  { %v124_v31 = vld [vmem:[#allocation5 + $0x1c0] sm:$0xff]  ;;  %6303 = vmatpush1.bf16.msra.mxu0 %v7776_v34 }
  0x37   :  { %v372_v32 = vld [vmem:[#allocation5 + $0x980] sm:$0xff]  ;;  %v7761_v36 = vcombine.high %v116_v30, %v124_v31  ;;  %6343 = vmatprep.subr.bf16.mxu1 %v8033_v29  ;;  %v7760_v42 = vcombine.low %v116_v30, %v124_v31 }
  0x38   :  { %v380_v33 = vld [vmem:[#allocation5 + $0x9c0] sm:$0xff]  ;;  %6344 = vmatpush1.bf16.msra.mxu1 %v8032_v35 }
  0x39   :  { %v8017_v37 = vcombine.high %v372_v32, %v380_v33  ;;  %v100_v38 = vld [vmem:[#allocation5 + $0x100] sm:$0xff]  ;;  %6304 = vmatprep.subr.bf16.mxu0 %v7761_v36  ;;  %v8016_v43 = vcombine.low %v372_v32, %v380_v33 }
  0x3a   :  { %v108_v39 = vld [vmem:[#allocation5 + $0x140] sm:$0xff]  ;;  %6305 = vmatpush1.bf16.msra.mxu0 %v7760_v42 }
  0x3b   :  { %v356_v40 = vld [vmem:[#allocation5 + $0x900] sm:$0xff]  ;;  %v7745_v44 = vcombine.high %v100_v38, %v108_v39  ;;  %6345 = vmatprep.subr.bf16.mxu1 %v8017_v37  ;;  %v7744_v50 = vcombine.low %v100_v38, %v108_v39 }
  0x3c   :  { %v364_v41 = vld [vmem:[#allocation5 + $0x940] sm:$0xff]  ;;  %6346 = vmatpush1.bf16.msra.mxu1 %v8016_v43 }
  0x3d   :  { %v8001_v45 = vcombine.high %v356_v40, %v364_v41  ;;  %v84_v46 = vld [vmem:[#allocation5 + $0x80] sm:$0xff]  ;;  %6306 = vmatprep.subr.bf16.mxu0 %v7745_v44  ;;  %v8000_v51 = vcombine.low %v356_v40, %v364_v41 }
  0x3e   :  { %v92_v47 = vld [vmem:[#allocation5 + $0xc0] sm:$0xff]  ;;  %6307 = vmatpush1.bf16.msra.mxu0 %v7744_v50 }
  0x3f   :  { %v340_v48 = vld [vmem:[#allocation5 + $0x880] sm:$0xff]  ;;  %v7729_v52 = vcombine.high %v84_v46, %v92_v47  ;;  %6347 = vmatprep.subr.bf16.mxu1 %v8001_v45  ;;  %v7728_v62 = vcombine.low %v84_v46, %v92_v47 }
  0x40   :  { %v348_v49 = vld [vmem:[#allocation5 + $0x8c0] sm:$0xff]  ;;  %6348 = vmatpush1.bf16.msra.mxu1 %v8000_v51 }
  0x41   :  { %v7985_v55 = vcombine.high %v340_v48, %v348_v49  ;;  %v68_v56 = vld [vmem:[#allocation5] sm:$0xff]  ;;  %6308 = vmatprep.subr.bf16.mxu0 %v7729_v52  ;;  %v7984_v63 = vcombine.low %v340_v48, %v348_v49 }
  0x42   :  { %v76_v57 = vld [vmem:[#allocation5 + $0x40] sm:$0xff]  ;;  %6309 = vmatpush1.bf16.msra.mxu0 %v7728_v62 }
  0x43   :  { %v324_v60 = vld [vmem:[#allocation5 + $0x800] sm:$0xff]  ;;  %v7713_v0 = vcombine.high %v68_v56, %v76_v57  ;;  %6349 = vmatprep.subr.bf16.mxu1 %v7985_v55  ;;  %v7712_v6 = vcombine.low %v68_v56, %v76_v57 }
  0x44   :  { %v332_v61 = vld [vmem:[#allocation5 + $0x840] sm:$0xff]  ;;  %6350 = vmatpush1.bf16.msra.mxu1 %v7984_v63 }
  0x45   :  { %v7969_v1 = vcombine.high %v324_v60, %v332_v61  ;;  %v308_v2 = vld [vmem:[#allocation5 + $0x780] sm:$0xff]  ;;  %6310 = vmatprep.subr.bf16.mxu0 %v7713_v0  ;;  %v7968_v7 = vcombine.low %v324_v60, %v332_v61 }
  0x46   :  { %v316_v3 = vld [vmem:[#allocation5 + $0x7c0] sm:$0xff]  ;;  %6311 = vmatpush1.bf16.msra.mxu0 %v7712_v6 }
  0x47   :  { %v564_v4 = vld [vmem:[#allocation5 + $0xf80] sm:$0xff]  ;;  %v7953_v8 = vcombine.high %v308_v2, %v316_v3  ;;  %6351 = vmatprep.subr.bf16.mxu1 %v7969_v1  ;;  %v7952_v14 = vcombine.low %v308_v2, %v316_v3 }
  0x48   :  { %v572_v5 = vld [vmem:[#allocation5 + $0xfc0] sm:$0xff]  ;;  %6352 = vmatpush1.bf16.msra.mxu1 %v7968_v7 }
  0x49   :  { %v8209_v9 = vcombine.high %v564_v4, %v572_v5  ;;  %v292_v10 = vld [vmem:[#allocation5 + $0x700] sm:$0xff]  ;;  %6312 = vmatprep.subr.bf16.mxu0 %v7953_v8  ;;  %v8208_v15 = vcombine.low %v564_v4, %v572_v5 }
  0x4a   :  { %v300_v11 = vld [vmem:[#allocation5 + $0x740] sm:$0xff]  ;;  %6313 = vmatpush2.bf16.msra.mxu0 %v7952_v14 }
  0x4b   :  { %v548_v12 = vld [vmem:[#allocation5 + $0xf00] sm:$0xff]  ;;  %v7937_v16 = vcombine.high %v292_v10, %v300_v11  ;;  %6353 = vmatprep.subr.bf16.mxu1 %v8209_v9  ;;  %v7936_v22 = vcombine.low %v292_v10, %v300_v11  ;;  %v54_v11 = vld [vmem:[#allocation2 + $0x10] sm:$0xff] }
  0x4c   :  { %v556_v13 = vld [vmem:[#allocation5 + $0xf40] sm:$0xff]  ;;  %6354 = vmatpush2.bf16.msra.mxu1 %v8208_v15 }
  0x4d   :  { %v8193_v17 = vcombine.high %v548_v12, %v556_v13  ;;  %v276_v18 = vld [vmem:[#allocation5 + $0x680] sm:$0xff]  ;;  %6314 = vmatprep.subr.bf16.mxu0 %v7937_v16  ;;  %v8192_v23 = vcombine.low %v548_v12, %v556_v13 }
  0x4e   :  { %v284_v19 = vld [vmem:[#allocation5 + $0x6c0] sm:$0xff]  ;;  %6315 = vmatpush2.bf16.msra.mxu0 %v7936_v22  ;;  %v59_v22 = vld [vmem:[#allocation2 + $0x38] sm:$0xff] }
  0x4f   :  { %v532_v20 = vld [vmem:[#allocation5 + $0xe80] sm:$0xff]  ;;  %v7921_v24 = vcombine.high %v276_v18, %v284_v19  ;;  %6355 = vmatprep.subr.bf16.mxu1 %v8193_v17  ;;  %v7920_v30 = vcombine.low %v276_v18, %v284_v19  ;;  %v57_v19 = vld [vmem:[#allocation2 + $0x28] sm:$0xff] }
  0x50   :  { %v540_v21 = vld [vmem:[#allocation5 + $0xec0] sm:$0xff]  ;;  %6356 = vmatpush2.bf16.msra.mxu1 %v8192_v23 }
  0x51   :  { %v8177_v25 = vcombine.high %v532_v20, %v540_v21  ;;  %v260_v26 = vld [vmem:[#allocation5 + $0x600] sm:$0xff]  ;;  %6316 = vmatprep.subr.bf16.mxu0 %v7921_v24  ;;  %v8176_v31 = vcombine.low %v532_v20, %v540_v21  ;;  %v8889_v20 = vpack.c.bf16 %v54_v11, %v54_v11 }
  0x52   :  { %v268_v27 = vld [vmem:[#allocation5 + $0x640] sm:$0xff]  ;;  %6317 = vmatpush2.bf16.msra.mxu0 %v7920_v30 }
  0x53   :  { %v516_v28 = vld [vmem:[#allocation5 + $0xe00] sm:$0xff]  ;;  %v7905_v32 = vcombine.high %v260_v26, %v268_v27  ;;  %6357 = vmatprep.subr.bf16.mxu1 %v8177_v25  ;;  %v7904_v38 = vcombine.low %v260_v26, %v268_v27 }
  0x54   :  { %v524_v29 = vld [vmem:[#allocation5 + $0xe40] sm:$0xff]  ;;  %6358 = vmatpush2.bf16.msra.mxu1 %v8176_v31  ;;  %v8894_v31 = vpack.c.bf16 %v59_v22, %v59_v22 }
  0x55   :  { %v8161_v33 = vcombine.high %v516_v28, %v524_v29  ;;  %v244_v34 = vld [vmem:[#allocation5 + $0x580] sm:$0xff]  ;;  %6318 = vmatprep.subr.bf16.mxu0 %v7905_v32  ;;  %v8160_v39 = vcombine.low %v516_v28, %v524_v29  ;;  %v8891_v28 = vpack.c.bf16 %v57_v19, %v57_v19 }
  0x56   :  { %v252_v35 = vld [vmem:[#allocation5 + $0x5c0] sm:$0xff]  ;;  %6319 = vmatpush2.bf16.msra.mxu0 %v7904_v38 }
  0x57   :  { %v500_v36 = vld [vmem:[#allocation5 + $0xd80] sm:$0xff]  ;;  %v7889_v40 = vcombine.high %v244_v34, %v252_v35  ;;  %6359 = vmatprep.subr.bf16.mxu1 %v8161_v33  ;;  %v7888_v46 = vcombine.low %v244_v34, %v252_v35 }
  0x58   :  { %v508_v37 = vld [vmem:[#allocation5 + $0xdc0] sm:$0xff]  ;;  %6360 = vmatpush2.bf16.msra.mxu1 %v8160_v39 }
  0x59   :  { %v8145_v41 = vcombine.high %v500_v36, %v508_v37  ;;  %v228_v42 = vld [vmem:[#allocation5 + $0x500] sm:$0xff]  ;;  %6320 = vmatprep.subr.bf16.mxu0 %v7889_v40  ;;  %v8144_v47 = vcombine.low %v500_v36, %v508_v37 }
  0x5a   :  { %v236_v43 = vld [vmem:[#allocation5 + $0x540] sm:$0xff]  ;;  %6321 = vmatpush2.bf16.msra.mxu0 %v7888_v46 }
  0x5b   :  { %v484_v44 = vld [vmem:[#allocation5 + $0xd00] sm:$0xff]  ;;  %v7873_v48 = vcombine.high %v228_v42, %v236_v43  ;;  %6361 = vmatprep.subr.bf16.mxu1 %v8145_v41  ;;  %v7872_v54 = vcombine.low %v228_v42, %v236_v43 }
  0x5c   :  { %v492_v45 = vld [vmem:[#allocation5 + $0xd40] sm:$0xff]  ;;  %6362 = vmatpush2.bf16.msra.mxu1 %v8144_v47 }
  0x5d   :  { %v8129_v49 = vcombine.high %v484_v44, %v492_v45  ;;  %v212_v50 = vld [vmem:[#allocation5 + $0x480] sm:$0xff]  ;;  %6322 = vmatprep.subr.bf16.mxu0 %v7873_v48  ;;  %v8128_v55 = vcombine.low %v484_v44, %v492_v45 }
  0x5e   :  { %v220_v51 = vld [vmem:[#allocation5 + $0x4c0] sm:$0xff]  ;;  %6323 = vmatpush2.bf16.msra.mxu0 %v7872_v54 }
  0x5f   :  { %v468_v52 = vld [vmem:[#allocation5 + $0xc80] sm:$0xff]  ;;  %v7857_v56 = vcombine.high %v212_v50, %v220_v51  ;;  %6363 = vmatprep.subr.bf16.mxu1 %v8129_v49  ;;  %v7856_v0 = vcombine.low %v212_v50, %v220_v51 }
  0x60   :  { %v476_v53 = vld [vmem:[#allocation5 + $0xcc0] sm:$0xff]  ;;  %6364 = vmatpush2.bf16.msra.mxu1 %v8128_v55 }
  0x61   :  { %v8113_v57 = vcombine.high %v468_v52, %v476_v53  ;;  %v196_v60 = vld [vmem:[#allocation5 + $0x400] sm:$0xff]  ;;  %6324 = vmatprep.subr.bf16.mxu0 %v7857_v56  ;;  %v8112_v1 = vcombine.low %v468_v52, %v476_v53 }
  0x62   :  { %v204_v61 = vld [vmem:[#allocation5 + $0x440] sm:$0xff]  ;;  %6325 = vmatpush2.bf16.msra.mxu0 %v7856_v0 }
  0x63   :  { %v452_v62 = vld [vmem:[#allocation5 + $0xc00] sm:$0xff]  ;;  %v7841_v2 = vcombine.high %v196_v60, %v204_v61  ;;  %6365 = vmatprep.subr.bf16.mxu1 %v8113_v57  ;;  %v7840_v8 = vcombine.low %v196_v60, %v204_v61 }
  0x64   :  { %v460_v63 = vld [vmem:[#allocation5 + $0xc40] sm:$0xff]  ;;  %6366 = vmatpush2.bf16.msra.mxu1 %v8112_v1 }
  0x65   :  { %v8097_v3 = vcombine.high %v452_v62, %v460_v63  ;;  %v692_v4 = vld [vmem:[#allocation5 + $0x1380] sm:$0xff]  ;;  %6326 = vmatprep.subr.bf16.mxu0 %v7841_v2  ;;  %v8096_v10 = vcombine.low %v452_v62, %v460_v63 }
  0x66   :  { %v700_v5 = vld [vmem:[#allocation5 + $0x13c0] sm:$0xff]  ;;  %6327 = vmatpush2.bf16.msra.mxu0 %v7840_v8 }
  0x67   :  { %v948_v6 = vld [vmem:[#allocation5 + $0x1b80] sm:$0xff]  ;;  %v8337_v12 = vcombine.high %v692_v4, %v700_v5  ;;  %6367 = vmatprep.subr.bf16.mxu1 %v8097_v3  ;;  %v8336_v21 = vcombine.low %v692_v4, %v700_v5 }
  0x68   :  { %v956_v7 = vld [vmem:[#allocation5 + $0x1bc0] sm:$0xff]  ;;  %6368 = vmatpush2.bf16.msra.mxu1 %v8096_v10 }
  0x69   :  { %v52_v9 = vld [vmem:[#allocation2] sm:$0xff]  ;;  %v8593_v13 = vcombine.high %v948_v6, %v956_v7  ;;  %6378 = vmatprep.subr.bf16.mxu0 %v8337_v12  ;;  %v8592_v23 = vcombine.low %v948_v6, %v956_v7 }
  0x6a   :  { %v676_v14 = vld [vmem:[#allocation5 + $0x1300] sm:$0xff]  ;;  %v8887_v16 = vpack.c.bf16 %v52_v9, %v52_v9 }
  0x6b   :  { %v684_v15 = vld [vmem:[#allocation5 + $0x1340] sm:$0xff]  ;;  %6419 = vmatprep.subr.bf16.mxu1 %v8593_v13  ;;  %6370 = vmatmul.mubr.bf16.vlgmr.msra.gmra.mxu1 %v8889_v20 }
  0x6c   :  { %v932_v17 = vld [vmem:[#allocation5 + $0x1b00] sm:$0xff]  ;;  %v8321_v24 = vcombine.high %v676_v14, %v684_v15  ;;  %6329 = vmatmul.mubr.bf16.vlgmr.msra.gmra.mxu0 %v8887_v16  ;;  %v8320_v32 = vcombine.low %v676_v14, %v684_v15  ;;  %6420 = vmatpush1.bf16.msra.mxu1 %v8592_v23 }
  0x6d   :  { %v940_v18 = vld [vmem:[#allocation5 + $0x1b40] sm:$0xff]  ;;  %6379 = vmatpush1.bf16.msra.mxu0 %v8336_v21  ;;  %6410 = vmatprep.mubr.bf16.mxu0 %v8891_v28 }
  0x6e   :  { %v8577_v25 = vcombine.high %v932_v17, %v940_v18  ;;  %v660_v26 = vld [vmem:[#allocation5 + $0x1280] sm:$0xff]  ;;  %6380 = vmatprep.subr.bf16.mxu0 %v8321_v24  ;;  %v8576_v33 = vcombine.low %v932_v17, %v940_v18  ;;  %6451 = vmatprep.mubr.bf16.mxu1 %v8894_v31 }
  0x6f   :  { %v668_v27 = vld [vmem:[#allocation5 + $0x12c0] sm:$0xff] }
  0x70   :  { %v916_v29 = vld [vmem:[#allocation5 + $0x1a80] sm:$0xff]  ;;  %v8305_v34 = vcombine.high %v660_v26, %v668_v27  ;;  %6421 = vmatprep.subr.bf16.mxu1 %v8577_v25  ;;  %v8304_v40 = vcombine.low %v660_v26, %v668_v27 }
  0x71   :  { %v924_v30 = vld [vmem:[#allocation5 + $0x1ac0] sm:$0xff]  ;;  %6381 = vmatpush1.bf16.msra.mxu0 %v8320_v32  ;;  %6422 = vmatpush1.bf16.msra.mxu1 %v8576_v33 }
  0x72   :  { %v8561_v35 = vcombine.high %v916_v29, %v924_v30  ;;  %v644_v36 = vld [vmem:[#allocation5 + $0x1200] sm:$0xff]  ;;  %6382 = vmatprep.subr.bf16.mxu0 %v8305_v34  ;;  %v8560_v41 = vcombine.low %v916_v29, %v924_v30 }
  0x73   :  { %v652_v37 = vld [vmem:[#allocation5 + $0x1240] sm:$0xff] }
  0x74   :  { %v900_v38 = vld [vmem:[#allocation5 + $0x1a00] sm:$0xff]  ;;  %v8289_v42 = vcombine.high %v644_v36, %v652_v37  ;;  %6423 = vmatprep.subr.bf16.mxu1 %v8561_v35  ;;  %v8288_v48 = vcombine.low %v644_v36, %v652_v37 }
  0x75   :  { %v908_v39 = vld [vmem:[#allocation5 + $0x1a40] sm:$0xff]  ;;  %6383 = vmatpush1.bf16.msra.mxu0 %v8304_v40  ;;  %6424 = vmatpush1.bf16.msra.mxu1 %v8560_v41 }
  0x76   :  { %v8545_v43 = vcombine.high %v900_v38, %v908_v39  ;;  %v628_v44 = vld [vmem:[#allocation5 + $0x1180] sm:$0xff]  ;;  %6384 = vmatprep.subr.bf16.mxu0 %v8289_v42  ;;  %v8544_v49 = vcombine.low %v900_v38, %v908_v39 }
  0x77   :  { %v636_v45 = vld [vmem:[#allocation5 + $0x11c0] sm:$0xff] }
  0x78   :  { %v884_v46 = vld [vmem:[#allocation5 + $0x1980] sm:$0xff]  ;;  %v8273_v50 = vcombine.high %v628_v44, %v636_v45  ;;  %6425 = vmatprep.subr.bf16.mxu1 %v8545_v43  ;;  %v8272_v56 = vcombine.low %v628_v44, %v636_v45 }
  0x79   :  { %v892_v47 = vld [vmem:[#allocation5 + $0x19c0] sm:$0xff]  ;;  %6385 = vmatpush1.bf16.msra.mxu0 %v8288_v48  ;;  %6426 = vmatpush1.bf16.msra.mxu1 %v8544_v49 }
  0x7a   :  { %v8529_v51 = vcombine.high %v884_v46, %v892_v47  ;;  %v612_v52 = vld [vmem:[#allocation5 + $0x1100] sm:$0xff]  ;;  %6386 = vmatprep.subr.bf16.mxu0 %v8273_v50  ;;  %v8528_v57 = vcombine.low %v884_v46, %v892_v47 }
  0x7b   :  { %v620_v53 = vld [vmem:[#allocation5 + $0x1140] sm:$0xff] }
  0x7c   :  { %v868_v54 = vld [vmem:[#allocation5 + $0x1900] sm:$0xff]  ;;  %v8257_v60 = vcombine.high %v612_v52, %v620_v53  ;;  %6427 = vmatprep.subr.bf16.mxu1 %v8529_v51  ;;  %v8256_v2 = vcombine.low %v612_v52, %v620_v53 }
  0x7d   :  { %v876_v55 = vld [vmem:[#allocation5 + $0x1940] sm:$0xff]  ;;  %6387 = vmatpush1.bf16.msra.mxu0 %v8272_v56  ;;  %6428 = vmatpush1.bf16.msra.mxu1 %v8528_v57 }
  0x7e   :  { %v8513_v61 = vcombine.high %v868_v54, %v876_v55  ;;  %v596_v62 = vld [vmem:[#allocation5 + $0x1080] sm:$0xff]  ;;  %6388 = vmatprep.subr.bf16.mxu0 %v8257_v60  ;;  %v8512_v3 = vcombine.low %v868_v54, %v876_v55 }
  0x7f   :  { %v604_v63 = vld [vmem:[#allocation5 + $0x10c0] sm:$0xff] }
  0x80   :  { %v852_v0 = vld [vmem:[#allocation5 + $0x1880] sm:$0xff]  ;;  %v8241_v4 = vcombine.high %v596_v62, %v604_v63  ;;  %6429 = vmatprep.subr.bf16.mxu1 %v8513_v61  ;;  %v8240_v10 = vcombine.low %v596_v62, %v604_v63 }
  0x81   :  { %v860_v1 = vld [vmem:[#allocation5 + $0x18c0] sm:$0xff]  ;;  %6389 = vmatpush1.bf16.msra.mxu0 %v8256_v2  ;;  %6430 = vmatpush1.bf16.msra.mxu1 %v8512_v3 }
  0x82   :  { %v8497_v5 = vcombine.high %v852_v0, %v860_v1  ;;  %v580_v6 = vld [vmem:[#allocation5 + $0x1000] sm:$0xff]  ;;  %6390 = vmatprep.subr.bf16.mxu0 %v8241_v4  ;;  %v8496_v11 = vcombine.low %v852_v0, %v860_v1 }
  0x83   :  { %v588_v7 = vld [vmem:[#allocation5 + $0x1040] sm:$0xff] }
  0x84   :  { %v836_v8 = vld [vmem:[#allocation5 + $0x1800] sm:$0xff]  ;;  %v8225_v12 = vcombine.high %v580_v6, %v588_v7  ;;  %6431 = vmatprep.subr.bf16.mxu1 %v8497_v5  ;;  %v8224_v19 = vcombine.low %v580_v6, %v588_v7 }
  0x85   :  { %v844_v9 = vld [vmem:[#allocation5 + $0x1840] sm:$0xff]  ;;  %6391 = vmatpush1.bf16.msra.mxu0 %v8240_v10  ;;  %6432 = vmatpush1.bf16.msra.mxu1 %v8496_v11 }
  0x86   :  { %v8481_v13 = vcombine.high %v836_v8, %v844_v9  ;;  %v820_v14 = vld [vmem:[#allocation5 + $0x1780] sm:$0xff]  ;;  %6392 = vmatprep.subr.bf16.mxu0 %v8225_v12  ;;  %v8480_v21 = vcombine.low %v836_v8, %v844_v9 }
  0x87   :  { %v828_v15 = vld [vmem:[#allocation5 + $0x17c0] sm:$0xff] }
  0x88   :  { %v1076_v17 = vld [vmem:[#allocation5 + $0x1f80] sm:$0xff]  ;;  %v8465_v22 = vcombine.high %v820_v14, %v828_v15  ;;  %6433 = vmatprep.subr.bf16.mxu1 %v8481_v13  ;;  %v8464_v29 = vcombine.low %v820_v14, %v828_v15 }
  0x89   :  { %v1084_v18 = vld [vmem:[#allocation5 + $0x1fc0] sm:$0xff]  ;;  %6393 = vmatpush1.bf16.msra.mxu0 %v8224_v19  ;;  %6434 = vmatpush1.bf16.msra.mxu1 %v8480_v21 }
  0x8a   :  { %v8721_v23 = vcombine.high %v1076_v17, %v1084_v18  ;;  %v804_v24 = vld [vmem:[#allocation5 + $0x1700] sm:$0xff]  ;;  %6394 = vmatprep.subr.bf16.mxu0 %v8465_v22  ;;  %v8720_v30 = vcombine.low %v1076_v17, %v1084_v18  ;;  %v181_v22 = vld [vmem:[#allocation5 + $0x388] sm:$0xff] }
  0x8b   :  { %v812_v25 = vld [vmem:[#allocation5 + $0x1740] sm:$0xff] }
  0x8c   :  { %v1060_v26 = vld [vmem:[#allocation5 + $0x1f00] sm:$0xff]  ;;  %v8449_v32 = vcombine.high %v804_v24, %v812_v25  ;;  %6435 = vmatprep.subr.bf16.mxu1 %v8721_v23  ;;  %v8448_v38 = vcombine.low %v804_v24, %v812_v25  ;;  %v189_v23 = vld [vmem:[#allocation5 + $0x3c8] sm:$0xff] }
  0x8d   :  { %v1068_v27 = vld [vmem:[#allocation5 + $0x1f40] sm:$0xff]  ;;  %6395 = vmatpush2.bf16.msra.mxu0 %v8464_v29  ;;  %6436 = vmatpush2.bf16.msra.mxu1 %v8720_v30  ;;  %v437_v24 = vld [vmem:[#allocation5 + $0xb88] sm:$0xff]  ;;  %v58_v30 = vld [vmem:[#allocation2 + $0x30] sm:$0xff] }
  0x8e   :  { %v8705_v33 = vcombine.high %v1060_v26, %v1068_v27  ;;  %v788_v34 = vld [vmem:[#allocation5 + $0x1680] sm:$0xff]  ;;  %6396 = vmatprep.subr.bf16.mxu0 %v8449_v32  ;;  %v8704_v39 = vcombine.low %v1060_v26, %v1068_v27  ;;  %v445_v25 = vld [vmem:[#allocation5 + $0xbc8] sm:$0xff]  ;;  %v7827_v32 = vcombine.high %v181_v22, %v189_v23 }
  0x8f   :  { %v796_v35 = vld [vmem:[#allocation5 + $0x16c0] sm:$0xff] }
  0x90   :  { %v1044_v36 = vld [vmem:[#allocation5 + $0x1e80] sm:$0xff]  ;;  %v8433_v40 = vcombine.high %v788_v34, %v796_v35  ;;  %6437 = vmatprep.subr.bf16.mxu1 %v8705_v33  ;;  %v8432_v46 = vcombine.low %v788_v34, %v796_v35  ;;  %v8083_v33 = vcombine.high %v437_v24, %v445_v25  ;;  %v165_v34 = vld [vmem:[#allocation5 + $0x308] sm:$0xff] }
  0x91   :  { %v1052_v37 = vld [vmem:[#allocation5 + $0x1ec0] sm:$0xff]  ;;  %6397 = vmatpush2.bf16.msra.mxu0 %v8448_v38  ;;  %6438 = vmatpush2.bf16.msra.mxu1 %v8704_v39  ;;  %v173_v35 = vld [vmem:[#allocation5 + $0x348] sm:$0xff]  ;;  %v8901_v39 = vpack.c.bf16 %v58_v30, %v58_v30 }
  0x92   :  { %v8689_v41 = vcombine.high %v1044_v36, %v1052_v37  ;;  %v772_v42 = vld [vmem:[#allocation5 + $0x1600] sm:$0xff]  ;;  %6398 = vmatprep.subr.bf16.mxu0 %v8433_v40  ;;  %v8688_v47 = vcombine.low %v1044_v36, %v1052_v37  ;;  %v421_v37 = vld [vmem:[#allocation5 + $0xb08] sm:$0xff]  ;;  %v7826_v40 = vcombine.low %v181_v22, %v189_v23 }
  0x93   :  { %v780_v43 = vld [vmem:[#allocation5 + $0x1640] sm:$0xff]  ;;  %v429_v38 = vld [vmem:[#allocation5 + $0xb48] sm:$0xff] }
  0x94   :  { %v1028_v44 = vld [vmem:[#allocation5 + $0x1e00] sm:$0xff]  ;;  %v8417_v48 = vcombine.high %v772_v42, %v780_v43  ;;  %6439 = vmatprep.subr.bf16.mxu1 %v8689_v41  ;;  %v8416_v54 = vcombine.low %v772_v42, %v780_v43  ;;  %v8082_v41 = vcombine.low %v437_v24, %v445_v25  ;;  %v7811_v42 = vcombine.high %v165_v34, %v173_v35  ;;  %v69_v24 = vld [vmem:[#allocation5 + $0x8] sm:$0xff] }
  0x95   :  { %v1036_v45 = vld [vmem:[#allocation5 + $0x1e40] sm:$0xff]  ;;  %6399 = vmatpush2.bf16.msra.mxu0 %v8432_v46  ;;  %6440 = vmatpush2.bf16.msra.mxu1 %v8688_v47  ;;  %v8067_v43 = vcombine.high %v421_v37, %v429_v38  ;;  %v405_v46 = vld [vmem:[#allocation5 + $0xa88] sm:$0xff] }
  0x96   :  { %v8673_v49 = vcombine.high %v1028_v44, %v1036_v45  ;;  %v756_v50 = vld [vmem:[#allocation5 + $0x1580] sm:$0xff]  ;;  %6400 = vmatprep.subr.bf16.mxu0 %v8417_v48  ;;  %v8672_v55 = vcombine.low %v1028_v44, %v1036_v45  ;;  %v149_v44 = vld [vmem:[#allocation5 + $0x288] sm:$0xff]  ;;  %v7810_v48 = vcombine.low %v165_v34, %v173_v35 }
  0x97   :  { %v764_v51 = vld [vmem:[#allocation5 + $0x15c0] sm:$0xff]  ;;  %v157_v45 = vld [vmem:[#allocation5 + $0x2c8] sm:$0xff] }
  0x98   :  { %v1012_v52 = vld [vmem:[#allocation5 + $0x1d80] sm:$0xff]  ;;  %v8401_v56 = vcombine.high %v756_v50, %v764_v51  ;;  %6441 = vmatprep.subr.bf16.mxu1 %v8673_v49  ;;  %v8400_v0 = vcombine.low %v756_v50, %v764_v51  ;;  %v413_v47 = vld [vmem:[#allocation5 + $0xac8] sm:$0xff]  ;;  %v8066_v49 = vcombine.low %v421_v37, %v429_v38  ;;  %v7795_v50 = vcombine.high %v149_v44, %v157_v45 }
  0x99   :  { %v1020_v53 = vld [vmem:[#allocation5 + $0x1dc0] sm:$0xff]  ;;  %6401 = vmatpush2.bf16.msra.mxu0 %v8416_v54  ;;  %6442 = vmatpush2.bf16.msra.mxu1 %v8672_v55  ;;  %v8051_v51 = vcombine.high %v405_v46, %v413_v47  ;;  %v389_v54 = vld [vmem:[#allocation5 + $0xa08] sm:$0xff] }
  0x9a   :  { %v8657_v57 = vcombine.high %v1012_v52, %v1020_v53  ;;  %v740_v60 = vld [vmem:[#allocation5 + $0x1500] sm:$0xff]  ;;  %6402 = vmatprep.subr.bf16.mxu0 %v8401_v56  ;;  %v8656_v1 = vcombine.low %v1012_v52, %v1020_v53  ;;  %v133_v52 = vld [vmem:[#allocation5 + $0x208] sm:$0xff]  ;;  %v7794_v56 = vcombine.low %v149_v44, %v157_v45 }
  0x9b   :  { %v748_v61 = vld [vmem:[#allocation5 + $0x1540] sm:$0xff]  ;;  %v141_v53 = vld [vmem:[#allocation5 + $0x248] sm:$0xff] }
  0x9c   :  { %v996_v62 = vld [vmem:[#allocation5 + $0x1d00] sm:$0xff]  ;;  %v8385_v2 = vcombine.high %v740_v60, %v748_v61  ;;  %6443 = vmatprep.subr.bf16.mxu1 %v8657_v57  ;;  %v8384_v8 = vcombine.low %v740_v60, %v748_v61  ;;  %v397_v55 = vld [vmem:[#allocation5 + $0xa48] sm:$0xff]  ;;  %v8050_v57 = vcombine.low %v405_v46, %v413_v47  ;;  %v7779_v60 = vcombine.high %v133_v52, %v141_v53 }
  0x9d   :  { %v1004_v63 = vld [vmem:[#allocation5 + $0x1d40] sm:$0xff]  ;;  %6403 = vmatpush2.bf16.msra.mxu0 %v8400_v0  ;;  %6444 = vmatpush2.bf16.msra.mxu1 %v8656_v1  ;;  %v8035_v61 = vcombine.high %v389_v54, %v397_v55  ;;  %v373_v0 = vld [vmem:[#allocation5 + $0x988] sm:$0xff] }
  0x9e   :  { %v8641_v3 = vcombine.high %v996_v62, %v1004_v63  ;;  %v724_v4 = vld [vmem:[#allocation5 + $0x1480] sm:$0xff]  ;;  %6404 = vmatprep.subr.bf16.mxu0 %v8385_v2  ;;  %v8640_v9 = vcombine.low %v996_v62, %v1004_v63  ;;  %v117_v62 = vld [vmem:[#allocation5 + $0x188] sm:$0xff]  ;;  %v7778_v2 = vcombine.low %v133_v52, %v141_v53 }
  0x9f   :  { %v732_v5 = vld [vmem:[#allocation5 + $0x14c0] sm:$0xff]  ;;  %v125_v63 = vld [vmem:[#allocation5 + $0x1c8] sm:$0xff] }
  0xa0   :  { %v980_v6 = vld [vmem:[#allocation5 + $0x1c80] sm:$0xff]  ;;  %v8369_v10 = vcombine.high %v724_v4, %v732_v5  ;;  %6445 = vmatprep.subr.bf16.mxu1 %v8641_v3  ;;  %v8368_v17 = vcombine.low %v724_v4, %v732_v5  ;;  %v381_v1 = vld [vmem:[#allocation5 + $0x9c8] sm:$0xff]  ;;  %v8034_v3 = vcombine.low %v389_v54, %v397_v55  ;;  %v7763_v4 = vcombine.high %v117_v62, %v125_v63 }
  0xa1   :  { %v988_v7 = vld [vmem:[#allocation5 + $0x1cc0] sm:$0xff]  ;;  %6405 = vmatpush2.bf16.msra.mxu0 %v8384_v8  ;;  %6446 = vmatpush2.bf16.msra.mxu1 %v8640_v9  ;;  %v8019_v5 = vcombine.high %v373_v0, %v381_v1  ;;  %v357_v8 = vld [vmem:[#allocation5 + $0x908] sm:$0xff] }
  0xa2   :  { %v8625_v11 = vcombine.high %v980_v6, %v988_v7  ;;  %v708_v12 = vld [vmem:[#allocation5 + $0x1400] sm:$0xff]  ;;  %6406 = vmatprep.subr.bf16.mxu0 %v8369_v10  ;;  %v8624_v18 = vcombine.low %v980_v6, %v988_v7  ;;  %v101_v6 = vld [vmem:[#allocation5 + $0x108] sm:$0xff]  ;;  %v7762_v10 = vcombine.low %v117_v62, %v125_v63 }
  0xa3   :  { %v716_v13 = vld [vmem:[#allocation5 + $0x1440] sm:$0xff]  ;;  %v109_v7 = vld [vmem:[#allocation5 + $0x148] sm:$0xff] }
  0xa4   :  { %v964_v14 = vld [vmem:[#allocation5 + $0x1c00] sm:$0xff]  ;;  %v8353_v19 = vcombine.high %v708_v12, %v716_v13  ;;  %6447 = vmatprep.subr.bf16.mxu1 %v8625_v11  ;;  %v8352_v26 = vcombine.low %v708_v12, %v716_v13  ;;  %v365_v9 = vld [vmem:[#allocation5 + $0x948] sm:$0xff]  ;;  %v8018_v11 = vcombine.low %v373_v0, %v381_v1  ;;  %v7747_v12 = vcombine.high %v101_v6, %v109_v7 }
  0xa5   :  { %v972_v15 = vld [vmem:[#allocation5 + $0x1c40] sm:$0xff]  ;;  %6407 = vmatpush2.bf16.msra.mxu0 %v8368_v17  ;;  %6448 = vmatpush2.bf16.msra.mxu1 %v8624_v18  ;;  %v8003_v13 = vcombine.high %v357_v8, %v365_v9  ;;  %v341_v17 = vld [vmem:[#allocation5 + $0x888] sm:$0xff] }
  0xa6   :  { %v8609_v21 = vcombine.high %v964_v14, %v972_v15  ;;  %v56_v27 = vld [vmem:[#allocation2 + $0x20] sm:$0xff]  ;;  %6408 = vmatprep.subr.bf16.mxu0 %v8353_v19  ;;  %v8608_v29 = vcombine.low %v964_v14, %v972_v15  ;;  %v85_v14 = vld [vmem:[#allocation5 + $0x88] sm:$0xff]  ;;  %v7746_v19 = vcombine.low %v101_v6, %v109_v7 }
  0xa7   :  { %v8899_v36 = vpack.c.bf16 %v56_v27, %v56_v27  ;;  %v93_v15 = vld [vmem:[#allocation5 + $0xc8] sm:$0xff] }
  0xa8   :  { %6449 = vmatprep.subr.bf16.mxu1 %v8609_v21  ;;  %v349_v18 = vld [vmem:[#allocation5 + $0x8c8] sm:$0xff]  ;;  %v8002_v21 = vcombine.low %v357_v8, %v365_v9  ;;  %v7731_v22 = vcombine.high %v85_v14, %v93_v15 }
  0xa9   :  { %6409 = vmatpush2.bf16.msra.mxu0 %v8352_v26  ;;  %6450 = vmatpush2.bf16.msra.mxu1 %v8608_v29  ;;  %v7987_v23 = vcombine.high %v341_v17, %v349_v18  ;;  %v77_v25 = vld [vmem:[#allocation5 + $0x48] sm:$0xff]  ;;  %v7730_v29 = vcombine.low %v85_v14, %v93_v15  ;;  %v7986_v30 = vcombine.low %v341_v17, %v349_v18 }
  0xaa   :  { %6460 = vmatprep.subr.bf16.mxu0 %v7827_v32  ;;  %6501 = vmatprep.subr.bf16.mxu1 %v8083_v33  ;;  %v325_v26 = vld [vmem:[#allocation5 + $0x808] sm:$0xff]  ;;  %v7715_v32 = vcombine.high %v69_v24, %v77_v25 }
  0xab   :  { %v333_v27 = vld [vmem:[#allocation5 + $0x848] sm:$0xff] }
  0xac   :  { %6411 = vmatmul.mubr.bf16.vlgmr.msra.gmra.mxu0 %v8899_v36  ;;  %6452 = vmatmul.mubr.bf16.vlgmr.msra.gmra.mxu1 %v8901_v39  ;;  %v7971_v33 = vcombine.high %v325_v26, %v333_v27  ;;  %v309_v34 = vld [vmem:[#allocation5 + $0x788] sm:$0xff] }
  0xad   :  { %6461 = vmatpush1.bf16.msra.mxu0 %v7826_v40  ;;  %6502 = vmatpush1.bf16.msra.mxu1 %v8082_v41  ;;  %v317_v35 = vld [vmem:[#allocation5 + $0x7c8] sm:$0xff]  ;;  %v7714_v40 = vcombine.low %v69_v24, %v77_v25  ;;  %v7970_v41 = vcombine.low %v325_v26, %v333_v27 }
  0xae   :  { %6462 = vmatprep.subr.bf16.mxu0 %v7811_v42  ;;  %6503 = vmatprep.subr.bf16.mxu1 %v8067_v43  ;;  %v565_v37 = vld [vmem:[#allocation5 + $0xf88] sm:$0xff]  ;;  %v7955_v42 = vcombine.high %v309_v34, %v317_v35 }
  0xaf   :  { %6492 = vmatprep.mubr.bf16.mxu0 %v8881_v58  ;;  %6533 = vmatprep.mubr.bf16.mxu1 %v8883_v59  ;;  %v573_v38 = vld [vmem:[#allocation5 + $0xfc8] sm:$0xff] }
  0xb0   :  { %v8211_v43 = vcombine.high %v565_v37, %v573_v38  ;;  %v293_v44 = vld [vmem:[#allocation5 + $0x708] sm:$0xff] }
  0xb1   :  { %6463 = vmatpush1.bf16.msra.mxu0 %v7810_v48  ;;  %6504 = vmatpush1.bf16.msra.mxu1 %v8066_v49  ;;  %v301_v45 = vld [vmem:[#allocation5 + $0x748] sm:$0xff]  ;;  %v7954_v48 = vcombine.low %v309_v34, %v317_v35  ;;  %v8210_v49 = vcombine.low %v565_v37, %v573_v38 }
  0xb2   :  { %6464 = vmatprep.subr.bf16.mxu0 %v7795_v50  ;;  %6505 = vmatprep.subr.bf16.mxu1 %v8051_v51  ;;  %v549_v46 = vld [vmem:[#allocation5 + $0xf08] sm:$0xff]  ;;  %v7939_v50 = vcombine.high %v293_v44, %v301_v45 }
  0xb3   :  { %v557_v47 = vld [vmem:[#allocation5 + $0xf48] sm:$0xff] }
  0xb4   :  { %v8195_v51 = vcombine.high %v549_v46, %v557_v47  ;;  %v277_v52 = vld [vmem:[#allocation5 + $0x688] sm:$0xff] }
  0xb5   :  { %6465 = vmatpush1.bf16.msra.mxu0 %v7794_v56  ;;  %6506 = vmatpush1.bf16.msra.mxu1 %v8050_v57  ;;  %v285_v53 = vld [vmem:[#allocation5 + $0x6c8] sm:$0xff]  ;;  %v7938_v56 = vcombine.low %v293_v44, %v301_v45  ;;  %v8194_v57 = vcombine.low %v549_v46, %v557_v47 }
  0xb6   :  { %6466 = vmatprep.subr.bf16.mxu0 %v7779_v60  ;;  %6507 = vmatprep.subr.bf16.mxu1 %v8035_v61  ;;  %v533_v54 = vld [vmem:[#allocation5 + $0xe88] sm:$0xff]  ;;  %v7923_v60 = vcombine.high %v277_v52, %v285_v53 }
  0xb7   :  { %v541_v55 = vld [vmem:[#allocation5 + $0xec8] sm:$0xff] }
  0xb8   :  { %v8179_v61 = vcombine.high %v533_v54, %v541_v55  ;;  %v261_v62 = vld [vmem:[#allocation5 + $0x608] sm:$0xff] }
  0xb9   :  { %6467 = vmatpush1.bf16.msra.mxu0 %v7778_v2  ;;  %6508 = vmatpush1.bf16.msra.mxu1 %v8034_v3  ;;  %v269_v63 = vld [vmem:[#allocation5 + $0x648] sm:$0xff]  ;;  %v7922_v2 = vcombine.low %v277_v52, %v285_v53  ;;  %v8178_v3 = vcombine.low %v533_v54, %v541_v55 }
  0xba   :  { %6468 = vmatprep.subr.bf16.mxu0 %v7763_v4  ;;  %6509 = vmatprep.subr.bf16.mxu1 %v8019_v5  ;;  %v517_v0 = vld [vmem:[#allocation5 + $0xe08] sm:$0xff]  ;;  %v7907_v4 = vcombine.high %v261_v62, %v269_v63 }
  0xbb   :  { %v525_v1 = vld [vmem:[#allocation5 + $0xe48] sm:$0xff] }
  0xbc   :  { %v8163_v5 = vcombine.high %v517_v0, %v525_v1  ;;  %v245_v6 = vld [vmem:[#allocation5 + $0x588] sm:$0xff] }
  0xbd   :  { %6469 = vmatpush1.bf16.msra.mxu0 %v7762_v10  ;;  %6510 = vmatpush1.bf16.msra.mxu1 %v8018_v11  ;;  %v253_v7 = vld [vmem:[#allocation5 + $0x5c8] sm:$0xff]  ;;  %v7906_v10 = vcombine.low %v261_v62, %v269_v63  ;;  %v8162_v11 = vcombine.low %v517_v0, %v525_v1 }
  0xbe   :  { %6470 = vmatprep.subr.bf16.mxu0 %v7747_v12  ;;  %6511 = vmatprep.subr.bf16.mxu1 %v8003_v13  ;;  %v501_v8 = vld [vmem:[#allocation5 + $0xd88] sm:$0xff]  ;;  %v7891_v12 = vcombine.high %v245_v6, %v253_v7 }
  0xbf   :  { %v509_v9 = vld [vmem:[#allocation5 + $0xdc8] sm:$0xff] }
  0xc0   :  { %v8147_v13 = vcombine.high %v501_v8, %v509_v9  ;;  %v229_v14 = vld [vmem:[#allocation5 + $0x508] sm:$0xff] }
  0xc1   :  { %6471 = vmatpush1.bf16.msra.mxu0 %v7746_v19  ;;  %6512 = vmatpush1.bf16.msra.mxu1 %v8002_v21  ;;  %v237_v15 = vld [vmem:[#allocation5 + $0x548] sm:$0xff]  ;;  %v7890_v19 = vcombine.low %v245_v6, %v253_v7  ;;  %v8146_v21 = vcombine.low %v501_v8, %v509_v9 }
  0xc2   :  { %6472 = vmatprep.subr.bf16.mxu0 %v7731_v22  ;;  %6513 = vmatprep.subr.bf16.mxu1 %v7987_v23  ;;  %v485_v17 = vld [vmem:[#allocation5 + $0xd08] sm:$0xff]  ;;  %v7875_v22 = vcombine.high %v229_v14, %v237_v15 }
  0xc3   :  { %v493_v18 = vld [vmem:[#allocation5 + $0xd48] sm:$0xff] }
  0xc4   :  { %v8131_v23 = vcombine.high %v485_v17, %v493_v18  ;;  %v213_v24 = vld [vmem:[#allocation5 + $0x488] sm:$0xff] }
  0xc5   :  { %6473 = vmatpush1.bf16.msra.mxu0 %v7730_v29  ;;  %6514 = vmatpush1.bf16.msra.mxu1 %v7986_v30  ;;  %v221_v25 = vld [vmem:[#allocation5 + $0x4c8] sm:$0xff]  ;;  %v7874_v29 = vcombine.low %v229_v14, %v237_v15  ;;  %v8130_v30 = vcombine.low %v485_v17, %v493_v18 }
  0xc6   :  { %6474 = vmatprep.subr.bf16.mxu0 %v7715_v32  ;;  %6515 = vmatprep.subr.bf16.mxu1 %v7971_v33  ;;  %v469_v26 = vld [vmem:[#allocation5 + $0xc88] sm:$0xff]  ;;  %v7859_v32 = vcombine.high %v213_v24, %v221_v25 }
  0xc7   :  { %v477_v27 = vld [vmem:[#allocation5 + $0xcc8] sm:$0xff] }
  0xc8   :  { %v8115_v33 = vcombine.high %v469_v26, %v477_v27  ;;  %v197_v34 = vld [vmem:[#allocation5 + $0x408] sm:$0xff] }
  0xc9   :  { %6475 = vmatpush1.bf16.msra.mxu0 %v7714_v40  ;;  %6516 = vmatpush1.bf16.msra.mxu1 %v7970_v41  ;;  %v205_v35 = vld [vmem:[#allocation5 + $0x448] sm:$0xff]  ;;  %v7858_v40 = vcombine.low %v213_v24, %v221_v25  ;;  %v8114_v41 = vcombine.low %v469_v26, %v477_v27 }
  0xca   :  { %6476 = vmatprep.subr.bf16.mxu0 %v7955_v42  ;;  %6517 = vmatprep.subr.bf16.mxu1 %v8211_v43  ;;  %v453_v37 = vld [vmem:[#allocation5 + $0xc08] sm:$0xff]  ;;  %v7843_v42 = vcombine.high %v197_v34, %v205_v35 }
  0xcb   :  { %v461_v38 = vld [vmem:[#allocation5 + $0xc48] sm:$0xff] }
  0xcc   :  { %v8099_v43 = vcombine.high %v453_v37, %v461_v38  ;;  %v693_v44 = vld [vmem:[#allocation5 + $0x1388] sm:$0xff] }
  0xcd   :  { %6477 = vmatpush2.bf16.msra.mxu0 %v7954_v48  ;;  %6518 = vmatpush2.bf16.msra.mxu1 %v8210_v49  ;;  %v701_v45 = vld [vmem:[#allocation5 + $0x13c8] sm:$0xff]  ;;  %v7842_v48 = vcombine.low %v197_v34, %v205_v35  ;;  %v8098_v49 = vcombine.low %v453_v37, %v461_v38 }
  0xce   :  { %6478 = vmatprep.subr.bf16.mxu0 %v7939_v50  ;;  %6519 = vmatprep.subr.bf16.mxu1 %v8195_v51  ;;  %v949_v46 = vld [vmem:[#allocation5 + $0x1b88] sm:$0xff]  ;;  %v8339_v50 = vcombine.high %v693_v44, %v701_v45 }
  0xcf   :  { %v957_v47 = vld [vmem:[#allocation5 + $0x1bc8] sm:$0xff] }
  0xd0   :  { %v8595_v51 = vcombine.high %v949_v46, %v957_v47  ;;  %v677_v52 = vld [vmem:[#allocation5 + $0x1308] sm:$0xff] }
  0xd1   :  { %6479 = vmatpush2.bf16.msra.mxu0 %v7938_v56  ;;  %6520 = vmatpush2.bf16.msra.mxu1 %v8194_v57  ;;  %v685_v53 = vld [vmem:[#allocation5 + $0x1348] sm:$0xff]  ;;  %v8338_v56 = vcombine.low %v693_v44, %v701_v45  ;;  %v8594_v57 = vcombine.low %v949_v46, %v957_v47 }
  0xd2   :  { %6480 = vmatprep.subr.bf16.mxu0 %v7923_v60  ;;  %6521 = vmatprep.subr.bf16.mxu1 %v8179_v61  ;;  %v933_v54 = vld [vmem:[#allocation5 + $0x1b08] sm:$0xff]  ;;  %v8323_v60 = vcombine.high %v677_v52, %v685_v53 }
  0xd3   :  { %v941_v55 = vld [vmem:[#allocation5 + $0x1b48] sm:$0xff] }
  0xd4   :  { %v8579_v61 = vcombine.high %v933_v54, %v941_v55  ;;  %v661_v62 = vld [vmem:[#allocation5 + $0x1288] sm:$0xff] }
  0xd5   :  { %6481 = vmatpush2.bf16.msra.mxu0 %v7922_v2  ;;  %6522 = vmatpush2.bf16.msra.mxu1 %v8178_v3  ;;  %v669_v63 = vld [vmem:[#allocation5 + $0x12c8] sm:$0xff]  ;;  %v8322_v2 = vcombine.low %v677_v52, %v685_v53  ;;  %v8578_v3 = vcombine.low %v933_v54, %v941_v55 }
  0xd6   :  { %6482 = vmatprep.subr.bf16.mxu0 %v7907_v4  ;;  %6523 = vmatprep.subr.bf16.mxu1 %v8163_v5  ;;  %v917_v0 = vld [vmem:[#allocation5 + $0x1a88] sm:$0xff]  ;;  %v8307_v4 = vcombine.high %v661_v62, %v669_v63 }
  0xd7   :  { %v925_v1 = vld [vmem:[#allocation5 + $0x1ac8] sm:$0xff] }
  0xd8   :  { %v8563_v5 = vcombine.high %v917_v0, %v925_v1  ;;  %v645_v6 = vld [vmem:[#allocation5 + $0x1208] sm:$0xff] }
  0xd9   :  { %6483 = vmatpush2.bf16.msra.mxu0 %v7906_v10  ;;  %6524 = vmatpush2.bf16.msra.mxu1 %v8162_v11  ;;  %v653_v7 = vld [vmem:[#allocation5 + $0x1248] sm:$0xff]  ;;  %v8306_v10 = vcombine.low %v661_v62, %v669_v63  ;;  %v8562_v11 = vcombine.low %v917_v0, %v925_v1 }
  0xda   :  { %6484 = vmatprep.subr.bf16.mxu0 %v7891_v12  ;;  %6525 = vmatprep.subr.bf16.mxu1 %v8147_v13  ;;  %v901_v8 = vld [vmem:[#allocation5 + $0x1a08] sm:$0xff]  ;;  %v8291_v12 = vcombine.high %v645_v6, %v653_v7 }
  0xdb   :  { %v909_v9 = vld [vmem:[#allocation5 + $0x1a48] sm:$0xff] }
  0xdc   :  { %v8547_v13 = vcombine.high %v901_v8, %v909_v9  ;;  %v629_v14 = vld [vmem:[#allocation5 + $0x1188] sm:$0xff] }
  0xdd   :  { %6485 = vmatpush2.bf16.msra.mxu0 %v7890_v19  ;;  %6526 = vmatpush2.bf16.msra.mxu1 %v8146_v21  ;;  %v637_v15 = vld [vmem:[#allocation5 + $0x11c8] sm:$0xff]  ;;  %v8290_v19 = vcombine.low %v645_v6, %v653_v7  ;;  %v8546_v21 = vcombine.low %v901_v8, %v909_v9 }
  0xde   :  { %6486 = vmatprep.subr.bf16.mxu0 %v7875_v22  ;;  %6527 = vmatprep.subr.bf16.mxu1 %v8131_v23  ;;  %v885_v17 = vld [vmem:[#allocation5 + $0x1988] sm:$0xff]  ;;  %v8275_v22 = vcombine.high %v629_v14, %v637_v15 }
  0xdf   :  { %v893_v18 = vld [vmem:[#allocation5 + $0x19c8] sm:$0xff] }
  0xe0   :  { %v8531_v23 = vcombine.high %v885_v17, %v893_v18  ;;  %v613_v24 = vld [vmem:[#allocation5 + $0x1108] sm:$0xff] }
  0xe1   :  { %6487 = vmatpush2.bf16.msra.mxu0 %v7874_v29  ;;  %6528 = vmatpush2.bf16.msra.mxu1 %v8130_v30  ;;  %v621_v25 = vld [vmem:[#allocation5 + $0x1148] sm:$0xff]  ;;  %v8274_v29 = vcombine.low %v629_v14, %v637_v15  ;;  %v8530_v30 = vcombine.low %v885_v17, %v893_v18 }
  0xe2   :  { %6488 = vmatprep.subr.bf16.mxu0 %v7859_v32  ;;  %6529 = vmatprep.subr.bf16.mxu1 %v8115_v33  ;;  %v869_v26 = vld [vmem:[#allocation5 + $0x1908] sm:$0xff]  ;;  %v8259_v32 = vcombine.high %v613_v24, %v621_v25 }
  0xe3   :  { %v877_v27 = vld [vmem:[#allocation5 + $0x1948] sm:$0xff] }
  0xe4   :  { %v8515_v33 = vcombine.high %v869_v26, %v877_v27  ;;  %v597_v34 = vld [vmem:[#allocation5 + $0x1088] sm:$0xff] }
  0xe5   :  { %6489 = vmatpush2.bf16.msra.mxu0 %v7858_v40  ;;  %6530 = vmatpush2.bf16.msra.mxu1 %v8114_v41  ;;  %v605_v35 = vld [vmem:[#allocation5 + $0x10c8] sm:$0xff]  ;;  %v8258_v40 = vcombine.low %v613_v24, %v621_v25  ;;  %v8514_v41 = vcombine.low %v869_v26, %v877_v27 }
  0xe6   :  { %6490 = vmatprep.subr.bf16.mxu0 %v7843_v42  ;;  %6531 = vmatprep.subr.bf16.mxu1 %v8099_v43  ;;  %v853_v37 = vld [vmem:[#allocation5 + $0x1888] sm:$0xff]  ;;  %v8243_v42 = vcombine.high %v597_v34, %v605_v35 }
  0xe7   :  { %v861_v38 = vld [vmem:[#allocation5 + $0x18c8] sm:$0xff] }
  0xe8   :  { %v8499_v43 = vcombine.high %v853_v37, %v861_v38  ;;  %v581_v44 = vld [vmem:[#allocation5 + $0x1008] sm:$0xff] }
  0xe9   :  { %6491 = vmatpush2.bf16.msra.mxu0 %v7842_v48  ;;  %6532 = vmatpush2.bf16.msra.mxu1 %v8098_v49  ;;  %v589_v45 = vld [vmem:[#allocation5 + $0x1048] sm:$0xff]  ;;  %v8242_v48 = vcombine.low %v597_v34, %v605_v35  ;;  %v8498_v49 = vcombine.low %v853_v37, %v861_v38 }
  0xea   :  { %6542 = vmatprep.subr.bf16.mxu0 %v8339_v50  ;;  %6583 = vmatprep.subr.bf16.mxu1 %v8595_v51  ;;  %v837_v46 = vld [vmem:[#allocation5 + $0x1808] sm:$0xff]  ;;  %v8227_v50 = vcombine.high %v581_v44, %v589_v45 }
  0xeb   :  { %v845_v47 = vld [vmem:[#allocation5 + $0x1848] sm:$0xff] }
  0xec   :  { %6493 = vmatmul.mubr.bf16.vlgmr.msra.gmra.mxu0 %v8887_v16  ;;  %6534 = vmatmul.mubr.bf16.vlgmr.msra.gmra.mxu1 %v8889_v20  ;;  %v8483_v51 = vcombine.high %v837_v46, %v845_v47  ;;  %v821_v52 = vld [vmem:[#allocation5 + $0x1788] sm:$0xff] }
  0xed   :  { %6543 = vmatpush1.bf16.msra.mxu0 %v8338_v56  ;;  %6584 = vmatpush1.bf16.msra.mxu1 %v8594_v57  ;;  %v829_v53 = vld [vmem:[#allocation5 + $0x17c8] sm:$0xff]  ;;  %v8226_v56 = vcombine.low %v581_v44, %v589_v45  ;;  %v8482_v57 = vcombine.low %v837_v46, %v845_v47 }
  0xee   :  { %6544 = vmatprep.subr.bf16.mxu0 %v8323_v60  ;;  %6585 = vmatprep.subr.bf16.mxu1 %v8579_v61  ;;  %v1077_v54 = vld [vmem:[#allocation5 + $0x1f88] sm:$0xff]  ;;  %v8467_v60 = vcombine.high %v821_v52, %v829_v53 }
  0xef   :  { %6574 = vmatprep.mubr.bf16.mxu0 %v8891_v28  ;;  %6615 = vmatprep.mubr.bf16.mxu1 %v8894_v31  ;;  %v1085_v55 = vld [vmem:[#allocation5 + $0x1fc8] sm:$0xff] }
  0xf0   :  { %v8723_v61 = vcombine.high %v1077_v54, %v1085_v55  ;;  %v805_v62 = vld [vmem:[#allocation5 + $0x1708] sm:$0xff] }
  0xf1   :  { %6545 = vmatpush1.bf16.msra.mxu0 %v8322_v2  ;;  %6586 = vmatpush1.bf16.msra.mxu1 %v8578_v3  ;;  %v813_v63 = vld [vmem:[#allocation5 + $0x1748] sm:$0xff]  ;;  %v8466_v2 = vcombine.low %v821_v52, %v829_v53  ;;  %v8722_v3 = vcombine.low %v1077_v54, %v1085_v55 }
  0xf2   :  { %6546 = vmatprep.subr.bf16.mxu0 %v8307_v4  ;;  %6587 = vmatprep.subr.bf16.mxu1 %v8563_v5  ;;  %v1061_v0 = vld [vmem:[#allocation5 + $0x1f08] sm:$0xff]  ;;  %v8451_v4 = vcombine.high %v805_v62, %v813_v63 }
  0xf3   :  { %v1069_v1 = vld [vmem:[#allocation5 + $0x1f48] sm:$0xff] }
  0xf4   :  { %v8707_v5 = vcombine.high %v1061_v0, %v1069_v1  ;;  %v789_v6 = vld [vmem:[#allocation5 + $0x1688] sm:$0xff] }
  0xf5   :  { %6547 = vmatpush1.bf16.msra.mxu0 %v8306_v10  ;;  %6588 = vmatpush1.bf16.msra.mxu1 %v8562_v11  ;;  %v797_v7 = vld [vmem:[#allocation5 + $0x16c8] sm:$0xff]  ;;  %v8450_v10 = vcombine.low %v805_v62, %v813_v63  ;;  %v8706_v11 = vcombine.low %v1061_v0, %v1069_v1  ;;  %v182_v62 = vld [vmem:[#allocation5 + $0x390] sm:$0xff] }
  0xf6   :  { %6548 = vmatprep.subr.bf16.mxu0 %v8291_v12  ;;  %6589 = vmatprep.subr.bf16.mxu1 %v8547_v13  ;;  %v1045_v8 = vld [vmem:[#allocation5 + $0x1e88] sm:$0xff]  ;;  %v8435_v12 = vcombine.high %v789_v6, %v797_v7  ;;  %v190_v63 = vld [vmem:[#allocation5 + $0x3d0] sm:$0xff] }
  0xf7   :  { %v1053_v9 = vld [vmem:[#allocation5 + $0x1ec8] sm:$0xff]  ;;  %v438_v0 = vld [vmem:[#allocation5 + $0xb90] sm:$0xff] }
  0xf8   :  { %v8691_v13 = vcombine.high %v1045_v8, %v1053_v9  ;;  %v773_v14 = vld [vmem:[#allocation5 + $0x1608] sm:$0xff]  ;;  %v446_v1 = vld [vmem:[#allocation5 + $0xbd0] sm:$0xff] }
  0xf9   :  { %6549 = vmatpush1.bf16.msra.mxu0 %v8290_v19  ;;  %6590 = vmatpush1.bf16.msra.mxu1 %v8546_v21  ;;  %v781_v15 = vld [vmem:[#allocation5 + $0x1648] sm:$0xff]  ;;  %v8434_v19 = vcombine.low %v789_v6, %v797_v7  ;;  %v8690_v21 = vcombine.low %v1045_v8, %v1053_v9  ;;  %v166_v6 = vld [vmem:[#allocation5 + $0x310] sm:$0xff] }
  0xfa   :  { %6550 = vmatprep.subr.bf16.mxu0 %v8275_v22  ;;  %6591 = vmatprep.subr.bf16.mxu1 %v8531_v23  ;;  %v1029_v17 = vld [vmem:[#allocation5 + $0x1e08] sm:$0xff]  ;;  %v8419_v22 = vcombine.high %v773_v14, %v781_v15  ;;  %v174_v7 = vld [vmem:[#allocation5 + $0x350] sm:$0xff] }
  0xfb   :  { %v1037_v18 = vld [vmem:[#allocation5 + $0x1e48] sm:$0xff]  ;;  %v422_v8 = vld [vmem:[#allocation5 + $0xb10] sm:$0xff] }
  0xfc   :  { %v8675_v23 = vcombine.high %v1029_v17, %v1037_v18  ;;  %v757_v24 = vld [vmem:[#allocation5 + $0x1588] sm:$0xff]  ;;  %v430_v9 = vld [vmem:[#allocation5 + $0xb50] sm:$0xff] }
  0xfd   :  { %6551 = vmatpush1.bf16.msra.mxu0 %v8274_v29  ;;  %6592 = vmatpush1.bf16.msra.mxu1 %v8530_v30  ;;  %v765_v25 = vld [vmem:[#allocation5 + $0x15c8] sm:$0xff]  ;;  %v8418_v29 = vcombine.low %v773_v14, %v781_v15  ;;  %v8674_v30 = vcombine.low %v1029_v17, %v1037_v18  ;;  %v150_v14 = vld [vmem:[#allocation5 + $0x290] sm:$0xff] }
  0xfe   :  { %6552 = vmatprep.subr.bf16.mxu0 %v8259_v32  ;;  %6593 = vmatprep.subr.bf16.mxu1 %v8515_v33  ;;  %v1013_v26 = vld [vmem:[#allocation5 + $0x1d88] sm:$0xff]  ;;  %v8403_v32 = vcombine.high %v757_v24, %v765_v25  ;;  %v158_v15 = vld [vmem:[#allocation5 + $0x2d0] sm:$0xff] }
  0xff   :  { %v1021_v27 = vld [vmem:[#allocation5 + $0x1dc8] sm:$0xff]  ;;  %v406_v18 = vld [vmem:[#allocation5 + $0xa90] sm:$0xff] }
 0x100   :  { %v8659_v33 = vcombine.high %v1013_v26, %v1021_v27  ;;  %v741_v34 = vld [vmem:[#allocation5 + $0x1508] sm:$0xff] }
 0x101   :  { %6553 = vmatpush1.bf16.msra.mxu0 %v8258_v40  ;;  %6594 = vmatpush1.bf16.msra.mxu1 %v8514_v41  ;;  %v749_v35 = vld [vmem:[#allocation5 + $0x1548] sm:$0xff]  ;;  %v8402_v40 = vcombine.low %v757_v24, %v765_v25  ;;  %v8658_v41 = vcombine.low %v1013_v26, %v1021_v27  ;;  %v8068_v24 = vcombine.low %v422_v8, %v430_v9 }
 0x102   :  { %6554 = vmatprep.subr.bf16.mxu0 %v8243_v42  ;;  %6595 = vmatprep.subr.bf16.mxu1 %v8499_v43  ;;  %v997_v37 = vld [vmem:[#allocation5 + $0x1d08] sm:$0xff]  ;;  %v8387_v42 = vcombine.high %v741_v34, %v749_v35  ;;  %v7797_v25 = vcombine.high %v150_v14, %v158_v15 }
 0x103   :  { %v1005_v38 = vld [vmem:[#allocation5 + $0x1d48] sm:$0xff] }
 0x104   :  { %v8643_v43 = vcombine.high %v997_v37, %v1005_v38  ;;  %v725_v44 = vld [vmem:[#allocation5 + $0x1488] sm:$0xff] }
 0x105   :  { %6555 = vmatpush1.bf16.msra.mxu0 %v8242_v48  ;;  %6596 = vmatpush1.bf16.msra.mxu1 %v8498_v49  ;;  %v733_v45 = vld [vmem:[#allocation5 + $0x14c8] sm:$0xff]  ;;  %v8386_v48 = vcombine.low %v741_v34, %v749_v35  ;;  %v8642_v49 = vcombine.low %v997_v37, %v1005_v38  ;;  %v398_v34 = vld [vmem:[#allocation5 + $0xa50] sm:$0xff]  ;;  %v7796_v37 = vcombine.low %v150_v14, %v158_v15 }
 0x106   :  { %6556 = vmatprep.subr.bf16.mxu0 %v8227_v50  ;;  %6597 = vmatprep.subr.bf16.mxu1 %v8483_v51  ;;  %v981_v46 = vld [vmem:[#allocation5 + $0x1c88] sm:$0xff]  ;;  %v8371_v50 = vcombine.high %v725_v44, %v733_v45  ;;  %v310_v14 = vld [vmem:[#allocation5 + $0x790] sm:$0xff] }
 0x107   :  { %v989_v47 = vld [vmem:[#allocation5 + $0x1cc8] sm:$0xff]  ;;  %v318_v15 = vld [vmem:[#allocation5 + $0x7d0] sm:$0xff] }
 0x108   :  { %v8627_v51 = vcombine.high %v981_v46, %v989_v47  ;;  %v709_v52 = vld [vmem:[#allocation5 + $0x1408] sm:$0xff] }
 0x109   :  { %6557 = vmatpush1.bf16.msra.mxu0 %v8226_v56  ;;  %6598 = vmatpush1.bf16.msra.mxu1 %v8482_v57  ;;  %v717_v53 = vld [vmem:[#allocation5 + $0x1448] sm:$0xff]  ;;  %v8370_v56 = vcombine.low %v725_v44, %v733_v45  ;;  %v8626_v57 = vcombine.low %v981_v46, %v989_v47  ;;  %v118_v44 = vld [vmem:[#allocation5 + $0x190] sm:$0xff] }
 0x10a   :  { %6558 = vmatprep.subr.bf16.mxu0 %v8467_v60  ;;  %6599 = vmatprep.subr.bf16.mxu1 %v8723_v61  ;;  %v965_v54 = vld [vmem:[#allocation5 + $0x1c08] sm:$0xff]  ;;  %v8355_v60 = vcombine.high %v709_v52, %v717_v53  ;;  %v126_v45 = vld [vmem:[#allocation5 + $0x1d0] sm:$0xff] }
 0x10b   :  { %v973_v55 = vld [vmem:[#allocation5 + $0x1c48] sm:$0xff]  ;;  %v374_v46 = vld [vmem:[#allocation5 + $0x990] sm:$0xff] }
 0x10c   :  { %v8611_v61 = vcombine.high %v965_v54, %v973_v55  ;;  %v382_v47 = vld [vmem:[#allocation5 + $0x9d0] sm:$0xff] }
 0x10d   :  { %6559 = vmatpush2.bf16.msra.mxu0 %v8466_v2  ;;  %6600 = vmatpush2.bf16.msra.mxu1 %v8722_v3  ;;  %v8354_v2 = vcombine.low %v709_v52, %v717_v53  ;;  %v8610_v3 = vcombine.low %v965_v54, %v973_v55  ;;  %v102_v52 = vld [vmem:[#allocation5 + $0x110] sm:$0xff] }
 0x10e   :  { %6560 = vmatprep.subr.bf16.mxu0 %v8451_v4  ;;  %6601 = vmatprep.subr.bf16.mxu1 %v8707_v5  ;;  %v7829_v4 = vcombine.high %v182_v62, %v190_v63  ;;  %v8085_v5 = vcombine.high %v438_v0, %v446_v1  ;;  %v110_v53 = vld [vmem:[#allocation5 + $0x150] sm:$0xff] }
 0x10f   :  { %v358_v54 = vld [vmem:[#allocation5 + $0x910] sm:$0xff] }
 0x110   :  { %v366_v55 = vld [vmem:[#allocation5 + $0x950] sm:$0xff] }
 0x111   :  { %6561 = vmatpush2.bf16.msra.mxu0 %v8450_v10  ;;  %6602 = vmatpush2.bf16.msra.mxu1 %v8706_v11  ;;  %v7828_v10 = vcombine.low %v182_v62, %v190_v63  ;;  %v8084_v11 = vcombine.low %v438_v0, %v446_v1  ;;  %v86_v62 = vld [vmem:[#allocation5 + $0x90] sm:$0xff] }
 0x112   :  { %6562 = vmatprep.subr.bf16.mxu0 %v8435_v12  ;;  %6603 = vmatprep.subr.bf16.mxu1 %v8691_v13  ;;  %v7813_v12 = vcombine.high %v166_v6, %v174_v7  ;;  %v8069_v13 = vcombine.high %v422_v8, %v430_v9  ;;  %v94_v63 = vld [vmem:[#allocation5 + $0xd0] sm:$0xff] }
 0x113   :  { %v342_v0 = vld [vmem:[#allocation5 + $0x890] sm:$0xff] }
 0x114   :  { %v350_v1 = vld [vmem:[#allocation5 + $0x8d0] sm:$0xff] }
 0x115   :  { %6563 = vmatpush2.bf16.msra.mxu0 %v8434_v19  ;;  %6604 = vmatpush2.bf16.msra.mxu1 %v8690_v21  ;;  %v414_v19 = vld [vmem:[#allocation5 + $0xad0] sm:$0xff] }
 0x116   :  { %6564 = vmatprep.subr.bf16.mxu0 %v8419_v22  ;;  %6605 = vmatprep.subr.bf16.mxu1 %v8675_v23  ;;  %v7812_v22 = vcombine.low %v166_v6, %v174_v7  ;;  %v8053_v27 = vcombine.high %v406_v18, %v414_v19  ;;  %v70_v6 = vld [vmem:[#allocation5 + $0x10] sm:$0xff] }
 0x117   :  { %v78_v7 = vld [vmem:[#allocation5 + $0x50] sm:$0xff] }
 0x118   :  { %v326_v8 = vld [vmem:[#allocation5 + $0x810] sm:$0xff] }
 0x119   :  { %6565 = vmatpush2.bf16.msra.mxu0 %v8418_v29  ;;  %6606 = vmatpush2.bf16.msra.mxu1 %v8674_v30  ;;  %v134_v29 = vld [vmem:[#allocation5 + $0x210] sm:$0xff] }
 0x11a   :  { %6566 = vmatprep.subr.bf16.mxu0 %v8403_v32  ;;  %6607 = vmatprep.subr.bf16.mxu1 %v8659_v33  ;;  %v142_v30 = vld [vmem:[#allocation5 + $0x250] sm:$0xff] }
 0x11b   :  { %v390_v33 = vld [vmem:[#allocation5 + $0xa10] sm:$0xff] }
 0x11c   :  { %v334_v9 = vld [vmem:[#allocation5 + $0x850] sm:$0xff] }
 0x11d   :  { %6567 = vmatpush2.bf16.msra.mxu0 %v8402_v40  ;;  %6608 = vmatpush2.bf16.msra.mxu1 %v8658_v41  ;;  %v8052_v40 = vcombine.low %v406_v18, %v414_v19  ;;  %v7781_v41 = vcombine.high %v134_v29, %v142_v30  ;;  %v566_v18 = vld [vmem:[#allocation5 + $0xf90] sm:$0xff] }
 0x11e   :  { %6568 = vmatprep.subr.bf16.mxu0 %v8387_v42  ;;  %6609 = vmatprep.subr.bf16.mxu1 %v8643_v43  ;;  %v8037_v43 = vcombine.high %v390_v33, %v398_v34  ;;  %v574_v19 = vld [vmem:[#allocation5 + $0xfd0] sm:$0xff] }
 0x121   :  { %6569 = vmatpush2.bf16.msra.mxu0 %v8386_v48  ;;  %6610 = vmatpush2.bf16.msra.mxu1 %v8642_v49  ;;  %v7780_v48 = vcombine.low %v134_v29, %v142_v30  ;;  %v8036_v49 = vcombine.low %v390_v33, %v398_v34  ;;  %v294_v29 = vld [vmem:[#allocation5 + $0x710] sm:$0xff]  ;;  %v7956_v34 = vcombine.low %v310_v14, %v318_v15 }
 0x122   :  { %6570 = vmatprep.subr.bf16.mxu0 %v8371_v50  ;;  %6611 = vmatprep.subr.bf16.mxu1 %v8627_v51  ;;  %v7765_v50 = vcombine.high %v118_v44, %v126_v45  ;;  %v8021_v51 = vcombine.high %v374_v46, %v382_v47  ;;  %v302_v30 = vld [vmem:[#allocation5 + $0x750] sm:$0xff] }
 0x123   :  { %v558_v33 = vld [vmem:[#allocation5 + $0xf50] sm:$0xff] }
 0x125   :  { %6571 = vmatpush2.bf16.msra.mxu0 %v8370_v56  ;;  %6612 = vmatpush2.bf16.msra.mxu1 %v8626_v57  ;;  %v7764_v56 = vcombine.low %v118_v44, %v126_v45  ;;  %v8020_v57 = vcombine.low %v374_v46, %v382_v47  ;;  %v7940_v44 = vcombine.low %v294_v29, %v302_v30 }
 0x126   :  { %6572 = vmatprep.subr.bf16.mxu0 %v8355_v60  ;;  %6613 = vmatprep.subr.bf16.mxu1 %v8611_v61  ;;  %v7749_v60 = vcombine.high %v102_v52, %v110_v53  ;;  %v8005_v61 = vcombine.high %v358_v54, %v366_v55 }
 0x129   :  { %6573 = vmatpush2.bf16.msra.mxu0 %v8354_v2  ;;  %6614 = vmatpush2.bf16.msra.mxu1 %v8610_v3  ;;  %v7748_v2 = vcombine.low %v102_v52, %v110_v53  ;;  %v8004_v3 = vcombine.low %v358_v54, %v366_v55 }
 0x12a   :  { %6624 = vmatprep.subr.bf16.mxu0 %v7829_v4  ;;  %6665 = vmatprep.subr.bf16.mxu1 %v8085_v5  ;;  %v7733_v4 = vcombine.high %v86_v62, %v94_v63  ;;  %v7989_v5 = vcombine.high %v342_v0, %v350_v1 }
 0x12b   :  { %v8914_v21 = vpop.f32.mrf.mxu1 }
 0x12c   :  { %v8911_v17 = vpop.f32.mrf.mxu0  ;;  %6575 = vmatmul.mubr.bf16.vlgmr.msra.gmra.mxu0 %v8899_v36  ;;  %6616 = vmatmul.mubr.bf16.vlgmr.msra.gmra.mxu1 %v8901_v39 }
 0x12d   :  { %6625 = vmatpush1.bf16.msra.mxu0 %v7828_v10  ;;  %6666 = vmatpush1.bf16.msra.mxu1 %v8084_v11  ;;  %v8919_v26 = vpop.f32.mrf.mxu1  ;;  %v7732_v10 = vcombine.low %v86_v62, %v94_v63  ;;  %v7988_v11 = vcombine.low %v342_v0, %v350_v1  ;;  %v1096_v1 = vlaneseq }
 0x12e   :  { %v8917_v23 = vpop.f32.mrf.mxu0  ;;  %6626 = vmatprep.subr.bf16.mxu0 %v7813_v12  ;;  %6667 = vmatprep.subr.bf16.mxu1 %v8069_v13  ;;  %v7717_v12 = vcombine.high %v70_v6, %v78_v7  ;;  %v7973_v13 = vcombine.high %v326_v8, %v334_v9 }
 0x12f   :  { %6656 = vmatprep.mubr.bf16.mxu0 %v8881_v58  ;;  %6697 = vmatprep.mubr.bf16.mxu1 %v8883_v59  ;;  %v6375_v35 = vpop.f32.mrf.mxu1 }
 0x130   :  { %v6334_v32 = vpop.f32.mrf.mxu0  ;;  %v8212_v35 = vcombine.low %v566_v18, %v574_v19 }
 0x131   :  { %6627 = vmatpush1.bf16.msra.mxu0 %v7812_v22  ;;  %6668 = vmatpush1.bf16.msra.mxu1 %v8068_v24  ;;  %v6376_v42 = vpop.f32.mrf.mxu1  ;;  %v7716_v22 = vcombine.low %v70_v6, %v78_v7  ;;  %v7972_v24 = vcombine.low %v326_v8, %v334_v9  ;;  %v550_v32 = vld [vmem:[#allocation5 + $0xf10] sm:$0xff] }
 0x132   :  { %v6335_v38 = vpop.f32.mrf.mxu0  ;;  %6628 = vmatprep.subr.bf16.mxu0 %v7797_v25  ;;  %6669 = vmatprep.subr.bf16.mxu1 %v8053_v27  ;;  %v7957_v25 = vcombine.high %v310_v14, %v318_v15  ;;  %v8213_v27 = vcombine.high %v566_v18, %v574_v19  ;;  %v534_v42 = vld [vmem:[#allocation5 + $0xe90] sm:$0xff]  ;;  %v8196_v45 = vcombine.low %v550_v32, %v558_v33 }
 0x133   :  { %v8197_v38 = vcombine.high %v550_v32, %v558_v33  ;;  %v494_v6 = vld [vmem:[#allocation5 + $0xd50] sm:$0xff] }
 0x134   :  { %v470_v14 = vld [vmem:[#allocation5 + $0xc90] sm:$0xff] }
 0x135   :  { %6629 = vmatpush1.bf16.msra.mxu0 %v7796_v37  ;;  %6670 = vmatpush1.bf16.msra.mxu1 %v8052_v40  ;;  %v7941_v37 = vcombine.high %v294_v29, %v302_v30  ;;  %v278_v40 = vld [vmem:[#allocation5 + $0x690] sm:$0xff]  ;;  %v8926_v30 = vld [vmem:[#allocation7] sm:$0xff] }
 0x136   :  { %6630 = vmatprep.subr.bf16.mxu0 %v7781_v41  ;;  %6671 = vmatprep.subr.bf16.mxu1 %v8037_v43  ;;  %v286_v41 = vld [vmem:[#allocation5 + $0x6d0] sm:$0xff] }
 0x137   :  { %v542_v43 = vld [vmem:[#allocation5 + $0xed0] sm:$0xff]  ;;  %v7925_v46 = vcombine.high %v278_v40, %v286_v41  ;;  %v7924_v52 = vcombine.low %v278_v40, %v286_v41 }
 0x138   :  { %v8181_v47 = vcombine.high %v534_v42, %v542_v43  ;;  %v8180_v53 = vcombine.low %v534_v42, %v542_v43  ;;  %v478_v15 = vld [vmem:[#allocation5 + $0xcd0] sm:$0xff] }
 0x139   :  { %6631 = vmatpush1.bf16.msra.mxu0 %v7780_v48  ;;  %6672 = vmatpush1.bf16.msra.mxu1 %v8036_v49  ;;  %v262_v48 = vld [vmem:[#allocation5 + $0x610] sm:$0xff] }
 0x13a   :  { %6632 = vmatprep.subr.bf16.mxu0 %v7765_v50  ;;  %6673 = vmatprep.subr.bf16.mxu1 %v8021_v51  ;;  %v270_v49 = vld [vmem:[#allocation5 + $0x650] sm:$0xff] }
 0x13b   :  { %v518_v50 = vld [vmem:[#allocation5 + $0xe10] sm:$0xff]  ;;  %v7909_v54 = vcombine.high %v262_v48, %v270_v49  ;;  %v7908_v62 = vcombine.low %v262_v48, %v270_v49 }
 0x13c   :  { %v526_v51 = vld [vmem:[#allocation5 + $0xe50] sm:$0xff] }
 0x13d   :  { %6633 = vmatpush1.bf16.msra.mxu0 %v7764_v56  ;;  %6674 = vmatpush1.bf16.msra.mxu1 %v8020_v57  ;;  %v8165_v55 = vcombine.high %v518_v50, %v526_v51  ;;  %v246_v56 = vld [vmem:[#allocation5 + $0x590] sm:$0xff]  ;;  %v8164_v63 = vcombine.low %v518_v50, %v526_v51 }
 0x13e   :  { %6634 = vmatprep.subr.bf16.mxu0 %v7749_v60  ;;  %6675 = vmatprep.subr.bf16.mxu1 %v8005_v61  ;;  %v254_v57 = vld [vmem:[#allocation5 + $0x5d0] sm:$0xff] }
 0x13f   :  { %v502_v60 = vld [vmem:[#allocation5 + $0xd90] sm:$0xff]  ;;  %v7893_v0 = vcombine.high %v246_v56, %v254_v57  ;;  %v7892_v7 = vcombine.low %v246_v56, %v254_v57 }
 0x140   :  { %v510_v61 = vld [vmem:[#allocation5 + $0xdd0] sm:$0xff] }
 0x141   :  { %6635 = vmatpush1.bf16.msra.mxu0 %v7748_v2  ;;  %6676 = vmatpush1.bf16.msra.mxu1 %v8004_v3  ;;  %v8149_v2 = vcombine.high %v502_v60, %v510_v61  ;;  %v230_v3 = vld [vmem:[#allocation5 + $0x510] sm:$0xff]  ;;  %v8148_v8 = vcombine.low %v502_v60, %v510_v61 }
 0x142   :  { %6636 = vmatprep.subr.bf16.mxu0 %v7733_v4  ;;  %6677 = vmatprep.subr.bf16.mxu1 %v7989_v5  ;;  %v238_v4 = vld [vmem:[#allocation5 + $0x550] sm:$0xff] }
 0x143   :  { %v486_v5 = vld [vmem:[#allocation5 + $0xd10] sm:$0xff]  ;;  %v7877_v9 = vcombine.high %v230_v3, %v238_v4  ;;  %v7876_v18 = vcombine.low %v230_v3, %v238_v4 }
 0x144   :  { %v8132_v19 = vcombine.low %v486_v5, %v494_v6  ;;  %v206_v29 = vld [vmem:[#allocation5 + $0x450] sm:$0xff] }
 0x145   :  { %6637 = vmatpush1.bf16.msra.mxu0 %v7732_v10  ;;  %6678 = vmatpush1.bf16.msra.mxu1 %v7988_v11  ;;  %v8923_v10 = vshrl.u32 %v1096_v1, 7  ;;  %v8133_v11 = vcombine.high %v486_v5, %v494_v6  ;;  %v454_v32 = vld [vmem:[#allocation5 + $0xc10] sm:$0xff] }
 0x146   :  { %6638 = vmatprep.subr.bf16.mxu0 %v7717_v12  ;;  %6679 = vmatprep.subr.bf16.mxu1 %v7973_v13  ;;  %v214_v12 = vld [vmem:[#allocation5 + $0x490] sm:$0xff] }
 0x147   :  { %v222_v13 = vld [vmem:[#allocation5 + $0x4d0] sm:$0xff] }
 0x148   :  { %v462_v33 = vld [vmem:[#allocation5 + $0xc50] sm:$0xff] }
 0x149   :  { %6639 = vmatpush1.bf16.msra.mxu0 %v7716_v22  ;;  %6680 = vmatpush1.bf16.msra.mxu1 %v7972_v24  ;;  %v7861_v22 = vcombine.high %v214_v12, %v222_v13  ;;  %v1098_v24 = vsub.s32 0, %v8923_v10  ;;  %v8101_v41 = vcombine.high %v454_v32, %v462_v33  ;;  %v694_v42 = vld [vmem:[#allocation5 + $0x1390] sm:$0xff]  ;;  %v8100_v48 = vcombine.low %v454_v32, %v462_v33 }
 0x14a   :  { %6640 = vmatprep.subr.bf16.mxu0 %v7957_v25  ;;  %6681 = vmatprep.subr.bf16.mxu1 %v8213_v27  ;;  %v8117_v25 = vcombine.high %v470_v14, %v478_v15  ;;  %v198_v27 = vld [vmem:[#allocation5 + $0x410] sm:$0xff] }
 0x14b   :  { %v1099_v40 = vrot.slane %v8926_v30, %v1098_v24  ;;  %v702_v43 = vld [vmem:[#allocation5 + $0x13d0] sm:$0xff] }
 0x14c   :  { %v8341_v49 = vcombine.high %v694_v42, %v702_v43  ;;  %v8340_v57 = vcombine.low %v694_v42, %v702_v43  ;;  %v926_v3 = vld [vmem:[#allocation5 + $0x1ad0] sm:$0xff] }
 0x14d   :  { %6641 = vmatpush2.bf16.msra.mxu0 %v7956_v34  ;;  %6682 = vmatpush2.bf16.msra.mxu1 %v8212_v35  ;;  %v1102_v34 = vsub.s32 1, %v8923_v10  ;;  %v7860_v35 = vcombine.low %v214_v12, %v222_v13  ;;  %v6331_v50 = vadd.f32 %v8911_v17, %v1099_v40  ;;  %v670_v17 = vld [vmem:[#allocation5 + $0x12d0] sm:$0xff] }
 0x14e   :  { %6642 = vmatprep.subr.bf16.mxu0 %v7941_v37  ;;  %6683 = vmatprep.subr.bf16.mxu1 %v8197_v38  ;;  %v8116_v37 = vcombine.low %v470_v14, %v478_v15  ;;  %v7845_v38 = vcombine.high %v198_v27, %v206_v29  ;;  %v646_v14 = vld [vmem:[#allocation5 + $0x1210] sm:$0xff] }
 0x14f   :  { %v654_v15 = vld [vmem:[#allocation5 + $0x1250] sm:$0xff] }
 0x150   :  { %v8293_v33 = vcombine.high %v646_v14, %v654_v15  ;;  %v638_v42 = vld [vmem:[#allocation5 + $0x11d0] sm:$0xff] }
 0x151   :  { %6643 = vmatpush2.bf16.msra.mxu0 %v7940_v44  ;;  %6684 = vmatpush2.bf16.msra.mxu1 %v8196_v45  ;;  %v950_v44 = vld [vmem:[#allocation5 + $0x1b90] sm:$0xff] }
 0x152   :  { %6644 = vmatprep.subr.bf16.mxu0 %v7925_v46  ;;  %6685 = vmatprep.subr.bf16.mxu1 %v8181_v47  ;;  %v958_v45 = vld [vmem:[#allocation5 + $0x1bd0] sm:$0xff]  ;;  %v1103_v46 = vrot.slane %v8926_v30, %v1102_v34  ;;  %v7844_v47 = vcombine.low %v198_v27, %v206_v29 }
 0x153   :  { %v8597_v51 = vcombine.high %v950_v44, %v958_v45  ;;  %v8596_v60 = vcombine.low %v950_v44, %v958_v45  ;;  %v886_v43 = vld [vmem:[#allocation5 + $0x1990] sm:$0xff] }
 0x154   :  { %v6333_v56 = vadd.f32 %v8917_v23, %v1103_v46  ;;  %v894_v44 = vld [vmem:[#allocation5 + $0x19d0] sm:$0xff]  ;;  %v8292_v46 = vcombine.low %v646_v14, %v654_v15 }
 0x155   :  { %6645 = vmatpush2.bf16.msra.mxu0 %v7924_v52  ;;  %6686 = vmatpush2.bf16.msra.mxu1 %v8180_v53  ;;  %v678_v52 = vld [vmem:[#allocation5 + $0x1310] sm:$0xff] }
 0x156   :  { %6646 = vmatprep.subr.bf16.mxu0 %v7909_v54  ;;  %6687 = vmatprep.subr.bf16.mxu1 %v8165_v55  ;;  %v686_v53 = vld [vmem:[#allocation5 + $0x1350] sm:$0xff]  ;;  %v6374_v4 = vadd.f32 %v8919_v26, %v6333_v56 }
 0x157   :  { %v934_v54 = vld [vmem:[#allocation5 + $0x1b10] sm:$0xff]  ;;  %v8325_v61 = vcombine.high %v678_v52, %v686_v53  ;;  %v8324_v6 = vcombine.low %v678_v52, %v686_v53 }
 0x158   :  { %v942_v55 = vld [vmem:[#allocation5 + $0x1b50] sm:$0xff] }
 0x159   :  { %6647 = vmatpush2.bf16.msra.mxu0 %v7908_v62  ;;  %6688 = vmatpush2.bf16.msra.mxu1 %v8164_v63  ;;  %v6372_v62 = vadd.f32 %v8914_v21, %v6331_v50  ;;  %v8581_v63 = vcombine.high %v934_v54, %v942_v55  ;;  %v8580_v21 = vcombine.low %v934_v54, %v942_v55  ;;  %v614_v50 = vld [vmem:[#allocation5 + $0x1110] sm:$0xff] }
 0x15a   :  { %6648 = vmatprep.subr.bf16.mxu0 %v7893_v0  ;;  %6689 = vmatprep.subr.bf16.mxu1 %v8149_v2  ;;  %v662_v0 = vld [vmem:[#allocation5 + $0x1290] sm:$0xff]  ;;  %v8532_v55 = vcombine.low %v886_v43, %v894_v44 }
 0x15b   :  { %v918_v2 = vld [vmem:[#allocation5 + $0x1a90] sm:$0xff]  ;;  %v8308_v27 = vcombine.low %v662_v0, %v670_v17 }
 0x15c   :  { %v8565_v13 = vcombine.high %v918_v2, %v926_v3  ;;  %v8564_v32 = vcombine.low %v918_v2, %v926_v3  ;;  %v870_v52 = vld [vmem:[#allocation5 + $0x1910] sm:$0xff] }
 0x15d   :  { %6649 = vmatpush2.bf16.msra.mxu0 %v7892_v7  ;;  %6690 = vmatpush2.bf16.msra.mxu1 %v8148_v8  ;;  %v8309_v8 = vcombine.high %v662_v0, %v670_v17  ;;  %v878_v53 = vld [vmem:[#allocation5 + $0x1950] sm:$0xff] }
 0x15e   :  { %6650 = vmatprep.subr.bf16.mxu0 %v7877_v9  ;;  %6691 = vmatprep.subr.bf16.mxu1 %v8133_v11  ;;  %v8516_v17 = vcombine.low %v870_v52, %v878_v53  ;;  %v582_v3 = vld [vmem:[#allocation5 + $0x1010] sm:$0xff] }
 0x161   :  { %6651 = vmatpush2.bf16.msra.mxu0 %v7876_v18  ;;  %6692 = vmatpush2.bf16.msra.mxu1 %v8132_v19  ;;  %v902_v18 = vld [vmem:[#allocation5 + $0x1a10] sm:$0xff] }
 0x162   :  { %6652 = vmatprep.subr.bf16.mxu0 %v7861_v22  ;;  %6693 = vmatprep.subr.bf16.mxu1 %v8117_v25  ;;  %v910_v19 = vld [vmem:[#allocation5 + $0x1a50] sm:$0xff] }
 0x163   :  { %v8549_v40 = vcombine.high %v902_v18, %v910_v19 }
 0x165   :  { %6653 = vmatpush2.bf16.msra.mxu0 %v7860_v35  ;;  %6694 = vmatpush2.bf16.msra.mxu1 %v8116_v37 }
 0x166   :  { %6654 = vmatprep.subr.bf16.mxu0 %v7845_v38  ;;  %6695 = vmatprep.subr.bf16.mxu1 %v8101_v41  ;;  %v630_v41 = vld [vmem:[#allocation5 + $0x1190] sm:$0xff] }
 0x167   :  { %v8276_v54 = vcombine.low %v630_v41, %v638_v42 }
 0x169   :  { %6655 = vmatpush2.bf16.msra.mxu0 %v7844_v47  ;;  %6696 = vmatpush2.bf16.msra.mxu1 %v8100_v48  ;;  %v8548_v47 = vcombine.low %v902_v18, %v910_v19  ;;  %v8277_v48 = vcombine.high %v630_v41, %v638_v42  ;;  %v806_v19 = vld [vmem:[#allocation5 + $0x1710] sm:$0xff] }
 0x16a   :  { %6706 = vmatprep.subr.bf16.mxu0 %v8341_v49  ;;  %6747 = vmatprep.subr.bf16.mxu1 %v8597_v51  ;;  %v8533_v49 = vcombine.high %v886_v43, %v894_v44  ;;  %v622_v51 = vld [vmem:[#allocation5 + $0x1150] sm:$0xff] }
 0x16b   :  { %v8261_v56 = vcombine.high %v614_v50, %v622_v51  ;;  %v8260_v0 = vcombine.low %v614_v50, %v622_v51  ;;  %v1054_v41 = vld [vmem:[#allocation5 + $0x1ed0] sm:$0xff] }
 0x16c   :  { %v6412_v1 = vpop.f32.mrf.mxu0  ;;  %6657 = vmatmul.mubr.bf16.vlgmr.msra.gmra.mxu0 %v8887_v16  ;;  %v6453_v5 = vpop.f32.mrf.mxu1  ;;  %6698 = vmatmul.mubr.bf16.vlgmr.msra.gmra.mxu1 %v8889_v20 }
 0x16d   :  { %v6413_v23 = vadd.f32 %v6412_v1, %v6372_v62  ;;  %6707 = vmatpush1.bf16.msra.mxu0 %v8340_v57  ;;  %6748 = vmatpush1.bf16.msra.mxu1 %v8596_v60  ;;  %v8517_v57 = vcombine.high %v870_v52, %v878_v53  ;;  %v598_v60 = vld [vmem:[#allocation5 + $0x1090] sm:$0xff] }
 0x16e   :  { %v6414_v7 = vpop.f32.mrf.mxu0  ;;  %6708 = vmatprep.subr.bf16.mxu0 %v8325_v61  ;;  %v6455_v12 = vpop.f32.mrf.mxu1  ;;  %6749 = vmatprep.subr.bf16.mxu1 %v8581_v63  ;;  %v606_v61 = vld [vmem:[#allocation5 + $0x10d0] sm:$0xff] }
 0x16f   :  { %v6454_v9 = vadd.f32 %v6453_v5, %v6413_v23  ;;  %v6415_v11 = vadd.f32 %v6414_v7, %v6374_v4  ;;  %6738 = vmatprep.mubr.bf16.mxu0 %v8891_v28  ;;  %6779 = vmatprep.mubr.bf16.mxu1 %v8894_v31  ;;  %v854_v62 = vld [vmem:[#allocation5 + $0x1890] sm:$0xff]  ;;  %v8245_v1 = vcombine.high %v598_v60, %v606_v61 }
 0x170   :  { %v6416_v26 = vpop.f32.mrf.mxu0  ;;  %v6457_v25 = vpop.f32.mrf.mxu1  ;;  %v862_v63 = vld [vmem:[#allocation5 + $0x18d0] sm:$0xff] }
 0x171   :  { %v6456_v22 = vadd.f32 %v6455_v12, %v6415_v11  ;;  %6709 = vmatpush1.bf16.msra.mxu0 %v8324_v6  ;;  %6750 = vmatpush1.bf16.msra.mxu1 %v8580_v21  ;;  %v7608_v35 = vmax.f32 %v6454_v9, 0.0  ;;  %v8501_v2 = vcombine.high %v854_v62, %v862_v63  ;;  %v590_v4 = vld [vmem:[#allocation5 + $0x1050] sm:$0xff]  ;;  %v8244_v6 = vcombine.low %v598_v60, %v606_v61 }
 0x172   :  { %v6417_v29 = vpop.f32.mrf.mxu0  ;;  %6710 = vmatprep.subr.bf16.mxu0 %v8309_v8  ;;  %v6458_v38 = vpop.f32.mrf.mxu1  ;;  %6751 = vmatprep.subr.bf16.mxu1 %v8565_v13  ;;  %v838_v23 = vld [vmem:[#allocation5 + $0x1810] sm:$0xff]  ;;  %v8500_v7 = vcombine.low %v854_v62, %v862_v63  ;;  %v8229_v21 = vcombine.high %v582_v3, %v590_v4  ;;  %v8228_v14 = vcombine.low %v582_v3, %v590_v4 }
 0x173   :  { %v7609_v37 = vmax.f32 %v6456_v22, 0.0  ;;  %v846_v5 = vld [vmem:[#allocation5 + $0x1850] sm:$0xff] }
 0x174   :  { %v8485_v8 = vcombine.high %v838_v23, %v846_v5  ;;  %v822_v9 = vld [vmem:[#allocation5 + $0x1790] sm:$0xff]  ;;  %v8484_v15 = vcombine.low %v838_v23, %v846_v5 }
 0x175   :  { %v8744_v45 = vpack.c.bf16 %v7609_v37, %v7608_v35  ;;  %6711 = vmatpush1.bf16.msra.mxu0 %v8308_v27  ;;  %6752 = vmatpush1.bf16.msra.mxu1 %v8564_v32  ;;  %v830_v11 = vld [vmem:[#allocation5 + $0x17d0] sm:$0xff] }
 0x176   :  { %6712 = vmatprep.subr.bf16.mxu0 %v8293_v33  ;;  %6753 = vmatprep.subr.bf16.mxu1 %v8549_v40  ;;  %v1078_v12 = vld [vmem:[#allocation5 + $0x1f90] sm:$0xff]  ;;  %v8469_v26 = vcombine.high %v822_v9, %v830_v11  ;;  %v8468_v29 = vcombine.low %v822_v9, %v830_v11 }
 0x177   :  { %7688 = vst [vmem:[#allocation8] sm:$0xff] %v8744_v45  ;;  %v1086_v13 = vld [vmem:[#allocation5 + $0x1fd0] sm:$0xff] }
 0x178   :  { %v8725_v18 = vcombine.high %v1078_v12, %v1086_v13  ;;  %v814_v22 = vld [vmem:[#allocation5 + $0x1750] sm:$0xff]  ;;  %v8724_v32 = vcombine.low %v1078_v12, %v1086_v13 }
 0x179   :  { %6713 = vmatpush1.bf16.msra.mxu0 %v8292_v46  ;;  %6754 = vmatpush1.bf16.msra.mxu1 %v8548_v47  ;;  %v1062_v25 = vld [vmem:[#allocation5 + $0x1f10] sm:$0xff]  ;;  %v8453_v33 = vcombine.high %v806_v19, %v814_v22  ;;  %v8452_v42 = vcombine.low %v806_v19, %v814_v22 }
 0x17a   :  { %6714 = vmatprep.subr.bf16.mxu0 %v8277_v48  ;;  %6755 = vmatprep.subr.bf16.mxu1 %v8533_v49  ;;  %v1070_v27 = vld [vmem:[#allocation5 + $0x1f50] sm:$0xff] }
 0x17b   :  { %v8709_v35 = vcombine.high %v1062_v25, %v1070_v27  ;;  %v790_v37 = vld [vmem:[#allocation5 + $0x1690] sm:$0xff]  ;;  %v8708_v43 = vcombine.low %v1062_v25, %v1070_v27 }
 0x17c   :  { %v798_v38 = vld [vmem:[#allocation5 + $0x16d0] sm:$0xff] }
 0x17d   :  { %6715 = vmatpush1.bf16.msra.mxu0 %v8276_v54  ;;  %6756 = vmatpush1.bf16.msra.mxu1 %v8532_v55  ;;  %v1046_v40 = vld [vmem:[#allocation5 + $0x1e90] sm:$0xff]  ;;  %v8437_v44 = vcombine.high %v790_v37, %v798_v38  ;;  %v8436_v50 = vcombine.low %v790_v37, %v798_v38 }
 0x17e   :  { %6716 = vmatprep.subr.bf16.mxu0 %v8261_v56  ;;  %6757 = vmatprep.subr.bf16.mxu1 %v8517_v57  ;;  %v8693_v45 = vcombine.high %v1046_v40, %v1054_v41  ;;  %v774_v46 = vld [vmem:[#allocation5 + $0x1610] sm:$0xff]  ;;  %v8692_v51 = vcombine.low %v1046_v40, %v1054_v41 }
 0x17f   :  { %v782_v47 = vld [vmem:[#allocation5 + $0x1650] sm:$0xff] }
 0x180   :  { %v1030_v48 = vld [vmem:[#allocation5 + $0x1e10] sm:$0xff]  ;;  %v8421_v52 = vcombine.high %v774_v46, %v782_v47  ;;  %v8420_v60 = vcombine.low %v774_v46, %v782_v47 }
 0x181   :  { %6717 = vmatpush1.bf16.msra.mxu0 %v8260_v0  ;;  %6758 = vmatpush1.bf16.msra.mxu1 %v8516_v17  ;;  %v1038_v49 = vld [vmem:[#allocation5 + $0x1e50] sm:$0xff] }
 0x182   :  { %6718 = vmatprep.subr.bf16.mxu0 %v8245_v1  ;;  %6759 = vmatprep.subr.bf16.mxu1 %v8501_v2  ;;  %v8677_v53 = vcombine.high %v1030_v48, %v1038_v49  ;;  %v758_v54 = vld [vmem:[#allocation5 + $0x1590] sm:$0xff]  ;;  %v8676_v61 = vcombine.low %v1030_v48, %v1038_v49 }
 0x183   :  { %v766_v55 = vld [vmem:[#allocation5 + $0x15d0] sm:$0xff] }
 0x184   :  { %v1014_v56 = vld [vmem:[#allocation5 + $0x1d90] sm:$0xff]  ;;  %v8405_v62 = vcombine.high %v758_v54, %v766_v55  ;;  %v8404_v3 = vcombine.low %v758_v54, %v766_v55  ;;  %v415_v54 = vld [vmem:[#allocation5 + $0xad8] sm:$0xff] }
 0x185   :  { %6719 = vmatpush1.bf16.msra.mxu0 %v8244_v6  ;;  %6760 = vmatpush1.bf16.msra.mxu1 %v8500_v7  ;;  %v1022_v57 = vld [vmem:[#allocation5 + $0x1dd0] sm:$0xff] }
 0x186   :  { %6720 = vmatprep.subr.bf16.mxu0 %v8229_v21  ;;  %6761 = vmatprep.subr.bf16.mxu1 %v8485_v8  ;;  %v8661_v63 = vcombine.high %v1014_v56, %v1022_v57  ;;  %v742_v0 = vld [vmem:[#allocation5 + $0x1510] sm:$0xff]  ;;  %v8660_v4 = vcombine.low %v1014_v56, %v1022_v57 }
 0x187   :  { %v750_v17 = vld [vmem:[#allocation5 + $0x1550] sm:$0xff] }
 0x188   :  { %v998_v1 = vld [vmem:[#allocation5 + $0x1d10] sm:$0xff]  ;;  %v8389_v23 = vcombine.high %v742_v0, %v750_v17  ;;  %v8388_v9 = vcombine.low %v742_v0, %v750_v17  ;;  %v135_v0 = vld [vmem:[#allocation5 + $0x218] sm:$0xff] }
 0x189   :  { %6721 = vmatpush1.bf16.msra.mxu0 %v8228_v14  ;;  %6762 = vmatpush1.bf16.msra.mxu1 %v8484_v15  ;;  %v1006_v2 = vld [vmem:[#allocation5 + $0x1d50] sm:$0xff]  ;;  %v143_v17 = vld [vmem:[#allocation5 + $0x258] sm:$0xff] }
 0x18a   :  { %6722 = vmatprep.subr.bf16.mxu0 %v8469_v26  ;;  %6763 = vmatprep.subr.bf16.mxu1 %v8725_v18  ;;  %v8645_v5 = vcombine.high %v998_v1, %v1006_v2  ;;  %v726_v6 = vld [vmem:[#allocation5 + $0x1490] sm:$0xff]  ;;  %v8644_v11 = vcombine.low %v998_v1, %v1006_v2  ;;  %v391_v2 = vld [vmem:[#allocation5 + $0xa18] sm:$0xff] }
 0x18b   :  { %v734_v7 = vld [vmem:[#allocation5 + $0x14d0] sm:$0xff] }
 0x18c   :  { %v982_v21 = vld [vmem:[#allocation5 + $0x1c90] sm:$0xff]  ;;  %v8373_v12 = vcombine.high %v726_v6, %v734_v7  ;;  %v8372_v19 = vcombine.low %v726_v6, %v734_v7  ;;  %v7783_v7 = vcombine.high %v135_v0, %v143_v17 }
 0x18d   :  { %6723 = vmatpush2.bf16.msra.mxu0 %v8468_v29  ;;  %6764 = vmatpush2.bf16.msra.mxu1 %v8724_v32  ;;  %v990_v8 = vld [vmem:[#allocation5 + $0x1cd0] sm:$0xff]  ;;  %v183_v29 = vld [vmem:[#allocation5 + $0x398] sm:$0xff] }
 0x18e   :  { %6724 = vmatprep.subr.bf16.mxu0 %v8453_v33  ;;  %6765 = vmatprep.subr.bf16.mxu1 %v8709_v35  ;;  %v8629_v13 = vcombine.high %v982_v21, %v990_v8  ;;  %v710_v14 = vld [vmem:[#allocation5 + $0x1410] sm:$0xff]  ;;  %v8628_v22 = vcombine.low %v982_v21, %v990_v8  ;;  %v191_v32 = vld [vmem:[#allocation5 + $0x3d8] sm:$0xff] }
 0x18f   :  { %v718_v15 = vld [vmem:[#allocation5 + $0x1450] sm:$0xff]  ;;  %v439_v33 = vld [vmem:[#allocation5 + $0xb98] sm:$0xff]  ;;  %v7831_v40 = vcombine.high %v183_v29, %v191_v32  ;;  %v7830_v46 = vcombine.low %v183_v29, %v191_v32 }
 0x190   :  { %v966_v26 = vld [vmem:[#allocation5 + $0x1c10] sm:$0xff]  ;;  %v8357_v25 = vcombine.high %v710_v14, %v718_v15  ;;  %v447_v35 = vld [vmem:[#allocation5 + $0xbd8] sm:$0xff]  ;;  %v8356_v37 = vcombine.low %v710_v14, %v718_v15  ;;  %v7782_v14 = vcombine.low %v135_v0, %v143_v17 }
 0x191   :  { %6725 = vmatpush2.bf16.msra.mxu0 %v8452_v42  ;;  %6766 = vmatpush2.bf16.msra.mxu1 %v8708_v43  ;;  %v974_v18 = vld [vmem:[#allocation5 + $0x1c50] sm:$0xff]  ;;  %v8087_v41 = vcombine.high %v439_v33, %v447_v35  ;;  %v167_v42 = vld [vmem:[#allocation5 + $0x318] sm:$0xff]  ;;  %v8086_v47 = vcombine.low %v439_v33, %v447_v35 }
 0x192   :  { %6726 = vmatprep.subr.bf16.mxu0 %v8437_v44  ;;  %6767 = vmatprep.subr.bf16.mxu1 %v8693_v45  ;;  %v8613_v27 = vcombine.high %v966_v26, %v974_v18  ;;  %v8612_v38 = vcombine.low %v966_v26, %v974_v18  ;;  %v175_v43 = vld [vmem:[#allocation5 + $0x358] sm:$0xff] }
 0x193   :  { %v423_v44 = vld [vmem:[#allocation5 + $0xb18] sm:$0xff]  ;;  %v7815_v48 = vcombine.high %v167_v42, %v175_v43  ;;  %v7814_v56 = vcombine.low %v167_v42, %v175_v43 }
 0x194   :  { %v431_v45 = vld [vmem:[#allocation5 + $0xb58] sm:$0xff] }
 0x195   :  { %6727 = vmatpush2.bf16.msra.mxu0 %v8436_v50  ;;  %6768 = vmatpush2.bf16.msra.mxu1 %v8692_v51  ;;  %v8071_v49 = vcombine.high %v423_v44, %v431_v45  ;;  %v151_v50 = vld [vmem:[#allocation5 + $0x298] sm:$0xff] }
 0x196   :  { %6728 = vmatprep.subr.bf16.mxu0 %v8421_v52  ;;  %6769 = vmatprep.subr.bf16.mxu1 %v8677_v53  ;;  %v159_v51 = vld [vmem:[#allocation5 + $0x2d8] sm:$0xff] }
 0x197   :  { %v407_v53 = vld [vmem:[#allocation5 + $0xa98] sm:$0xff] }
 0x198   :  { %v8054_v6 = vcombine.low %v407_v53, %v415_v54 }
 0x199   :  { %6729 = vmatpush2.bf16.msra.mxu0 %v8420_v60  ;;  %6770 = vmatpush2.bf16.msra.mxu1 %v8676_v61  ;;  %v8070_v60 = vcombine.low %v423_v44, %v431_v45  ;;  %v7799_v61 = vcombine.high %v151_v50, %v159_v51 }
 0x19a   :  { %6730 = vmatprep.subr.bf16.mxu0 %v8405_v62  ;;  %6771 = vmatprep.subr.bf16.mxu1 %v8661_v63  ;;  %v8055_v63 = vcombine.high %v407_v53, %v415_v54 }
 0x19d   :  { %6731 = vmatpush2.bf16.msra.mxu0 %v8404_v3  ;;  %6772 = vmatpush2.bf16.msra.mxu1 %v8660_v4  ;;  %v399_v3 = vld [vmem:[#allocation5 + $0xa58] sm:$0xff] }
 0x19e   :  { %6732 = vmatprep.subr.bf16.mxu0 %v8389_v23  ;;  %6773 = vmatprep.subr.bf16.mxu1 %v8645_v5  ;;  %v7798_v23 = vcombine.low %v151_v50, %v159_v51  ;;  %v8039_v8 = vcombine.high %v391_v2, %v399_v3  ;;  %v8038_v15 = vcombine.low %v391_v2, %v399_v3  ;;  %v295_v3 = vld [vmem:[#allocation5 + $0x718] sm:$0xff] }
 0x1a1   :  { %6733 = vmatpush2.bf16.msra.mxu0 %v8388_v9  ;;  %6774 = vmatpush2.bf16.msra.mxu1 %v8644_v11  ;;  %v119_v9 = vld [vmem:[#allocation5 + $0x198] sm:$0xff] }
 0x1a2   :  { %6734 = vmatprep.subr.bf16.mxu0 %v8373_v12  ;;  %6775 = vmatprep.subr.bf16.mxu1 %v8629_v13  ;;  %v127_v11 = vld [vmem:[#allocation5 + $0x1d8] sm:$0xff] }
 0x1a3   :  { %v375_v12 = vld [vmem:[#allocation5 + $0x998] sm:$0xff]  ;;  %v7767_v26 = vcombine.high %v119_v9, %v127_v11  ;;  %v7766_v29 = vcombine.low %v119_v9, %v127_v11 }
 0x1a4   :  { %v383_v13 = vld [vmem:[#allocation5 + $0x9d8] sm:$0xff] }
 0x1a5   :  { %6735 = vmatpush2.bf16.msra.mxu0 %v8372_v19  ;;  %6776 = vmatpush2.bf16.msra.mxu1 %v8628_v22  ;;  %v8023_v18 = vcombine.high %v375_v12, %v383_v13  ;;  %v103_v19 = vld [vmem:[#allocation5 + $0x118] sm:$0xff]  ;;  %v8022_v32 = vcombine.low %v375_v12, %v383_v13 }
 0x1a6   :  { %6736 = vmatprep.subr.bf16.mxu0 %v8357_v25  ;;  %6777 = vmatprep.subr.bf16.mxu1 %v8613_v27  ;;  %v111_v22 = vld [vmem:[#allocation5 + $0x158] sm:$0xff] }
 0x1a7   :  { %v359_v25 = vld [vmem:[#allocation5 + $0x918] sm:$0xff]  ;;  %v7751_v33 = vcombine.high %v103_v19, %v111_v22  ;;  %v7750_v42 = vcombine.low %v103_v19, %v111_v22 }
 0x1a8   :  { %v367_v27 = vld [vmem:[#allocation5 + $0x958] sm:$0xff] }
 0x1a9   :  { %6737 = vmatpush2.bf16.msra.mxu0 %v8356_v37  ;;  %6778 = vmatpush2.bf16.msra.mxu1 %v8612_v38  ;;  %v8007_v35 = vcombine.high %v359_v25, %v367_v27  ;;  %v87_v37 = vld [vmem:[#allocation5 + $0x98] sm:$0xff]  ;;  %v8006_v43 = vcombine.low %v359_v25, %v367_v27 }
 0x1aa   :  { %6788 = vmatprep.subr.bf16.mxu0 %v7831_v40  ;;  %6829 = vmatprep.subr.bf16.mxu1 %v8087_v41  ;;  %v95_v38 = vld [vmem:[#allocation5 + $0xd8] sm:$0xff] }
 0x1ab   :  { %v343_v40 = vld [vmem:[#allocation5 + $0x898] sm:$0xff]  ;;  %v7735_v44 = vcombine.high %v87_v37, %v95_v38  ;;  %v7734_v50 = vcombine.low %v87_v37, %v95_v38 }
 0x1ac   :  { %v8943_v52 = vpop.f32.mrf.mxu0  ;;  %6739 = vmatmul.mubr.bf16.vlgmr.msra.gmra.mxu0 %v8899_v36  ;;  %v8946_v55 = vpop.f32.mrf.mxu1  ;;  %6780 = vmatmul.mubr.bf16.vlgmr.msra.gmra.mxu1 %v8901_v39  ;;  %v351_v41 = vld [vmem:[#allocation5 + $0x8d8] sm:$0xff] }
 0x1ad   :  { %6789 = vmatpush1.bf16.msra.mxu0 %v7830_v46  ;;  %6830 = vmatpush1.bf16.msra.mxu1 %v8086_v47  ;;  %v7991_v45 = vcombine.high %v343_v40, %v351_v41  ;;  %v71_v46 = vld [vmem:[#allocation5 + $0x18] sm:$0xff]  ;;  %v7990_v51 = vcombine.low %v343_v40, %v351_v41 }
 0x1ae   :  { %v8949_v57 = vpop.f32.mrf.mxu0  ;;  %6790 = vmatprep.subr.bf16.mxu0 %v7815_v48  ;;  %v8951_v62 = vpop.f32.mrf.mxu1  ;;  %6831 = vmatprep.subr.bf16.mxu1 %v8071_v49  ;;  %v79_v47 = vld [vmem:[#allocation5 + $0x58] sm:$0xff] }
 0x1af   :  { %6820 = vmatprep.mubr.bf16.mxu0 %v8881_v58  ;;  %6861 = vmatprep.mubr.bf16.mxu1 %v8883_v59  ;;  %v327_v48 = vld [vmem:[#allocation5 + $0x818] sm:$0xff]  ;;  %v7719_v53 = vcombine.high %v71_v46, %v79_v47  ;;  %v7718_v0 = vcombine.low %v71_v46, %v79_v47 }
 0x1b0   :  { %v6498_v1 = vpop.f32.mrf.mxu0  ;;  %v6539_v4 = vpop.f32.mrf.mxu1  ;;  %v335_v49 = vld [vmem:[#allocation5 + $0x858] sm:$0xff] }
 0x1b1   :  { %6791 = vmatpush1.bf16.msra.mxu0 %v7814_v56  ;;  %6832 = vmatpush1.bf16.msra.mxu1 %v8070_v60  ;;  %v7975_v54 = vcombine.high %v327_v48, %v335_v49  ;;  %v311_v56 = vld [vmem:[#allocation5 + $0x798] sm:$0xff]  ;;  %v7974_v17 = vcombine.low %v327_v48, %v335_v49 }
 0x1b2   :  { %v6499_v5 = vpop.f32.mrf.mxu0  ;;  %6792 = vmatprep.subr.bf16.mxu0 %v7799_v61  ;;  %v6540_v21 = vpop.f32.mrf.mxu1  ;;  %6833 = vmatprep.subr.bf16.mxu1 %v8055_v63  ;;  %v319_v60 = vld [vmem:[#allocation5 + $0x7d8] sm:$0xff] }
 0x1b3   :  { %v567_v61 = vld [vmem:[#allocation5 + $0xf98] sm:$0xff]  ;;  %v7959_v1 = vcombine.high %v311_v56, %v319_v60 }
 0x1b4   :  { %v575_v63 = vld [vmem:[#allocation5 + $0xfd8] sm:$0xff] }
 0x1b5   :  { %6793 = vmatpush1.bf16.msra.mxu0 %v7798_v23  ;;  %6834 = vmatpush1.bf16.msra.mxu1 %v8054_v6  ;;  %v8215_v2 = vcombine.high %v567_v61, %v575_v63  ;;  %v303_v4 = vld [vmem:[#allocation5 + $0x758] sm:$0xff]  ;;  %v7958_v6 = vcombine.low %v311_v56, %v319_v60 }
 0x1b6   :  { %6794 = vmatprep.subr.bf16.mxu0 %v7783_v7  ;;  %6835 = vmatprep.subr.bf16.mxu1 %v8039_v8  ;;  %v551_v23 = vld [vmem:[#allocation5 + $0xf18] sm:$0xff]  ;;  %v8214_v7 = vcombine.low %v567_v61, %v575_v63  ;;  %v7943_v21 = vcombine.high %v295_v3, %v303_v4 }
 0x1b7   :  { %v559_v5 = vld [vmem:[#allocation5 + $0xf58] sm:$0xff] }
 0x1b8   :  { %v8199_v8 = vcombine.high %v551_v23, %v559_v5  ;;  %v279_v9 = vld [vmem:[#allocation5 + $0x698] sm:$0xff] }
 0x1b9   :  { %6795 = vmatpush1.bf16.msra.mxu0 %v7782_v14  ;;  %6836 = vmatpush1.bf16.msra.mxu1 %v8038_v15  ;;  %v287_v11 = vld [vmem:[#allocation5 + $0x6d8] sm:$0xff]  ;;  %v7942_v14 = vcombine.low %v295_v3, %v303_v4  ;;  %v8198_v15 = vcombine.low %v551_v23, %v559_v5 }
 0x1ba   :  { %6796 = vmatprep.subr.bf16.mxu0 %v7767_v26  ;;  %6837 = vmatprep.subr.bf16.mxu1 %v8023_v18  ;;  %v535_v12 = vld [vmem:[#allocation5 + $0xe98] sm:$0xff]  ;;  %v7927_v26 = vcombine.high %v279_v9, %v287_v11 }
 0x1bb   :  { %v543_v13 = vld [vmem:[#allocation5 + $0xed8] sm:$0xff] }
 0x1bc   :  { %v8183_v18 = vcombine.high %v535_v12, %v543_v13  ;;  %v263_v19 = vld [vmem:[#allocation5 + $0x618] sm:$0xff] }
 0x1bd   :  { %6797 = vmatpush1.bf16.msra.mxu0 %v7766_v29  ;;  %6838 = vmatpush1.bf16.msra.mxu1 %v8022_v32  ;;  %v271_v22 = vld [vmem:[#allocation5 + $0x658] sm:$0xff]  ;;  %v7926_v29 = vcombine.low %v279_v9, %v287_v11  ;;  %v8182_v32 = vcombine.low %v535_v12, %v543_v13 }
 0x1be   :  { %6798 = vmatprep.subr.bf16.mxu0 %v7751_v33  ;;  %6839 = vmatprep.subr.bf16.mxu1 %v8007_v35  ;;  %v519_v25 = vld [vmem:[#allocation5 + $0xe18] sm:$0xff]  ;;  %v7911_v33 = vcombine.high %v263_v19, %v271_v22 }
 0x1bf   :  { %v527_v27 = vld [vmem:[#allocation5 + $0xe58] sm:$0xff] }
 0x1c0   :  { %v8167_v35 = vcombine.high %v519_v25, %v527_v27  ;;  %v247_v37 = vld [vmem:[#allocation5 + $0x598] sm:$0xff] }
 0x1c1   :  { %6799 = vmatpush1.bf16.msra.mxu0 %v7750_v42  ;;  %6840 = vmatpush1.bf16.msra.mxu1 %v8006_v43  ;;  %v255_v38 = vld [vmem:[#allocation5 + $0x5d8] sm:$0xff]  ;;  %v7910_v42 = vcombine.low %v263_v19, %v271_v22  ;;  %v8166_v43 = vcombine.low %v519_v25, %v527_v27 }
 0x1c2   :  { %6800 = vmatprep.subr.bf16.mxu0 %v7735_v44  ;;  %6841 = vmatprep.subr.bf16.mxu1 %v7991_v45  ;;  %v503_v40 = vld [vmem:[#allocation5 + $0xd98] sm:$0xff]  ;;  %v7895_v44 = vcombine.high %v247_v37, %v255_v38 }
 0x1c3   :  { %v511_v41 = vld [vmem:[#allocation5 + $0xdd8] sm:$0xff] }
 0x1c4   :  { %v8151_v45 = vcombine.high %v503_v40, %v511_v41  ;;  %v231_v46 = vld [vmem:[#allocation5 + $0x518] sm:$0xff] }
 0x1c5   :  { %6801 = vmatpush1.bf16.msra.mxu0 %v7734_v50  ;;  %6842 = vmatpush1.bf16.msra.mxu1 %v7990_v51  ;;  %v239_v47 = vld [vmem:[#allocation5 + $0x558] sm:$0xff]  ;;  %v7894_v50 = vcombine.low %v247_v37, %v255_v38  ;;  %v8150_v51 = vcombine.low %v503_v40, %v511_v41 }
 0x1c6   :  { %6802 = vmatprep.subr.bf16.mxu0 %v7719_v53  ;;  %6843 = vmatprep.subr.bf16.mxu1 %v7975_v54  ;;  %v487_v48 = vld [vmem:[#allocation5 + $0xd18] sm:$0xff]  ;;  %v7879_v53 = vcombine.high %v231_v46, %v239_v47 }
 0x1c7   :  { %v495_v49 = vld [vmem:[#allocation5 + $0xd58] sm:$0xff] }
 0x1c8   :  { %v8135_v54 = vcombine.high %v487_v48, %v495_v49  ;;  %v215_v56 = vld [vmem:[#allocation5 + $0x498] sm:$0xff] }
 0x1c9   :  { %6803 = vmatpush1.bf16.msra.mxu0 %v7718_v0  ;;  %6844 = vmatpush1.bf16.msra.mxu1 %v7974_v17  ;;  %v223_v60 = vld [vmem:[#allocation5 + $0x4d8] sm:$0xff]  ;;  %v7878_v0 = vcombine.low %v231_v46, %v239_v47  ;;  %v8134_v17 = vcombine.low %v487_v48, %v495_v49 }
 0x1ca   :  { %6804 = vmatprep.subr.bf16.mxu0 %v7959_v1  ;;  %6845 = vmatprep.subr.bf16.mxu1 %v8215_v2  ;;  %v471_v61 = vld [vmem:[#allocation5 + $0xc98] sm:$0xff]  ;;  %v7863_v1 = vcombine.high %v215_v56, %v223_v60  ;;  %v1106_v2 = vsub.s32 2, %v8923_v10 }
 0x1cb   :  { %v479_v63 = vld [vmem:[#allocation5 + $0xcd8] sm:$0xff] }
 0x1cc   :  { %v8119_v3 = vcombine.high %v471_v61, %v479_v63  ;;  %v199_v4 = vld [vmem:[#allocation5 + $0x418] sm:$0xff]  ;;  %v1107_v11 = vrot.slane %v8926_v30, %v1106_v2 }
 0x1cd   :  { %6805 = vmatpush2.bf16.msra.mxu0 %v7958_v6  ;;  %6846 = vmatpush2.bf16.msra.mxu1 %v8214_v7  ;;  %v207_v23 = vld [vmem:[#allocation5 + $0x458] sm:$0xff]  ;;  %v1110_v7 = vsub.s32 3, %v8923_v10 }
 0x1ce   :  { %6806 = vmatprep.subr.bf16.mxu0 %v7943_v21  ;;  %6847 = vmatprep.subr.bf16.mxu1 %v8199_v8  ;;  %v455_v5 = vld [vmem:[#allocation5 + $0xc18] sm:$0xff]  ;;  %v7862_v21 = vcombine.low %v215_v56, %v223_v60  ;;  %v8118_v8 = vcombine.low %v471_v61, %v479_v63  ;;  %v7847_v9 = vcombine.high %v199_v4, %v207_v23 }
 0x1cf   :  { %v463_v6 = vld [vmem:[#allocation5 + $0xc58] sm:$0xff]  ;;  %v7846_v19 = vcombine.low %v199_v4, %v207_v23  ;;  %v6495_v27 = vadd.f32 %v8943_v52, %v1107_v11 }
 0x1d0   :  { %v8103_v12 = vcombine.high %v455_v5, %v463_v6  ;;  %v695_v13 = vld [vmem:[#allocation5 + $0x1398] sm:$0xff]  ;;  %v8102_v22 = vcombine.low %v455_v5, %v463_v6 }
 0x1d1   :  { %6807 = vmatpush2.bf16.msra.mxu0 %v7942_v14  ;;  %6848 = vmatpush2.bf16.msra.mxu1 %v8198_v15  ;;  %v703_v14 = vld [vmem:[#allocation5 + $0x13d8] sm:$0xff] }
 0x1d2   :  { %6808 = vmatprep.subr.bf16.mxu0 %v7927_v26  ;;  %6849 = vmatprep.subr.bf16.mxu1 %v8183_v18  ;;  %v951_v15 = vld [vmem:[#allocation5 + $0x1b98] sm:$0xff]  ;;  %v1111_v18 = vrot.slane %v8926_v30, %v1110_v7  ;;  %v8343_v25 = vcombine.high %v695_v13, %v703_v14  ;;  %v8342_v40 = vcombine.low %v695_v13, %v703_v14 }
 0x1d3   :  { %v959_v26 = vld [vmem:[#allocation5 + $0x1bd8] sm:$0xff] }
 0x1d4   :  { %v943_v37 = vld [vmem:[#allocation5 + $0x1b58] sm:$0xff]  ;;  %v6497_v38 = vadd.f32 %v8949_v57, %v1111_v18  ;;  %v8598_v30 = vcombine.low %v951_v15, %v959_v26 }
 0x1d5   :  { %6809 = vmatpush2.bf16.msra.mxu0 %v7926_v29  ;;  %6850 = vmatpush2.bf16.msra.mxu1 %v8182_v32  ;;  %v8599_v29 = vcombine.high %v951_v15, %v959_v26  ;;  %v679_v32 = vld [vmem:[#allocation5 + $0x1318] sm:$0xff] }
 0x1d6   :  { %6810 = vmatprep.subr.bf16.mxu0 %v7911_v33  ;;  %6851 = vmatprep.subr.bf16.mxu1 %v8167_v35  ;;  %v687_v33 = vld [vmem:[#allocation5 + $0x1358] sm:$0xff]  ;;  %v6538_v48 = vadd.f32 %v8951_v62, %v6497_v38 }
 0x1d7   :  { %v935_v35 = vld [vmem:[#allocation5 + $0x1b18] sm:$0xff]  ;;  %v8327_v41 = vcombine.high %v679_v32, %v687_v33 }
 0x1d8   :  { %v671_v52 = vld [vmem:[#allocation5 + $0x12d8] sm:$0xff] }
 0x1d9   :  { %6811 = vmatpush2.bf16.msra.mxu0 %v7910_v42  ;;  %6852 = vmatpush2.bf16.msra.mxu1 %v8166_v43  ;;  %v6536_v42 = vadd.f32 %v8946_v55, %v6495_v27  ;;  %v8583_v43 = vcombine.high %v935_v35, %v943_v37  ;;  %v919_v46 = vld [vmem:[#allocation5 + $0x1a98] sm:$0xff]  ;;  %v8582_v55 = vcombine.low %v935_v35, %v943_v37 }
 0x1da   :  { %6812 = vmatprep.subr.bf16.mxu0 %v7895_v44  ;;  %6853 = vmatprep.subr.bf16.mxu1 %v8151_v45  ;;  %v663_v44 = vld [vmem:[#allocation5 + $0x1298] sm:$0xff] }
 0x1db   :  { %v927_v47 = vld [vmem:[#allocation5 + $0x1ad8] sm:$0xff]  ;;  %v8310_v23 = vcombine.low %v663_v44, %v671_v52 }
 0x1dc   :  { %v8567_v61 = vcombine.high %v919_v46, %v927_v47  ;;  %v647_v63 = vld [vmem:[#allocation5 + $0x1218] sm:$0xff]  ;;  %v8566_v6 = vcombine.low %v919_v46, %v927_v47 }
 0x1dd   :  { %6813 = vmatpush2.bf16.msra.mxu0 %v7894_v50  ;;  %6854 = vmatpush2.bf16.msra.mxu1 %v8150_v51  ;;  %v8326_v50 = vcombine.low %v679_v32, %v687_v33  ;;  %v631_v13 = vld [vmem:[#allocation5 + $0x1198] sm:$0xff] }
 0x1de   :  { %6814 = vmatprep.subr.bf16.mxu0 %v7879_v53  ;;  %6855 = vmatprep.subr.bf16.mxu1 %v8135_v54  ;;  %v8311_v53 = vcombine.high %v663_v44, %v671_v52  ;;  %v639_v14 = vld [vmem:[#allocation5 + $0x11d8] sm:$0xff] }
 0x1df   :  { %v887_v15 = vld [vmem:[#allocation5 + $0x1998] sm:$0xff]  ;;  %v8278_v37 = vcombine.low %v631_v13, %v639_v14 }
 0x1e0   :  { %v895_v26 = vld [vmem:[#allocation5 + $0x19d8] sm:$0xff] }
 0x1e1   :  { %6815 = vmatpush2.bf16.msra.mxu0 %v7878_v0  ;;  %6856 = vmatpush2.bf16.msra.mxu1 %v8134_v17  ;;  %v655_v0 = vld [vmem:[#allocation5 + $0x1258] sm:$0xff]  ;;  %v8535_v27 = vcombine.high %v887_v15, %v895_v26  ;;  %v8534_v38 = vcombine.low %v887_v15, %v895_v26 }
 0x1e2   :  { %6816 = vmatprep.subr.bf16.mxu0 %v7863_v1  ;;  %6857 = vmatprep.subr.bf16.mxu1 %v8119_v3  ;;  %v903_v17 = vld [vmem:[#allocation5 + $0x1a18] sm:$0xff] }
 0x1e3   :  { %v911_v1 = vld [vmem:[#allocation5 + $0x1a58] sm:$0xff] }
 0x1e4   :  { %v623_v32 = vld [vmem:[#allocation5 + $0x1158] sm:$0xff] }
 0x1e5   :  { %6817 = vmatpush2.bf16.msra.mxu0 %v7862_v21  ;;  %6858 = vmatpush2.bf16.msra.mxu1 %v8118_v8  ;;  %v8295_v21 = vcombine.high %v647_v63, %v655_v0  ;;  %v871_v33 = vld [vmem:[#allocation5 + $0x1918] sm:$0xff] }
 0x1e6   :  { %6818 = vmatprep.subr.bf16.mxu0 %v7847_v9  ;;  %6859 = vmatprep.subr.bf16.mxu1 %v8103_v12  ;;  %v8551_v12 = vcombine.high %v903_v17, %v911_v1  ;;  %v879_v35 = vld [vmem:[#allocation5 + $0x1958] sm:$0xff] }
 0x1e7   :  { %v863_v44 = vld [vmem:[#allocation5 + $0x18d8] sm:$0xff] }
 0x1e9   :  { %6819 = vmatpush2.bf16.msra.mxu0 %v7846_v19  ;;  %6860 = vmatpush2.bf16.msra.mxu1 %v8102_v22  ;;  %v8294_v19 = vcombine.low %v647_v63, %v655_v0  ;;  %v8550_v22 = vcombine.low %v903_v17, %v911_v1  ;;  %v1087_v63 = vld [vmem:[#allocation5 + $0x1fd8] sm:$0xff] }
 0x1ea   :  { %6870 = vmatprep.subr.bf16.mxu0 %v8343_v25  ;;  %6911 = vmatprep.subr.bf16.mxu1 %v8599_v29  ;;  %v8279_v25 = vcombine.high %v631_v13, %v639_v14  ;;  %v615_v29 = vld [vmem:[#allocation5 + $0x1118] sm:$0xff] }
 0x1eb   :  { %v8262_v52 = vcombine.low %v615_v29, %v623_v32  ;;  %v1047_v13 = vld [vmem:[#allocation5 + $0x1e98] sm:$0xff] }
 0x1ec   :  { %v6576_v45 = vpop.f32.mrf.mxu0  ;;  %6821 = vmatmul.mubr.bf16.vlgmr.msra.gmra.mxu0 %v8887_v16  ;;  %v6617_v49 = vpop.f32.mrf.mxu1  ;;  %6862 = vmatmul.mubr.bf16.vlgmr.msra.gmra.mxu1 %v8889_v20  ;;  %v1055_v14 = vld [vmem:[#allocation5 + $0x1ed8] sm:$0xff] }
 0x1ed   :  { %v6577_v57 = vadd.f32 %v6576_v45, %v6536_v42  ;;  %6871 = vmatpush1.bf16.msra.mxu0 %v8342_v40  ;;  %6912 = vmatpush1.bf16.msra.mxu1 %v8598_v30  ;;  %v8263_v40 = vcombine.high %v615_v29, %v623_v32  ;;  %v8519_v30 = vcombine.high %v871_v33, %v879_v35  ;;  %v607_v42 = vld [vmem:[#allocation5 + $0x10d8] sm:$0xff] }
 0x1ee   :  { %v6578_v51 = vpop.f32.mrf.mxu0  ;;  %6872 = vmatprep.subr.bf16.mxu0 %v8327_v41  ;;  %v6619_v60 = vpop.f32.mrf.mxu1  ;;  %6913 = vmatprep.subr.bf16.mxu1 %v8583_v43  ;;  %v599_v41 = vld [vmem:[#allocation5 + $0x1098] sm:$0xff]  ;;  %v8518_v45 = vcombine.low %v871_v33, %v879_v35  ;;  %v8694_v33 = vcombine.low %v1047_v13, %v1055_v14 }
 0x1ef   :  { %v6618_v54 = vadd.f32 %v6617_v49, %v6577_v57  ;;  %v6579_v56 = vadd.f32 %v6578_v51, %v6538_v48  ;;  %6902 = vmatprep.mubr.bf16.mxu0 %v8891_v28  ;;  %6943 = vmatprep.mubr.bf16.mxu1 %v8894_v31  ;;  %v855_v43 = vld [vmem:[#allocation5 + $0x1898] sm:$0xff]  ;;  %v8247_v46 = vcombine.high %v599_v41, %v607_v42 }
 0x1f0   :  { %v6580_v62 = vpop.f32.mrf.mxu0  ;;  %v6621_v4 = vpop.f32.mrf.mxu1  ;;  %v8503_v47 = vcombine.high %v855_v43, %v863_v44  ;;  %v583_v48 = vld [vmem:[#allocation5 + $0x1018] sm:$0xff]  ;;  %v8246_v51 = vcombine.low %v599_v41, %v607_v42 }
 0x1f1   :  { %v6620_v3 = vadd.f32 %v6619_v60, %v6579_v56  ;;  %6873 = vmatpush1.bf16.msra.mxu0 %v8326_v50  ;;  %6914 = vmatpush1.bf16.msra.mxu1 %v8582_v55  ;;  %v7610_v8 = vmax.f32 %v6618_v54, 0.0  ;;  %v591_v57 = vld [vmem:[#allocation5 + $0x1058] sm:$0xff]  ;;  %v8502_v55 = vcombine.low %v855_v43, %v863_v44 }
 0x1f2   :  { %v6581_v5 = vpop.f32.mrf.mxu0  ;;  %6874 = vmatprep.subr.bf16.mxu0 %v8311_v53  ;;  %v6622_v11 = vpop.f32.mrf.mxu1  ;;  %6915 = vmatprep.subr.bf16.mxu1 %v8567_v61  ;;  %v839_v49 = vld [vmem:[#allocation5 + $0x1818] sm:$0xff]  ;;  %v8231_v53 = vcombine.high %v583_v48, %v591_v57  ;;  %v8230_v0 = vcombine.low %v583_v48, %v591_v57 }
 0x1f3   :  { %v7611_v9 = vmax.f32 %v6620_v3, 0.0  ;;  %v847_v50 = vld [vmem:[#allocation5 + $0x1858] sm:$0xff] }
 0x1f4   :  { %v8487_v54 = vcombine.high %v839_v49, %v847_v50  ;;  %v823_v56 = vld [vmem:[#allocation5 + $0x1798] sm:$0xff]  ;;  %v8486_v62 = vcombine.low %v839_v49, %v847_v50 }
 0x1f5   :  { %v8745_v18 = vpack.c.bf16 %v7611_v9, %v7610_v8  ;;  %6875 = vmatpush1.bf16.msra.mxu0 %v8310_v23  ;;  %6916 = vmatpush1.bf16.msra.mxu1 %v8566_v6  ;;  %v831_v60 = vld [vmem:[#allocation5 + $0x17d8] sm:$0xff] }
 0x1f6   :  { %6876 = vmatprep.subr.bf16.mxu0 %v8295_v21  ;;  %6917 = vmatprep.subr.bf16.mxu1 %v8551_v12  ;;  %v1079_v61 = vld [vmem:[#allocation5 + $0x1f98] sm:$0xff]  ;;  %v8471_v17 = vcombine.high %v823_v56, %v831_v60  ;;  %v8470_v6 = vcombine.low %v823_v56, %v831_v60 }
 0x1f7   :  { %7689 = vst [vmem:[#allocation8 + $0x8] sm:$0xff] %v8745_v18  ;;  %v8727_v1 = vcombine.high %v1079_v61, %v1087_v63  ;;  %v807_v3 = vld [vmem:[#allocation5 + $0x1718] sm:$0xff]  ;;  %v8726_v21 = vcombine.low %v1079_v61, %v1087_v63 }
 0x1f8   :  { %v815_v4 = vld [vmem:[#allocation5 + $0x1758] sm:$0xff] }
 0x1f9   :  { %6877 = vmatpush1.bf16.msra.mxu0 %v8294_v19  ;;  %6918 = vmatpush1.bf16.msra.mxu1 %v8550_v22  ;;  %v1063_v23 = vld [vmem:[#allocation5 + $0x1f18] sm:$0xff]  ;;  %v8455_v8 = vcombine.high %v807_v3, %v815_v4  ;;  %v8454_v15 = vcombine.low %v807_v3, %v815_v4  ;;  %v8695_v19 = vcombine.high %v1047_v13, %v1055_v14 }
 0x1fa   :  { %6878 = vmatprep.subr.bf16.mxu0 %v8279_v25  ;;  %6919 = vmatprep.subr.bf16.mxu1 %v8535_v27  ;;  %v1071_v5 = vld [vmem:[#allocation5 + $0x1f58] sm:$0xff] }
 0x1fb   :  { %v8711_v9 = vcombine.high %v1063_v23, %v1071_v5  ;;  %v791_v11 = vld [vmem:[#allocation5 + $0x1698] sm:$0xff]  ;;  %v8710_v26 = vcombine.low %v1063_v23, %v1071_v5 }
 0x1fc   :  { %v799_v12 = vld [vmem:[#allocation5 + $0x16d8] sm:$0xff] }
 0x1fd   :  { %6879 = vmatpush1.bf16.msra.mxu0 %v8278_v37  ;;  %6920 = vmatpush1.bf16.msra.mxu1 %v8534_v38  ;;  %v8439_v18 = vcombine.high %v791_v11, %v799_v12  ;;  %v775_v22 = vld [vmem:[#allocation5 + $0x1618] sm:$0xff]  ;;  %v8438_v32 = vcombine.low %v791_v11, %v799_v12  ;;  %v448_v11 = vld [vmem:[#allocation5 + $0xbe0] sm:$0xff] }
 0x1fe   :  { %6880 = vmatprep.subr.bf16.mxu0 %v8263_v40  ;;  %6921 = vmatprep.subr.bf16.mxu1 %v8519_v30  ;;  %v783_v25 = vld [vmem:[#allocation5 + $0x1658] sm:$0xff] }
 0x1ff   :  { %v1031_v27 = vld [vmem:[#allocation5 + $0x1e18] sm:$0xff]  ;;  %v8423_v35 = vcombine.high %v775_v22, %v783_v25  ;;  %v8422_v42 = vcombine.low %v775_v22, %v783_v25  ;;  %v432_v22 = vld [vmem:[#allocation5 + $0xb60] sm:$0xff] }
 0x200   :  { %v1039_v29 = vld [vmem:[#allocation5 + $0x1e58] sm:$0xff] }
 0x201   :  { %6881 = vmatpush1.bf16.msra.mxu0 %v8262_v52  ;;  %6922 = vmatpush1.bf16.msra.mxu1 %v8518_v45  ;;  %v8679_v37 = vcombine.high %v1031_v27, %v1039_v29  ;;  %v759_v38 = vld [vmem:[#allocation5 + $0x1598] sm:$0xff]  ;;  %v8678_v43 = vcombine.low %v1031_v27, %v1039_v29 }
 0x202   :  { %6882 = vmatprep.subr.bf16.mxu0 %v8247_v46  ;;  %6923 = vmatprep.subr.bf16.mxu1 %v8503_v47  ;;  %v767_v40 = vld [vmem:[#allocation5 + $0x15d8] sm:$0xff] }
 0x203   :  { %v1015_v30 = vld [vmem:[#allocation5 + $0x1d98] sm:$0xff]  ;;  %v8407_v44 = vcombine.high %v759_v38, %v767_v40  ;;  %v8406_v57 = vcombine.low %v759_v38, %v767_v40  ;;  %v408_v38 = vld [vmem:[#allocation5 + $0xaa0] sm:$0xff] }
 0x204   :  { %v1023_v41 = vld [vmem:[#allocation5 + $0x1dd8] sm:$0xff]  ;;  %v416_v40 = vld [vmem:[#allocation5 + $0xae0] sm:$0xff] }
 0x205   :  { %6883 = vmatpush1.bf16.msra.mxu0 %v8246_v51  ;;  %6924 = vmatpush1.bf16.msra.mxu1 %v8502_v55  ;;  %v8663_v52 = vcombine.high %v1015_v30, %v1023_v41  ;;  %v743_v45 = vld [vmem:[#allocation5 + $0x1518] sm:$0xff]  ;;  %v8662_v49 = vcombine.low %v1015_v30, %v1023_v41 }
 0x206   :  { %6884 = vmatprep.subr.bf16.mxu0 %v8231_v53  ;;  %6925 = vmatprep.subr.bf16.mxu1 %v8487_v54  ;;  %v751_v46 = vld [vmem:[#allocation5 + $0x1558] sm:$0xff] }
 0x207   :  { %v999_v47 = vld [vmem:[#allocation5 + $0x1d18] sm:$0xff]  ;;  %v8391_v50 = vcombine.high %v743_v45, %v751_v46  ;;  %v8390_v60 = vcombine.low %v743_v45, %v751_v46  ;;  %v8057_v45 = vcombine.high %v408_v38, %v416_v40  ;;  %v136_v46 = vld [vmem:[#allocation5 + $0x220] sm:$0xff] }
 0x208   :  { %v1007_v48 = vld [vmem:[#allocation5 + $0x1d58] sm:$0xff] }
 0x209   :  { %6885 = vmatpush1.bf16.msra.mxu0 %v8230_v0  ;;  %6926 = vmatpush1.bf16.msra.mxu1 %v8486_v62  ;;  %v8647_v51 = vcombine.high %v999_v47, %v1007_v48  ;;  %v727_v55 = vld [vmem:[#allocation5 + $0x1498] sm:$0xff]  ;;  %v8646_v61 = vcombine.low %v999_v47, %v1007_v48  ;;  %v144_v47 = vld [vmem:[#allocation5 + $0x260] sm:$0xff] }
 0x20a   :  { %6886 = vmatprep.subr.bf16.mxu0 %v8471_v17  ;;  %6927 = vmatprep.subr.bf16.mxu1 %v8727_v1  ;;  %v735_v53 = vld [vmem:[#allocation5 + $0x14d8] sm:$0xff] }
 0x20b   :  { %v983_v54 = vld [vmem:[#allocation5 + $0x1c98] sm:$0xff]  ;;  %v8375_v63 = vcombine.high %v727_v55, %v735_v53  ;;  %v8374_v4 = vcombine.low %v727_v55, %v735_v53  ;;  %v8056_v53 = vcombine.low %v408_v38, %v416_v40 }
 0x20c   :  { %v991_v56 = vld [vmem:[#allocation5 + $0x1cd8] sm:$0xff] }
 0x20d   :  { %6887 = vmatpush2.bf16.msra.mxu0 %v8470_v6  ;;  %6928 = vmatpush2.bf16.msra.mxu1 %v8726_v21  ;;  %v8631_v0 = vcombine.high %v983_v54, %v991_v56  ;;  %v711_v62 = vld [vmem:[#allocation5 + $0x1418] sm:$0xff]  ;;  %v8630_v23 = vcombine.low %v983_v54, %v991_v56  ;;  %v184_v21 = vld [vmem:[#allocation5 + $0x3a0] sm:$0xff]  ;;  %v7785_v54 = vcombine.high %v136_v46, %v144_v47 }
 0x20e   :  { %6888 = vmatprep.subr.bf16.mxu0 %v8455_v8  ;;  %6929 = vmatprep.subr.bf16.mxu1 %v8711_v9  ;;  %v719_v17 = vld [vmem:[#allocation5 + $0x1458] sm:$0xff]  ;;  %v192_v8 = vld [vmem:[#allocation5 + $0x3e0] sm:$0xff] }
 0x20f   :  { %v967_v1 = vld [vmem:[#allocation5 + $0x1c18] sm:$0xff]  ;;  %v8359_v5 = vcombine.high %v711_v62, %v719_v17  ;;  %v440_v9 = vld [vmem:[#allocation5 + $0xba0] sm:$0xff]  ;;  %v8358_v12 = vcombine.low %v711_v62, %v719_v17  ;;  %v7833_v14 = vcombine.high %v184_v21, %v192_v8  ;;  %v7832_v25 = vcombine.low %v184_v21, %v192_v8 }
 0x210   :  { %v975_v3 = vld [vmem:[#allocation5 + $0x1c58] sm:$0xff]  ;;  %v8088_v27 = vcombine.low %v440_v9, %v448_v11  ;;  %v384_v62 = vld [vmem:[#allocation5 + $0x9e0] sm:$0xff]  ;;  %v7784_v17 = vcombine.low %v136_v46, %v144_v47 }
 0x211   :  { %6889 = vmatpush2.bf16.msra.mxu0 %v8454_v15  ;;  %6930 = vmatpush2.bf16.msra.mxu1 %v8710_v26  ;;  %v8615_v6 = vcombine.high %v967_v1, %v975_v3  ;;  %v8614_v13 = vcombine.low %v967_v1, %v975_v3  ;;  %v8089_v15 = vcombine.high %v440_v9, %v448_v11  ;;  %v168_v26 = vld [vmem:[#allocation5 + $0x320] sm:$0xff] }
 0x212   :  { %6890 = vmatprep.subr.bf16.mxu0 %v8439_v18  ;;  %6931 = vmatprep.subr.bf16.mxu1 %v8695_v19  ;;  %v176_v18 = vld [vmem:[#allocation5 + $0x360] sm:$0xff] }
 0x213   :  { %v424_v19 = vld [vmem:[#allocation5 + $0xb20] sm:$0xff]  ;;  %v7817_v29 = vcombine.high %v168_v26, %v176_v18  ;;  %v7816_v41 = vcombine.low %v168_v26, %v176_v18 }
 0x214   :  { %v368_v21 = vld [vmem:[#allocation5 + $0x960] sm:$0xff] }
 0x215   :  { %6891 = vmatpush2.bf16.msra.mxu0 %v8438_v32  ;;  %6932 = vmatpush2.bf16.msra.mxu1 %v8694_v33  ;;  %v8073_v32 = vcombine.high %v424_v19, %v432_v22  ;;  %v152_v33 = vld [vmem:[#allocation5 + $0x2a0] sm:$0xff] }
 0x216   :  { %6892 = vmatprep.subr.bf16.mxu0 %v8423_v35  ;;  %6933 = vmatprep.subr.bf16.mxu1 %v8679_v37  ;;  %v160_v35 = vld [vmem:[#allocation5 + $0x2e0] sm:$0xff] }
 0x217   :  { %v352_v26 = vld [vmem:[#allocation5 + $0x8e0] sm:$0xff] }
 0x218   :  { %v576_v46 = vld [vmem:[#allocation5 + $0xfe0] sm:$0xff] }
 0x219   :  { %6893 = vmatpush2.bf16.msra.mxu0 %v8422_v42  ;;  %6934 = vmatpush2.bf16.msra.mxu1 %v8678_v43  ;;  %v8072_v43 = vcombine.low %v424_v19, %v432_v22 }
 0x21a   :  { %6894 = vmatprep.subr.bf16.mxu0 %v8407_v44  ;;  %6935 = vmatprep.subr.bf16.mxu1 %v8663_v52  ;;  %v7801_v44 = vcombine.high %v152_v33, %v160_v35 }
 0x21d   :  { %6895 = vmatpush2.bf16.msra.mxu0 %v8406_v57  ;;  %6936 = vmatpush2.bf16.msra.mxu1 %v8662_v49  ;;  %v392_v57 = vld [vmem:[#allocation5 + $0xa20] sm:$0xff] }
 0x21e   :  { %6896 = vmatprep.subr.bf16.mxu0 %v8391_v50  ;;  %6937 = vmatprep.subr.bf16.mxu1 %v8647_v51  ;;  %v400_v49 = vld [vmem:[#allocation5 + $0xa60] sm:$0xff]  ;;  %v7800_v51 = vcombine.low %v152_v33, %v160_v35 }
 0x21f   :  { %v8040_v1 = vcombine.low %v392_v57, %v400_v49  ;;  %v336_v33 = vld [vmem:[#allocation5 + $0x860] sm:$0xff] }
 0x221   :  { %6897 = vmatpush2.bf16.msra.mxu0 %v8390_v60  ;;  %6938 = vmatpush2.bf16.msra.mxu1 %v8646_v61  ;;  %v8041_v60 = vcombine.high %v392_v57, %v400_v49  ;;  %v120_v61 = vld [vmem:[#allocation5 + $0x1a0] sm:$0xff] }
 0x222   :  { %6898 = vmatprep.subr.bf16.mxu0 %v8375_v63  ;;  %6939 = vmatprep.subr.bf16.mxu1 %v8631_v0  ;;  %v128_v63 = vld [vmem:[#allocation5 + $0x1e0] sm:$0xff] }
 0x223   :  { %v376_v0 = vld [vmem:[#allocation5 + $0x9a0] sm:$0xff]  ;;  %v7769_v3 = vcombine.high %v120_v61, %v128_v63  ;;  %v7768_v8 = vcombine.low %v120_v61, %v128_v63 }
 0x224   :  { %v8024_v9 = vcombine.low %v376_v0, %v384_v62  ;;  %v280_v63 = vld [vmem:[#allocation5 + $0x6a0] sm:$0xff] }
 0x225   :  { %6899 = vmatpush2.bf16.msra.mxu0 %v8374_v4  ;;  %6940 = vmatpush2.bf16.msra.mxu1 %v8630_v23  ;;  %v8025_v4 = vcombine.high %v376_v0, %v384_v62  ;;  %v104_v23 = vld [vmem:[#allocation5 + $0x120] sm:$0xff] }
 0x226   :  { %6900 = vmatprep.subr.bf16.mxu0 %v8359_v5  ;;  %6941 = vmatprep.subr.bf16.mxu1 %v8615_v6  ;;  %v112_v5 = vld [vmem:[#allocation5 + $0x160] sm:$0xff] }
 0x227   :  { %v360_v6 = vld [vmem:[#allocation5 + $0x920] sm:$0xff]  ;;  %v7753_v11 = vcombine.high %v104_v23, %v112_v5  ;;  %v7752_v18 = vcombine.low %v104_v23, %v112_v5 }
 0x228   :  { %v8008_v19 = vcombine.low %v360_v6, %v368_v21  ;;  %v288_v0 = vld [vmem:[#allocation5 + $0x6e0] sm:$0xff] }
 0x229   :  { %6901 = vmatpush2.bf16.msra.mxu0 %v8358_v12  ;;  %6942 = vmatpush2.bf16.msra.mxu1 %v8614_v13  ;;  %v8009_v12 = vcombine.high %v360_v6, %v368_v21  ;;  %v88_v13 = vld [vmem:[#allocation5 + $0xa0] sm:$0xff] }
 0x22a   :  { %6952 = vmatprep.subr.bf16.mxu0 %v7833_v14  ;;  %6993 = vmatprep.subr.bf16.mxu1 %v8089_v15  ;;  %v96_v14 = vld [vmem:[#allocation5 + $0xe0] sm:$0xff] }
 0x22b   :  { %v344_v15 = vld [vmem:[#allocation5 + $0x8a0] sm:$0xff]  ;;  %v7737_v22 = vcombine.high %v88_v13, %v96_v14  ;;  %v7736_v35 = vcombine.low %v88_v13, %v96_v14 }
 0x22c   :  { %v8971_v37 = vpop.f32.mrf.mxu0  ;;  %6903 = vmatmul.mubr.bf16.vlgmr.msra.gmra.mxu0 %v8899_v36  ;;  %v8974_v30 = vpop.f32.mrf.mxu1  ;;  %6944 = vmatmul.mubr.bf16.vlgmr.msra.gmra.mxu1 %v8901_v39  ;;  %v7992_v38 = vcombine.low %v344_v15, %v352_v26  ;;  %v536_v62 = vld [vmem:[#allocation5 + $0xea0] sm:$0xff] }
 0x22d   :  { %6953 = vmatpush1.bf16.msra.mxu0 %v7832_v25  ;;  %6994 = vmatpush1.bf16.msra.mxu1 %v8088_v27  ;;  %v7993_v25 = vcombine.high %v344_v15, %v352_v26  ;;  %v72_v27 = vld [vmem:[#allocation5 + $0x20] sm:$0xff] }
 0x22e   :  { %v8977_v42 = vpop.f32.mrf.mxu0  ;;  %6954 = vmatprep.subr.bf16.mxu0 %v7817_v29  ;;  %v8979_v52 = vpop.f32.mrf.mxu1  ;;  %6995 = vmatprep.subr.bf16.mxu1 %v8073_v32  ;;  %v80_v29 = vld [vmem:[#allocation5 + $0x60] sm:$0xff] }
 0x22f   :  { %6984 = vmatprep.mubr.bf16.mxu0 %v8881_v58  ;;  %7025 = vmatprep.mubr.bf16.mxu1 %v8883_v59  ;;  %v328_v32 = vld [vmem:[#allocation5 + $0x820] sm:$0xff]  ;;  %v7721_v40 = vcombine.high %v72_v27, %v80_v29  ;;  %v7720_v47 = vcombine.low %v72_v27, %v80_v29 }
 0x230   :  { %v6662_v48 = vpop.f32.mrf.mxu0  ;;  %v6703_v50 = vpop.f32.mrf.mxu1  ;;  %v264_v5 = vld [vmem:[#allocation5 + $0x620] sm:$0xff] }
 0x231   :  { %6955 = vmatpush1.bf16.msra.mxu0 %v7816_v41  ;;  %6996 = vmatpush1.bf16.msra.mxu1 %v8072_v43  ;;  %v7977_v41 = vcombine.high %v328_v32, %v336_v33  ;;  %v312_v43 = vld [vmem:[#allocation5 + $0x7a0] sm:$0xff]  ;;  %v7976_v48 = vcombine.low %v328_v32, %v336_v33 }
 0x232   :  { %v6663_v55 = vpop.f32.mrf.mxu0  ;;  %6956 = vmatprep.subr.bf16.mxu0 %v7801_v44  ;;  %v6704_v56 = vpop.f32.mrf.mxu1  ;;  %6997 = vmatprep.subr.bf16.mxu1 %v8057_v45  ;;  %v320_v44 = vld [vmem:[#allocation5 + $0x7e0] sm:$0xff] }
 0x233   :  { %v568_v45 = vld [vmem:[#allocation5 + $0xfa0] sm:$0xff]  ;;  %v7961_v57 = vcombine.high %v312_v43, %v320_v44 }
 0x234   :  { %v8217_v49 = vcombine.high %v568_v45, %v576_v46  ;;  %v296_v50 = vld [vmem:[#allocation5 + $0x720] sm:$0xff]  ;;  %v8216_v56 = vcombine.low %v568_v45, %v576_v46 }
 0x235   :  { %6957 = vmatpush1.bf16.msra.mxu0 %v7800_v51  ;;  %6998 = vmatpush1.bf16.msra.mxu1 %v8056_v53  ;;  %v304_v51 = vld [vmem:[#allocation5 + $0x760] sm:$0xff] }
 0x236   :  { %6958 = vmatprep.subr.bf16.mxu0 %v7785_v54  ;;  %6999 = vmatprep.subr.bf16.mxu1 %v8041_v60  ;;  %v552_v55 = vld [vmem:[#allocation5 + $0xf20] sm:$0xff]  ;;  %v7960_v54 = vcombine.low %v312_v43, %v320_v44  ;;  %v7945_v60 = vcombine.high %v296_v50, %v304_v51 }
 0x237   :  { %v560_v53 = vld [vmem:[#allocation5 + $0xf60] sm:$0xff] }
 0x238   :  { %v8201_v61 = vcombine.high %v552_v55, %v560_v53  ;;  %v272_v6 = vld [vmem:[#allocation5 + $0x660] sm:$0xff] }
 0x239   :  { %6959 = vmatpush1.bf16.msra.mxu0 %v7784_v17  ;;  %7000 = vmatpush1.bf16.msra.mxu1 %v8040_v1  ;;  %v544_v17 = vld [vmem:[#allocation5 + $0xee0] sm:$0xff]  ;;  %v7944_v1 = vcombine.low %v296_v50, %v304_v51  ;;  %v1114_v50 = vsub.s32 4, %v8923_v10 }
 0x23a   :  { %6960 = vmatprep.subr.bf16.mxu0 %v7769_v3  ;;  %7001 = vmatprep.subr.bf16.mxu1 %v8025_v4  ;;  %v8200_v3 = vcombine.low %v552_v55, %v560_v53  ;;  %v7929_v4 = vcombine.high %v280_v63, %v288_v0  ;;  %v8185_v23 = vcombine.high %v536_v62, %v544_v17  ;;  %v520_v21 = vld [vmem:[#allocation5 + $0xe20] sm:$0xff] }
 0x23b   :  { %v248_v14 = vld [vmem:[#allocation5 + $0x5a0] sm:$0xff] }
 0x23c   :  { %v256_v15 = vld [vmem:[#allocation5 + $0x5e0] sm:$0xff] }
 0x23d   :  { %6961 = vmatpush1.bf16.msra.mxu0 %v7768_v8  ;;  %7002 = vmatpush1.bf16.msra.mxu1 %v8024_v9  ;;  %v528_v8 = vld [vmem:[#allocation5 + $0xe60] sm:$0xff]  ;;  %v7928_v9 = vcombine.low %v280_v63, %v288_v0 }
 0x23e   :  { %6962 = vmatprep.subr.bf16.mxu0 %v7753_v11  ;;  %7003 = vmatprep.subr.bf16.mxu1 %v8009_v12  ;;  %v8184_v11 = vcombine.low %v536_v62, %v544_v17  ;;  %v7913_v12 = vcombine.high %v264_v5, %v272_v6  ;;  %v8169_v13 = vcombine.high %v520_v21, %v528_v8  ;;  %v504_v26 = vld [vmem:[#allocation5 + $0xda0] sm:$0xff] }
 0x23f   :  { %v232_v29 = vld [vmem:[#allocation5 + $0x520] sm:$0xff] }
 0x240   :  { %v240_v32 = vld [vmem:[#allocation5 + $0x560] sm:$0xff] }
 0x241   :  { %6963 = vmatpush1.bf16.msra.mxu0 %v7752_v18  ;;  %7004 = vmatpush1.bf16.msra.mxu1 %v8008_v19  ;;  %v512_v18 = vld [vmem:[#allocation5 + $0xde0] sm:$0xff]  ;;  %v7912_v19 = vcombine.low %v264_v5, %v272_v6 }
 0x242   :  { %6964 = vmatprep.subr.bf16.mxu0 %v7737_v22  ;;  %7005 = vmatprep.subr.bf16.mxu1 %v7993_v25  ;;  %v8168_v22 = vcombine.low %v520_v21, %v528_v8  ;;  %v7897_v25 = vcombine.high %v248_v14, %v256_v15  ;;  %v8153_v27 = vcombine.high %v504_v26, %v512_v18  ;;  %v488_v33 = vld [vmem:[#allocation5 + $0xd20] sm:$0xff] }
 0x243   :  { %v216_v44 = vld [vmem:[#allocation5 + $0x4a0] sm:$0xff] }
 0x244   :  { %v224_v45 = vld [vmem:[#allocation5 + $0x4e0] sm:$0xff] }
 0x245   :  { %6965 = vmatpush1.bf16.msra.mxu0 %v7736_v35  ;;  %7006 = vmatpush1.bf16.msra.mxu1 %v7992_v38  ;;  %v496_v35 = vld [vmem:[#allocation5 + $0xd60] sm:$0xff]  ;;  %v7896_v38 = vcombine.low %v248_v14, %v256_v15 }
 0x246   :  { %6966 = vmatprep.subr.bf16.mxu0 %v7721_v40  ;;  %7007 = vmatprep.subr.bf16.mxu1 %v7977_v41  ;;  %v8152_v40 = vcombine.low %v504_v26, %v512_v18  ;;  %v7881_v41 = vcombine.high %v232_v29, %v240_v32  ;;  %v8137_v43 = vcombine.high %v488_v33, %v496_v35  ;;  %v472_v46 = vld [vmem:[#allocation5 + $0xca0] sm:$0xff] }
 0x247   :  { %v200_v55 = vld [vmem:[#allocation5 + $0x420] sm:$0xff] }
 0x248   :  { %v208_v53 = vld [vmem:[#allocation5 + $0x460] sm:$0xff] }
 0x249   :  { %6967 = vmatpush1.bf16.msra.mxu0 %v7720_v47  ;;  %7008 = vmatpush1.bf16.msra.mxu1 %v7976_v48  ;;  %v480_v47 = vld [vmem:[#allocation5 + $0xce0] sm:$0xff]  ;;  %v7880_v48 = vcombine.low %v232_v29, %v240_v32  ;;  %v7849_v0 = vcombine.high %v200_v55, %v208_v53  ;;  %v7848_v21 = vcombine.low %v200_v55, %v208_v53 }
 0x24a   :  { %6968 = vmatprep.subr.bf16.mxu0 %v7961_v57  ;;  %7009 = vmatprep.subr.bf16.mxu1 %v8217_v49  ;;  %v8136_v57 = vcombine.low %v488_v33, %v496_v35  ;;  %v7865_v49 = vcombine.high %v216_v44, %v224_v45  ;;  %v8121_v51 = vcombine.high %v472_v46, %v480_v47  ;;  %v8985_v62 = vld [vmem:[#allocation7] sm:$0xff] }
 0x24b   :  { %v8120_v63 = vcombine.low %v472_v46, %v480_v47  ;;  %v1115_v17 = vrot.slane %v8985_v62, %v1114_v50  ;;  %v960_v5 = vld [vmem:[#allocation5 + $0x1be0] sm:$0xff] }
 0x24c   :  { %v688_v14 = vld [vmem:[#allocation5 + $0x1360] sm:$0xff] }
 0x24d   :  { %6969 = vmatpush2.bf16.msra.mxu0 %v7960_v54  ;;  %7010 = vmatpush2.bf16.msra.mxu1 %v8216_v56  ;;  %v456_v54 = vld [vmem:[#allocation5 + $0xc20] sm:$0xff] }
 0x24e   :  { %6970 = vmatprep.subr.bf16.mxu0 %v7945_v60  ;;  %7011 = vmatprep.subr.bf16.mxu1 %v8201_v61  ;;  %v464_v56 = vld [vmem:[#allocation5 + $0xc60] sm:$0xff]  ;;  %v1118_v60 = vsub.s32 5, %v8923_v10  ;;  %v7864_v61 = vcombine.low %v216_v44, %v224_v45 }
 0x24f   :  { %v8104_v8 = vcombine.low %v456_v54, %v464_v56  ;;  %v936_v15 = vld [vmem:[#allocation5 + $0x1b20] sm:$0xff] }
 0x250   :  { %v1119_v6 = vrot.slane %v8985_v62, %v1118_v60  ;;  %v944_v26 = vld [vmem:[#allocation5 + $0x1b60] sm:$0xff] }
 0x251   :  { %6971 = vmatpush2.bf16.msra.mxu0 %v7944_v1  ;;  %7012 = vmatpush2.bf16.msra.mxu1 %v8200_v3  ;;  %v8105_v1 = vcombine.high %v456_v54, %v464_v56  ;;  %v696_v3 = vld [vmem:[#allocation5 + $0x13a0] sm:$0xff]  ;;  %v8585_v29 = vcombine.high %v936_v15, %v944_v26 }
 0x252   :  { %6972 = vmatprep.subr.bf16.mxu0 %v7929_v4  ;;  %7013 = vmatprep.subr.bf16.mxu1 %v8185_v23  ;;  %v704_v4 = vld [vmem:[#allocation5 + $0x13e0] sm:$0xff]  ;;  %v6661_v18 = vadd.f32 %v8977_v42, %v1119_v6 }
 0x253   :  { %v952_v23 = vld [vmem:[#allocation5 + $0x1ba0] sm:$0xff] }
 0x254   :  { %v664_v32 = vld [vmem:[#allocation5 + $0x12a0] sm:$0xff] }
 0x255   :  { %6973 = vmatpush2.bf16.msra.mxu0 %v7928_v9  ;;  %7014 = vmatpush2.bf16.msra.mxu1 %v8184_v11  ;;  %v8345_v9 = vcombine.high %v696_v3, %v704_v4  ;;  %v6659_v11 = vadd.f32 %v8971_v37, %v1115_v17  ;;  %v672_v37 = vld [vmem:[#allocation5 + $0x12e0] sm:$0xff] }
 0x256   :  { %6974 = vmatprep.subr.bf16.mxu0 %v7913_v12  ;;  %7015 = vmatprep.subr.bf16.mxu1 %v8169_v13  ;;  %v8601_v12 = vcombine.high %v952_v23, %v960_v5  ;;  %v680_v13 = vld [vmem:[#allocation5 + $0x1320] sm:$0xff]  ;;  %v8313_v45 = vcombine.high %v664_v32, %v672_v37 }
 0x257   :  { %v920_v35 = vld [vmem:[#allocation5 + $0x1aa0] sm:$0xff] }
 0x258   :  { %v904_v55 = vld [vmem:[#allocation5 + $0x1a20] sm:$0xff] }
 0x259   :  { %6975 = vmatpush2.bf16.msra.mxu0 %v7912_v19  ;;  %7016 = vmatpush2.bf16.msra.mxu1 %v8168_v22  ;;  %v8344_v19 = vcombine.low %v696_v3, %v704_v4  ;;  %v8600_v22 = vcombine.low %v952_v23, %v960_v5  ;;  %v912_v53 = vld [vmem:[#allocation5 + $0x1a60] sm:$0xff] }
 0x25a   :  { %6976 = vmatprep.subr.bf16.mxu0 %v7897_v25  ;;  %7017 = vmatprep.subr.bf16.mxu1 %v8153_v27  ;;  %v8329_v25 = vcombine.high %v680_v13, %v688_v14  ;;  %v6700_v27 = vadd.f32 %v8974_v30, %v6659_v11  ;;  %v8584_v30 = vcombine.low %v936_v15, %v944_v26  ;;  %v632_v5 = vld [vmem:[#allocation5 + $0x11a0] sm:$0xff] }
 0x25b   :  { %v8553_v23 = vcombine.high %v904_v55, %v912_v53  ;;  %v640_v6 = vld [vmem:[#allocation5 + $0x11e0] sm:$0xff] }
 0x25c   :  { %v616_v15 = vld [vmem:[#allocation5 + $0x1120] sm:$0xff] }
 0x25d   :  { %6977 = vmatpush2.bf16.msra.mxu0 %v7896_v38  ;;  %7018 = vmatpush2.bf16.msra.mxu1 %v8152_v40  ;;  %v928_v38 = vld [vmem:[#allocation5 + $0x1ae0] sm:$0xff]  ;;  %v6702_v40 = vadd.f32 %v8979_v52, %v6661_v18 }
 0x25e   :  { %6978 = vmatprep.subr.bf16.mxu0 %v7881_v41  ;;  %7019 = vmatprep.subr.bf16.mxu1 %v8137_v43  ;;  %v8328_v43 = vcombine.low %v680_v13, %v688_v14  ;;  %v8281_v13 = vcombine.high %v632_v5, %v640_v6  ;;  %v624_v26 = vld [vmem:[#allocation5 + $0x1160] sm:$0xff] }
 0x25f   :  { %v872_v18 = vld [vmem:[#allocation5 + $0x1920] sm:$0xff] }
 0x261   :  { %6979 = vmatpush2.bf16.msra.mxu0 %v7880_v48  ;;  %7020 = vmatpush2.bf16.msra.mxu1 %v8136_v57  ;;  %v8569_v57 = vcombine.high %v920_v35, %v928_v38 }
 0x262   :  { %6980 = vmatprep.subr.bf16.mxu0 %v7865_v49  ;;  %7021 = vmatprep.subr.bf16.mxu1 %v8121_v51  ;;  %v648_v49 = vld [vmem:[#allocation5 + $0x1220] sm:$0xff] }
 0x263   :  { %v656_v51 = vld [vmem:[#allocation5 + $0x1260] sm:$0xff] }
 0x264   :  { %v8297_v17 = vcombine.high %v648_v49, %v656_v51  ;;  %v8296_v11 = vcombine.low %v648_v49, %v656_v51  ;;  %v824_v49 = vld [vmem:[#allocation5 + $0x17a0] sm:$0xff] }
 0x265   :  { %6981 = vmatpush2.bf16.msra.mxu0 %v7864_v61  ;;  %7022 = vmatpush2.bf16.msra.mxu1 %v8120_v63  ;;  %v8312_v61 = vcombine.low %v664_v32, %v672_v37  ;;  %v600_v32 = vld [vmem:[#allocation5 + $0x10a0] sm:$0xff] }
 0x266   :  { %6982 = vmatprep.subr.bf16.mxu0 %v7849_v0  ;;  %7023 = vmatprep.subr.bf16.mxu1 %v8105_v1  ;;  %v8568_v0 = vcombine.low %v920_v35, %v928_v38  ;;  %v608_v37 = vld [vmem:[#allocation5 + $0x10e0] sm:$0xff]  ;;  %v8264_v38 = vcombine.low %v616_v15, %v624_v26 }
 0x267   :  { %v864_v35 = vld [vmem:[#allocation5 + $0x18e0] sm:$0xff] }
 0x268   :  { %v832_v51 = vld [vmem:[#allocation5 + $0x17e0] sm:$0xff] }
 0x269   :  { %6983 = vmatpush2.bf16.msra.mxu0 %v7848_v21  ;;  %7024 = vmatpush2.bf16.msra.mxu1 %v8104_v8  ;;  %v888_v21 = vld [vmem:[#allocation5 + $0x19a0] sm:$0xff] }
 0x26a   :  { %7034 = vmatprep.subr.bf16.mxu0 %v8345_v9  ;;  %7075 = vmatprep.subr.bf16.mxu1 %v8601_v12  ;;  %v896_v8 = vld [vmem:[#allocation5 + $0x19e0] sm:$0xff]  ;;  %v8552_v12 = vcombine.low %v904_v55, %v912_v53 }
 0x26b   :  { %v8537_v14 = vcombine.high %v888_v21, %v896_v8  ;;  %v1088_v55 = vld [vmem:[#allocation5 + $0x1fe0] sm:$0xff] }
 0x26c   :  { %v6740_v33 = vpop.f32.mrf.mxu0  ;;  %6985 = vmatmul.mubr.bf16.vlgmr.msra.gmra.mxu0 %v8887_v16  ;;  %v6781_v41 = vpop.f32.mrf.mxu1  ;;  %7026 = vmatmul.mubr.bf16.vlgmr.msra.gmra.mxu1 %v8889_v20 }
 0x26d   :  { %v6741_v42 = vadd.f32 %v6740_v33, %v6700_v27  ;;  %7035 = vmatpush1.bf16.msra.mxu0 %v8344_v19  ;;  %7076 = vmatpush1.bf16.msra.mxu1 %v8600_v22  ;;  %v880_v19 = vld [vmem:[#allocation5 + $0x1960] sm:$0xff]  ;;  %v8280_v22 = vcombine.low %v632_v5, %v640_v6  ;;  %v8265_v27 = vcombine.high %v616_v15, %v624_v26 }
 0x26e   :  { %v6742_v44 = vpop.f32.mrf.mxu0  ;;  %7036 = vmatprep.subr.bf16.mxu0 %v8329_v25  ;;  %v6783_v48 = vpop.f32.mrf.mxu1  ;;  %7077 = vmatprep.subr.bf16.mxu1 %v8585_v29  ;;  %v8536_v25 = vcombine.low %v888_v21, %v896_v8  ;;  %v8521_v29 = vcombine.high %v872_v18, %v880_v19  ;;  %v856_v33 = vld [vmem:[#allocation5 + $0x18a0] sm:$0xff] }
 0x26f   :  { %v6782_v46 = vadd.f32 %v6781_v41, %v6741_v42  ;;  %v6743_v47 = vadd.f32 %v6742_v44, %v6702_v40  ;;  %7066 = vmatprep.mubr.bf16.mxu0 %v8891_v28  ;;  %7107 = vmatprep.mubr.bf16.mxu1 %v8894_v31  ;;  %v8520_v40 = vcombine.low %v872_v18, %v880_v19  ;;  %v592_v44 = vld [vmem:[#allocation5 + $0x1060] sm:$0xff] }
 0x270   :  { %v6744_v52 = vpop.f32.mrf.mxu0  ;;  %v6785_v56 = vpop.f32.mrf.mxu1  ;;  %v8249_v42 = vcombine.high %v600_v32, %v608_v37  ;;  %v8505_v41 = vcombine.high %v856_v33, %v864_v35  ;;  %v792_v6 = vld [vmem:[#allocation5 + $0x16a0] sm:$0xff] }
 0x271   :  { %v6784_v54 = vadd.f32 %v6783_v48, %v6743_v47  ;;  %7037 = vmatpush1.bf16.msra.mxu0 %v8328_v43  ;;  %7078 = vmatpush1.bf16.msra.mxu1 %v8584_v30  ;;  %v7612_v1 = vmax.f32 %v6782_v46, 0.0  ;;  %v584_v43 = vld [vmem:[#allocation5 + $0x1020] sm:$0xff]  ;;  %v8248_v46 = vcombine.low %v600_v32, %v608_v37  ;;  %v8504_v47 = vcombine.low %v856_v33, %v864_v35 }
 0x272   :  { %v6745_v63 = vpop.f32.mrf.mxu0  ;;  %7038 = vmatprep.subr.bf16.mxu0 %v8313_v45  ;;  %v6786_v4 = vpop.f32.mrf.mxu1  ;;  %7079 = vmatprep.subr.bf16.mxu1 %v8569_v57  ;;  %v840_v30 = vld [vmem:[#allocation5 + $0x1820] sm:$0xff]  ;;  %v8233_v48 = vcombine.high %v584_v43, %v592_v44  ;;  %v8232_v53 = vcombine.low %v584_v43, %v592_v44  ;;  %v8473_v56 = vcombine.high %v824_v49, %v832_v51 }
 0x273   :  { %v7613_v3 = vmax.f32 %v6784_v54, 0.0  ;;  %v848_v45 = vld [vmem:[#allocation5 + $0x1860] sm:$0xff] }
 0x274   :  { %v8489_v57 = vcombine.high %v840_v30, %v848_v45  ;;  %v1080_v52 = vld [vmem:[#allocation5 + $0x1fa0] sm:$0xff]  ;;  %v8488_v54 = vcombine.low %v840_v30, %v848_v45 }
 0x275   :  { %v8746_v9 = vpack.c.bf16 %v7613_v3, %v7612_v1  ;;  %7039 = vmatpush1.bf16.msra.mxu0 %v8312_v61  ;;  %7080 = vmatpush1.bf16.msra.mxu1 %v8568_v0  ;;  %v8729_v61 = vcombine.high %v1080_v52, %v1088_v55  ;;  %v808_v63 = vld [vmem:[#allocation5 + $0x1720] sm:$0xff]  ;;  %v8472_v3 = vcombine.low %v824_v49, %v832_v51 }
 0x276   :  { %7040 = vmatprep.subr.bf16.mxu0 %v8297_v17  ;;  %7081 = vmatprep.subr.bf16.mxu1 %v8553_v23  ;;  %v816_v0 = vld [vmem:[#allocation5 + $0x1760] sm:$0xff]  ;;  %v8728_v4 = vcombine.low %v1080_v52, %v1088_v55 }
 0x277   :  { %7690 = vst [vmem:[#allocation8 + $0x10] sm:$0xff] %v8746_v9  ;;  %v1064_v17 = vld [vmem:[#allocation5 + $0x1f20] sm:$0xff]  ;;  %v8457_v23 = vcombine.high %v808_v63, %v816_v0 }
 0x278   :  { %v1072_v1 = vld [vmem:[#allocation5 + $0x1f60] sm:$0xff] }
 0x279   :  { %7041 = vmatpush1.bf16.msra.mxu0 %v8296_v11  ;;  %7082 = vmatpush1.bf16.msra.mxu1 %v8552_v12  ;;  %v8713_v5 = vcombine.high %v1064_v17, %v1072_v1  ;;  %v800_v21 = vld [vmem:[#allocation5 + $0x16e0] sm:$0xff]  ;;  %v8456_v11 = vcombine.low %v808_v63, %v816_v0  ;;  %v8712_v12 = vcombine.low %v1064_v17, %v1072_v1 }
 0x27a   :  { %7042 = vmatprep.subr.bf16.mxu0 %v8281_v13  ;;  %7083 = vmatprep.subr.bf16.mxu1 %v8537_v14  ;;  %v1048_v8 = vld [vmem:[#allocation5 + $0x1ea0] sm:$0xff]  ;;  %v8441_v13 = vcombine.high %v792_v6, %v800_v21 }
 0x27b   :  { %v1056_v9 = vld [vmem:[#allocation5 + $0x1ee0] sm:$0xff] }
 0x27c   :  { %v8697_v14 = vcombine.high %v1048_v8, %v1056_v9  ;;  %v776_v15 = vld [vmem:[#allocation5 + $0x1620] sm:$0xff] }
 0x27d   :  { %7043 = vmatpush1.bf16.msra.mxu0 %v8280_v22  ;;  %7084 = vmatpush1.bf16.msra.mxu1 %v8536_v25  ;;  %v784_v26 = vld [vmem:[#allocation5 + $0x1660] sm:$0xff]  ;;  %v8440_v22 = vcombine.low %v792_v6, %v800_v21  ;;  %v8696_v25 = vcombine.low %v1048_v8, %v1056_v9  ;;  %v185_v6 = vld [vmem:[#allocation5 + $0x3a8] sm:$0xff] }
 0x27e   :  { %7044 = vmatprep.subr.bf16.mxu0 %v8265_v27  ;;  %7085 = vmatprep.subr.bf16.mxu1 %v8521_v29  ;;  %v1032_v18 = vld [vmem:[#allocation5 + $0x1e20] sm:$0xff]  ;;  %v8425_v27 = vcombine.high %v776_v15, %v784_v26  ;;  %v193_v21 = vld [vmem:[#allocation5 + $0x3e8] sm:$0xff] }
 0x27f   :  { %v1040_v19 = vld [vmem:[#allocation5 + $0x1e60] sm:$0xff]  ;;  %v441_v8 = vld [vmem:[#allocation5 + $0xba8] sm:$0xff] }
 0x280   :  { %v8681_v29 = vcombine.high %v1032_v18, %v1040_v19  ;;  %v760_v32 = vld [vmem:[#allocation5 + $0x15a0] sm:$0xff]  ;;  %v449_v9 = vld [vmem:[#allocation5 + $0xbe8] sm:$0xff] }
 0x281   :  { %7045 = vmatpush1.bf16.msra.mxu0 %v8264_v38  ;;  %7086 = vmatpush1.bf16.msra.mxu1 %v8520_v40  ;;  %v768_v37 = vld [vmem:[#allocation5 + $0x15e0] sm:$0xff]  ;;  %v8424_v38 = vcombine.low %v776_v15, %v784_v26  ;;  %v8680_v40 = vcombine.low %v1032_v18, %v1040_v19  ;;  %v169_v15 = vld [vmem:[#allocation5 + $0x328] sm:$0xff] }
 0x282   :  { %7046 = vmatprep.subr.bf16.mxu0 %v8249_v42  ;;  %7087 = vmatprep.subr.bf16.mxu1 %v8505_v41  ;;  %v1016_v33 = vld [vmem:[#allocation5 + $0x1da0] sm:$0xff]  ;;  %v8409_v42 = vcombine.high %v760_v32, %v768_v37  ;;  %v177_v26 = vld [vmem:[#allocation5 + $0x368] sm:$0xff] }
 0x283   :  { %v1024_v35 = vld [vmem:[#allocation5 + $0x1de0] sm:$0xff]  ;;  %v425_v18 = vld [vmem:[#allocation5 + $0xb28] sm:$0xff] }
 0x284   :  { %v8665_v41 = vcombine.high %v1016_v33, %v1024_v35  ;;  %v744_v43 = vld [vmem:[#allocation5 + $0x1520] sm:$0xff]  ;;  %v433_v19 = vld [vmem:[#allocation5 + $0xb68] sm:$0xff] }
 0x285   :  { %7047 = vmatpush1.bf16.msra.mxu0 %v8248_v46  ;;  %7088 = vmatpush1.bf16.msra.mxu1 %v8504_v47  ;;  %v752_v44 = vld [vmem:[#allocation5 + $0x1560] sm:$0xff]  ;;  %v8408_v46 = vcombine.low %v760_v32, %v768_v37  ;;  %v8664_v47 = vcombine.low %v1016_v33, %v1024_v35  ;;  %v153_v32 = vld [vmem:[#allocation5 + $0x2a8] sm:$0xff] }
 0x286   :  { %7048 = vmatprep.subr.bf16.mxu0 %v8233_v48  ;;  %7089 = vmatprep.subr.bf16.mxu1 %v8489_v57  ;;  %v1000_v30 = vld [vmem:[#allocation5 + $0x1d20] sm:$0xff]  ;;  %v8393_v48 = vcombine.high %v744_v43, %v752_v44  ;;  %v161_v37 = vld [vmem:[#allocation5 + $0x2e8] sm:$0xff] }
 0x287   :  { %v1008_v45 = vld [vmem:[#allocation5 + $0x1d60] sm:$0xff]  ;;  %v409_v35 = vld [vmem:[#allocation5 + $0xaa8] sm:$0xff] }
 0x288   :  { %v8649_v57 = vcombine.high %v1000_v30, %v1008_v45  ;;  %v728_v49 = vld [vmem:[#allocation5 + $0x14a0] sm:$0xff] }
 0x289   :  { %7049 = vmatpush1.bf16.msra.mxu0 %v8232_v53  ;;  %7090 = vmatpush1.bf16.msra.mxu1 %v8488_v54  ;;  %v736_v51 = vld [vmem:[#allocation5 + $0x14e0] sm:$0xff]  ;;  %v8392_v53 = vcombine.low %v744_v43, %v752_v44  ;;  %v8648_v54 = vcombine.low %v1000_v30, %v1008_v45  ;;  %v8074_v43 = vcombine.low %v425_v18, %v433_v19 }
 0x28a   :  { %7050 = vmatprep.subr.bf16.mxu0 %v8473_v56  ;;  %7091 = vmatprep.subr.bf16.mxu1 %v8729_v61  ;;  %v984_v52 = vld [vmem:[#allocation5 + $0x1ca0] sm:$0xff]  ;;  %v8377_v56 = vcombine.high %v728_v49, %v736_v51  ;;  %v7803_v44 = vcombine.high %v153_v32, %v161_v37 }
 0x28b   :  { %v992_v55 = vld [vmem:[#allocation5 + $0x1ce0] sm:$0xff] }
 0x28c   :  { %v8633_v61 = vcombine.high %v984_v52, %v992_v55  ;;  %v712_v63 = vld [vmem:[#allocation5 + $0x1420] sm:$0xff] }
 0x28d   :  { %7051 = vmatpush2.bf16.msra.mxu0 %v8472_v3  ;;  %7092 = vmatpush2.bf16.msra.mxu1 %v8728_v4  ;;  %v720_v0 = vld [vmem:[#allocation5 + $0x1460] sm:$0xff]  ;;  %v8376_v3 = vcombine.low %v728_v49, %v736_v51  ;;  %v8632_v4 = vcombine.low %v984_v52, %v992_v55  ;;  %v401_v49 = vld [vmem:[#allocation5 + $0xa68] sm:$0xff]  ;;  %v7802_v52 = vcombine.low %v153_v32, %v161_v37 }
 0x28e   :  { %7052 = vmatprep.subr.bf16.mxu0 %v8457_v23  ;;  %7093 = vmatprep.subr.bf16.mxu1 %v8713_v5  ;;  %v968_v17 = vld [vmem:[#allocation5 + $0x1c20] sm:$0xff]  ;;  %v8361_v23 = vcombine.high %v712_v63, %v720_v0  ;;  %v73_v32 = vld [vmem:[#allocation5 + $0x28] sm:$0xff] }
 0x28f   :  { %v976_v1 = vld [vmem:[#allocation5 + $0x1c60] sm:$0xff]  ;;  %v81_v37 = vld [vmem:[#allocation5 + $0x68] sm:$0xff] }
 0x290   :  { %v8617_v5 = vcombine.high %v968_v17, %v976_v1 }
 0x291   :  { %7053 = vmatpush2.bf16.msra.mxu0 %v8456_v11  ;;  %7094 = vmatpush2.bf16.msra.mxu1 %v8712_v12  ;;  %v8360_v11 = vcombine.low %v712_v63, %v720_v0  ;;  %v8616_v12 = vcombine.low %v968_v17, %v976_v1  ;;  %v121_v63 = vld [vmem:[#allocation5 + $0x1a8] sm:$0xff] }
 0x292   :  { %7054 = vmatprep.subr.bf16.mxu0 %v8441_v13  ;;  %7095 = vmatprep.subr.bf16.mxu1 %v8697_v14  ;;  %v7835_v13 = vcombine.high %v185_v6, %v193_v21  ;;  %v8091_v14 = vcombine.high %v441_v8, %v449_v9  ;;  %v129_v0 = vld [vmem:[#allocation5 + $0x1e8] sm:$0xff] }
 0x293   :  { %v377_v17 = vld [vmem:[#allocation5 + $0x9a8] sm:$0xff] }
 0x294   :  { %v385_v1 = vld [vmem:[#allocation5 + $0x9e8] sm:$0xff] }
 0x295   :  { %7055 = vmatpush2.bf16.msra.mxu0 %v8440_v22  ;;  %7096 = vmatpush2.bf16.msra.mxu1 %v8696_v25  ;;  %v7834_v22 = vcombine.low %v185_v6, %v193_v21  ;;  %v8090_v25 = vcombine.low %v441_v8, %v449_v9  ;;  %v105_v6 = vld [vmem:[#allocation5 + $0x128] sm:$0xff] }
 0x296   :  { %7056 = vmatprep.subr.bf16.mxu0 %v8425_v27  ;;  %7097 = vmatprep.subr.bf16.mxu1 %v8681_v29  ;;  %v7819_v27 = vcombine.high %v169_v15, %v177_v26  ;;  %v8075_v29 = vcombine.high %v425_v18, %v433_v19  ;;  %v113_v21 = vld [vmem:[#allocation5 + $0x168] sm:$0xff] }
 0x297   :  { %v361_v8 = vld [vmem:[#allocation5 + $0x928] sm:$0xff] }
 0x298   :  { %v369_v9 = vld [vmem:[#allocation5 + $0x968] sm:$0xff] }
 0x299   :  { %7057 = vmatpush2.bf16.msra.mxu0 %v8424_v38  ;;  %7098 = vmatpush2.bf16.msra.mxu1 %v8680_v40  ;;  %v417_v38 = vld [vmem:[#allocation5 + $0xae8] sm:$0xff] }
 0x29a   :  { %7058 = vmatprep.subr.bf16.mxu0 %v8409_v42  ;;  %7099 = vmatprep.subr.bf16.mxu1 %v8665_v41  ;;  %v7818_v42 = vcombine.low %v169_v15, %v177_v26  ;;  %v8059_v45 = vcombine.high %v409_v35, %v417_v38  ;;  %v89_v15 = vld [vmem:[#allocation5 + $0xa8] sm:$0xff] }
 0x29b   :  { %v97_v26 = vld [vmem:[#allocation5 + $0xe8] sm:$0xff] }
 0x29c   :  { %v345_v18 = vld [vmem:[#allocation5 + $0x8a8] sm:$0xff] }
 0x29d   :  { %7059 = vmatpush2.bf16.msra.mxu0 %v8408_v46  ;;  %7100 = vmatpush2.bf16.msra.mxu1 %v8664_v47  ;;  %v137_v46 = vld [vmem:[#allocation5 + $0x228] sm:$0xff] }
 0x29e   :  { %7060 = vmatprep.subr.bf16.mxu0 %v8393_v48  ;;  %7101 = vmatprep.subr.bf16.mxu1 %v8649_v57  ;;  %v145_v47 = vld [vmem:[#allocation5 + $0x268] sm:$0xff] }
 0x29f   :  { %v393_v57 = vld [vmem:[#allocation5 + $0xa28] sm:$0xff] }
 0x2a0   :  { %v353_v19 = vld [vmem:[#allocation5 + $0x8e8] sm:$0xff] }
 0x2a1   :  { %7061 = vmatpush2.bf16.msra.mxu0 %v8392_v53  ;;  %7102 = vmatpush2.bf16.msra.mxu1 %v8648_v54  ;;  %v8058_v53 = vcombine.low %v409_v35, %v417_v38  ;;  %v7787_v54 = vcombine.high %v137_v46, %v145_v47  ;;  %v329_v35 = vld [vmem:[#allocation5 + $0x828] sm:$0xff] }
 0x2a2   :  { %7062 = vmatprep.subr.bf16.mxu0 %v8377_v56  ;;  %7103 = vmatprep.subr.bf16.mxu1 %v8633_v61  ;;  %v8043_v61 = vcombine.high %v393_v57, %v401_v49  ;;  %v337_v38 = vld [vmem:[#allocation5 + $0x868] sm:$0xff] }
 0x2a5   :  { %7063 = vmatpush2.bf16.msra.mxu0 %v8376_v3  ;;  %7104 = vmatpush2.bf16.msra.mxu1 %v8632_v4  ;;  %v7786_v3 = vcombine.low %v137_v46, %v145_v47  ;;  %v8042_v4 = vcombine.low %v393_v57, %v401_v49  ;;  %v313_v46 = vld [vmem:[#allocation5 + $0x7a8] sm:$0xff]  ;;  %v7722_v49 = vcombine.low %v73_v32, %v81_v37 }
 0x2a6   :  { %7064 = vmatprep.subr.bf16.mxu0 %v8361_v23  ;;  %7105 = vmatprep.subr.bf16.mxu1 %v8617_v5  ;;  %v7771_v23 = vcombine.high %v121_v63, %v129_v0  ;;  %v8027_v5 = vcombine.high %v377_v17, %v385_v1  ;;  %v321_v47 = vld [vmem:[#allocation5 + $0x7e8] sm:$0xff] }
 0x2a7   :  { %v577_v57 = vld [vmem:[#allocation5 + $0xfe8] sm:$0xff] }
 0x2a9   :  { %7065 = vmatpush2.bf16.msra.mxu0 %v8360_v11  ;;  %7106 = vmatpush2.bf16.msra.mxu1 %v8616_v12  ;;  %v7770_v11 = vcombine.low %v121_v63, %v129_v0  ;;  %v8026_v12 = vcombine.low %v377_v17, %v385_v1  ;;  %v7962_v63 = vcombine.low %v313_v46, %v321_v47 }
 0x2aa   :  { %7116 = vmatprep.subr.bf16.mxu0 %v7835_v13  ;;  %7157 = vmatprep.subr.bf16.mxu1 %v8091_v14  ;;  %v7755_v13 = vcombine.high %v105_v6, %v113_v21  ;;  %v8011_v14 = vcombine.high %v361_v8, %v369_v9 }
 0x2ac   :  { %v9001_v33 = vpop.f32.mrf.mxu0  ;;  %7067 = vmatmul.mubr.bf16.vlgmr.msra.gmra.mxu0 %v8899_v36  ;;  %v9004_v40 = vpop.f32.mrf.mxu1  ;;  %7108 = vmatmul.mubr.bf16.vlgmr.msra.gmra.mxu1 %v8901_v39 }
 0x2ad   :  { %7117 = vmatpush1.bf16.msra.mxu0 %v7834_v22  ;;  %7158 = vmatpush1.bf16.msra.mxu1 %v8090_v25  ;;  %v7754_v22 = vcombine.low %v105_v6, %v113_v21  ;;  %v8010_v25 = vcombine.low %v361_v8, %v369_v9 }
 0x2ae   :  { %v9007_v41 = vpop.f32.mrf.mxu0  ;;  %7118 = vmatprep.subr.bf16.mxu0 %v7819_v27  ;;  %v9009_v30 = vpop.f32.mrf.mxu1  ;;  %7159 = vmatprep.subr.bf16.mxu1 %v8075_v29  ;;  %v7739_v27 = vcombine.high %v89_v15, %v97_v26  ;;  %v7995_v29 = vcombine.high %v345_v18, %v353_v19 }
 0x2af   :  { %7148 = vmatprep.mubr.bf16.mxu0 %v8881_v58  ;;  %7189 = vmatprep.mubr.bf16.mxu1 %v8883_v59 }
 0x2b0   :  { %v6826_v48 = vpop.f32.mrf.mxu0  ;;  %v6867_v51 = vpop.f32.mrf.mxu1 }
 0x2b1   :  { %7119 = vmatpush1.bf16.msra.mxu0 %v7818_v42  ;;  %7160 = vmatpush1.bf16.msra.mxu1 %v8074_v43  ;;  %v7738_v42 = vcombine.low %v89_v15, %v97_v26  ;;  %v7994_v43 = vcombine.low %v345_v18, %v353_v19  ;;  %v569_v48 = vld [vmem:[#allocation5 + $0xfa8] sm:$0xff]  ;;  %v7978_v51 = vcombine.low %v329_v35, %v337_v38 }
 0x2b2   :  { %v6827_v55 = vpop.f32.mrf.mxu0  ;;  %7120 = vmatprep.subr.bf16.mxu0 %v7803_v44  ;;  %v6868_v56 = vpop.f32.mrf.mxu1  ;;  %7161 = vmatprep.subr.bf16.mxu1 %v8059_v45  ;;  %v7723_v44 = vcombine.high %v73_v32, %v81_v37  ;;  %v7979_v45 = vcombine.high %v329_v35, %v337_v38  ;;  %v8218_v0 = vcombine.low %v569_v48, %v577_v57 }
 0x2b3   :  { %v8219_v55 = vcombine.high %v569_v48, %v577_v57  ;;  %v553_v56 = vld [vmem:[#allocation5 + $0xf28] sm:$0xff] }
 0x2b5   :  { %7121 = vmatpush1.bf16.msra.mxu0 %v7802_v52  ;;  %7162 = vmatpush1.bf16.msra.mxu1 %v8058_v53  ;;  %v7963_v52 = vcombine.high %v313_v46, %v321_v47  ;;  %v297_v53 = vld [vmem:[#allocation5 + $0x728] sm:$0xff] }
 0x2b6   :  { %7122 = vmatprep.subr.bf16.mxu0 %v7787_v54  ;;  %7163 = vmatprep.subr.bf16.mxu1 %v8043_v61  ;;  %v305_v54 = vld [vmem:[#allocation5 + $0x768] sm:$0xff] }
 0x2b7   :  { %v561_v61 = vld [vmem:[#allocation5 + $0xf68] sm:$0xff]  ;;  %v7947_v17 = vcombine.high %v297_v53, %v305_v54  ;;  %v7946_v6 = vcombine.low %v297_v53, %v305_v54 }
 0x2b8   :  { %v8203_v1 = vcombine.high %v553_v56, %v561_v61  ;;  %v8202_v21 = vcombine.low %v553_v56, %v561_v61  ;;  %v1122_v61 = vsub.s32 6, %v8923_v10 }
 0x2b9   :  { %7123 = vmatpush1.bf16.msra.mxu0 %v7786_v3  ;;  %7164 = vmatpush1.bf16.msra.mxu1 %v8042_v4  ;;  %v281_v3 = vld [vmem:[#allocation5 + $0x6a8] sm:$0xff] }
 0x2ba   :  { %7124 = vmatprep.subr.bf16.mxu0 %v7771_v23  ;;  %7165 = vmatprep.subr.bf16.mxu1 %v8027_v5  ;;  %v289_v4 = vld [vmem:[#allocation5 + $0x6e8] sm:$0xff] }
 0x2bb   :  { %v537_v23 = vld [vmem:[#allocation5 + $0xea8] sm:$0xff]  ;;  %v7931_v8 = vcombine.high %v281_v3, %v289_v4  ;;  %v7930_v15 = vcombine.low %v281_v3, %v289_v4  ;;  %v1126_v4 = vsub.s32 7, %v8923_v10 }
 0x2bc   :  { %v545_v5 = vld [vmem:[#allocation5 + $0xee8] sm:$0xff] }
 0x2bd   :  { %7125 = vmatpush1.bf16.msra.mxu0 %v7770_v11  ;;  %7166 = vmatpush1.bf16.msra.mxu1 %v8026_v12  ;;  %v8187_v9 = vcombine.high %v537_v23, %v545_v5  ;;  %v265_v11 = vld [vmem:[#allocation5 + $0x628] sm:$0xff]  ;;  %v8186_v26 = vcombine.low %v537_v23, %v545_v5 }
 0x2be   :  { %7126 = vmatprep.subr.bf16.mxu0 %v7755_v13  ;;  %7167 = vmatprep.subr.bf16.mxu1 %v8011_v14  ;;  %v273_v12 = vld [vmem:[#allocation5 + $0x668] sm:$0xff] }
 0x2bf   :  { %v521_v13 = vld [vmem:[#allocation5 + $0xe28] sm:$0xff]  ;;  %v7915_v18 = vcombine.high %v265_v11, %v273_v12  ;;  %v7914_v32 = vcombine.low %v265_v11, %v273_v12 }
 0x2c0   :  { %v529_v14 = vld [vmem:[#allocation5 + $0xe68] sm:$0xff] }
 0x2c1   :  { %7127 = vmatpush1.bf16.msra.mxu0 %v7754_v22  ;;  %7168 = vmatpush1.bf16.msra.mxu1 %v8010_v25  ;;  %v8171_v19 = vcombine.high %v521_v13, %v529_v14  ;;  %v249_v22 = vld [vmem:[#allocation5 + $0x5a8] sm:$0xff]  ;;  %v8170_v37 = vcombine.low %v521_v13, %v529_v14  ;;  %v1127_v14 = vrot.slane %v8985_v62, %v1126_v4 }
 0x2c2   :  { %7128 = vmatprep.subr.bf16.mxu0 %v7739_v27  ;;  %7169 = vmatprep.subr.bf16.mxu1 %v7995_v29  ;;  %v257_v25 = vld [vmem:[#allocation5 + $0x5e8] sm:$0xff] }
 0x2c3   :  { %v505_v27 = vld [vmem:[#allocation5 + $0xda8] sm:$0xff]  ;;  %v7899_v35 = vcombine.high %v249_v22, %v257_v25  ;;  %v7898_v46 = vcombine.low %v249_v22, %v257_v25 }
 0x2c4   :  { %v513_v29 = vld [vmem:[#allocation5 + $0xde8] sm:$0xff] }
 0x2c5   :  { %7129 = vmatpush1.bf16.msra.mxu0 %v7738_v42  ;;  %7170 = vmatpush1.bf16.msra.mxu1 %v7994_v43  ;;  %v8155_v38 = vcombine.high %v505_v27, %v513_v29  ;;  %v233_v42 = vld [vmem:[#allocation5 + $0x528] sm:$0xff]  ;;  %v8154_v47 = vcombine.low %v505_v27, %v513_v29 }
 0x2c6   :  { %7130 = vmatprep.subr.bf16.mxu0 %v7723_v44  ;;  %7171 = vmatprep.subr.bf16.mxu1 %v7979_v45  ;;  %v241_v43 = vld [vmem:[#allocation5 + $0x568] sm:$0xff] }
 0x2c7   :  { %v489_v44 = vld [vmem:[#allocation5 + $0xd28] sm:$0xff]  ;;  %v7883_v48 = vcombine.high %v233_v42, %v241_v43  ;;  %v7882_v53 = vcombine.low %v233_v42, %v241_v43 }
 0x2c8   :  { %v497_v45 = vld [vmem:[#allocation5 + $0xd68] sm:$0xff] }
 0x2c9   :  { %7131 = vmatpush1.bf16.msra.mxu0 %v7722_v49  ;;  %7172 = vmatpush1.bf16.msra.mxu1 %v7978_v51  ;;  %v8139_v57 = vcombine.high %v489_v44, %v497_v45  ;;  %v217_v49 = vld [vmem:[#allocation5 + $0x4a8] sm:$0xff]  ;;  %v8138_v54 = vcombine.low %v489_v44, %v497_v45 }
 0x2ca   :  { %7132 = vmatprep.subr.bf16.mxu0 %v7963_v52  ;;  %7173 = vmatprep.subr.bf16.mxu1 %v8219_v55  ;;  %v225_v51 = vld [vmem:[#allocation5 + $0x4e8] sm:$0xff] }
 0x2cb   :  { %v473_v52 = vld [vmem:[#allocation5 + $0xca8] sm:$0xff]  ;;  %v7867_v56 = vcombine.high %v217_v49, %v225_v51  ;;  %v7866_v23 = vcombine.low %v217_v49, %v225_v51 }
 0x2cc   :  { %v481_v55 = vld [vmem:[#allocation5 + $0xce8] sm:$0xff] }
 0x2cd   :  { %7133 = vmatpush2.bf16.msra.mxu0 %v7962_v63  ;;  %7174 = vmatpush2.bf16.msra.mxu1 %v8218_v0  ;;  %v8123_v63 = vcombine.high %v473_v52, %v481_v55  ;;  %v201_v0 = vld [vmem:[#allocation5 + $0x428] sm:$0xff]  ;;  %v8122_v5 = vcombine.low %v473_v52, %v481_v55 }
 0x2ce   :  { %7134 = vmatprep.subr.bf16.mxu0 %v7947_v17  ;;  %7175 = vmatprep.subr.bf16.mxu1 %v8203_v1  ;;  %v209_v17 = vld [vmem:[#allocation5 + $0x468] sm:$0xff] }
 0x2cf   :  { %v457_v1 = vld [vmem:[#allocation5 + $0xc28] sm:$0xff] }
 0x2d0   :  { %v465_v3 = vld [vmem:[#allocation5 + $0xc68] sm:$0xff] }
 0x2d1   :  { %7135 = vmatpush2.bf16.msra.mxu0 %v7946_v6  ;;  %7176 = vmatpush2.bf16.msra.mxu1 %v8202_v21  ;;  %v7851_v6 = vcombine.high %v201_v0, %v209_v17  ;;  %v1123_v21 = vrot.slane %v8985_v62, %v1122_v61  ;;  %v705_v11 = vld [vmem:[#allocation5 + $0x13e8] sm:$0xff] }
 0x2d2   :  { %7136 = vmatprep.subr.bf16.mxu0 %v7931_v8  ;;  %7177 = vmatprep.subr.bf16.mxu1 %v8187_v9  ;;  %v8107_v8 = vcombine.high %v457_v1, %v465_v3  ;;  %v697_v9 = vld [vmem:[#allocation5 + $0x13a8] sm:$0xff] }
 0x2d3   :  { %v953_v12 = vld [vmem:[#allocation5 + $0x1ba8] sm:$0xff] }
 0x2d4   :  { %v961_v13 = vld [vmem:[#allocation5 + $0x1be8] sm:$0xff] }
 0x2d5   :  { %7137 = vmatpush2.bf16.msra.mxu0 %v7930_v15  ;;  %7178 = vmatpush2.bf16.msra.mxu1 %v8186_v26  ;;  %v7850_v15 = vcombine.low %v201_v0, %v209_v17  ;;  %v8106_v26 = vcombine.low %v457_v1, %v465_v3  ;;  %v8603_v22 = vcombine.high %v953_v12, %v961_v13  ;;  %v681_v25 = vld [vmem:[#allocation5 + $0x1328] sm:$0xff] }
 0x2d6   :  { %7138 = vmatprep.subr.bf16.mxu0 %v7915_v18  ;;  %7179 = vmatprep.subr.bf16.mxu1 %v8171_v19  ;;  %v8347_v18 = vcombine.high %v697_v9, %v705_v11  ;;  %v6823_v19 = vadd.f32 %v9001_v33, %v1123_v21  ;;  %v689_v27 = vld [vmem:[#allocation5 + $0x1368] sm:$0xff]  ;;  %v8602_v62 = vcombine.low %v953_v12, %v961_v13 }
 0x2d7   :  { %v937_v29 = vld [vmem:[#allocation5 + $0x1b28] sm:$0xff]  ;;  %v8330_v49 = vcombine.low %v681_v25, %v689_v27 }
 0x2d8   :  { %v6864_v42 = vadd.f32 %v9004_v40, %v6823_v19  ;;  %v665_v44 = vld [vmem:[#allocation5 + $0x12a8] sm:$0xff] }
 0x2d9   :  { %7139 = vmatpush2.bf16.msra.mxu0 %v7914_v32  ;;  %7180 = vmatpush2.bf16.msra.mxu1 %v8170_v37  ;;  %v945_v32 = vld [vmem:[#allocation5 + $0x1b68] sm:$0xff]  ;;  %v6825_v37 = vadd.f32 %v9007_v41, %v1127_v14 }
 0x2da   :  { %7140 = vmatprep.subr.bf16.mxu0 %v7899_v35  ;;  %7181 = vmatprep.subr.bf16.mxu1 %v8155_v38  ;;  %v8346_v35 = vcombine.low %v697_v9, %v705_v11  ;;  %v8331_v38 = vcombine.high %v681_v25, %v689_v27  ;;  %v8587_v43 = vcombine.high %v937_v29, %v945_v32  ;;  %v673_v33 = vld [vmem:[#allocation5 + $0x12e8] sm:$0xff] }
 0x2db   :  { %v8586_v40 = vcombine.low %v937_v29, %v945_v32  ;;  %v8315_v52 = vcombine.high %v665_v44, %v673_v33  ;;  %v657_v0 = vld [vmem:[#allocation5 + $0x1268] sm:$0xff] }
 0x2dc   :  { %v905_v17 = vld [vmem:[#allocation5 + $0x1a28] sm:$0xff] }
 0x2dd   :  { %7141 = vmatpush2.bf16.msra.mxu0 %v7898_v46  ;;  %7182 = vmatpush2.bf16.msra.mxu1 %v8154_v47  ;;  %v921_v46 = vld [vmem:[#allocation5 + $0x1aa8] sm:$0xff] }
 0x2de   :  { %7142 = vmatprep.subr.bf16.mxu0 %v7883_v48  ;;  %7183 = vmatprep.subr.bf16.mxu1 %v8139_v57  ;;  %v929_v47 = vld [vmem:[#allocation5 + $0x1ae8] sm:$0xff]  ;;  %v6866_v48 = vadd.f32 %v9009_v30, %v6825_v37 }
 0x2df   :  { %v913_v1 = vld [vmem:[#allocation5 + $0x1a68] sm:$0xff]  ;;  %v8570_v21 = vcombine.low %v921_v46, %v929_v47 }
 0x2e0   :  { %v8555_v13 = vcombine.high %v905_v17, %v913_v1  ;;  %v633_v14 = vld [vmem:[#allocation5 + $0x11a8] sm:$0xff]  ;;  %v8554_v25 = vcombine.low %v905_v17, %v913_v1 }
 0x2e1   :  { %7143 = vmatpush2.bf16.msra.mxu0 %v7882_v53  ;;  %7184 = vmatpush2.bf16.msra.mxu1 %v8138_v54  ;;  %v617_v32 = vld [vmem:[#allocation5 + $0x1128] sm:$0xff] }
 0x2e2   :  { %7144 = vmatprep.subr.bf16.mxu0 %v7867_v56  ;;  %7185 = vmatprep.subr.bf16.mxu1 %v8123_v63  ;;  %v8571_v56 = vcombine.high %v921_v46, %v929_v47  ;;  %v649_v63 = vld [vmem:[#allocation5 + $0x1228] sm:$0xff] }
 0x2e3   :  { %v625_v37 = vld [vmem:[#allocation5 + $0x1168] sm:$0xff] }
 0x2e4   :  { %v857_v46 = vld [vmem:[#allocation5 + $0x18a8] sm:$0xff] }
 0x2e5   :  { %7145 = vmatpush2.bf16.msra.mxu0 %v7866_v23  ;;  %7186 = vmatpush2.bf16.msra.mxu1 %v8122_v5  ;;  %v8314_v5 = vcombine.low %v665_v44, %v673_v33  ;;  %v601_v33 = vld [vmem:[#allocation5 + $0x10a8] sm:$0xff] }
 0x2e6   :  { %7146 = vmatprep.subr.bf16.mxu0 %v7851_v6  ;;  %7187 = vmatprep.subr.bf16.mxu1 %v8107_v8  ;;  %v8299_v8 = vcombine.high %v649_v63, %v657_v0  ;;  %v865_v47 = vld [vmem:[#allocation5 + $0x18e8] sm:$0xff] }
 0x2e7   :  { %v1081_v17 = vld [vmem:[#allocation5 + $0x1fa8] sm:$0xff] }
 0x2e8   :  { %v1089_v1 = vld [vmem:[#allocation5 + $0x1fe8] sm:$0xff] }
 0x2e9   :  { %7147 = vmatpush2.bf16.msra.mxu0 %v7850_v15  ;;  %7188 = vmatpush2.bf16.msra.mxu1 %v8106_v26  ;;  %v641_v15 = vld [vmem:[#allocation5 + $0x11e8] sm:$0xff] }
 0x2ea   :  { %7198 = vmatprep.subr.bf16.mxu0 %v8347_v18  ;;  %7239 = vmatprep.subr.bf16.mxu1 %v8603_v22  ;;  %v889_v26 = vld [vmem:[#allocation5 + $0x19a8] sm:$0xff]  ;;  %v8298_v22 = vcombine.low %v649_v63, %v657_v0  ;;  %v8283_v27 = vcombine.high %v633_v14, %v641_v15 }
 0x2eb   :  { %v897_v18 = vld [vmem:[#allocation5 + $0x19e8] sm:$0xff] }
 0x2ec   :  { %v6904_v45 = vpop.f32.mrf.mxu0  ;;  %7149 = vmatmul.mubr.bf16.vlgmr.msra.gmra.mxu0 %v8887_v16  ;;  %v6945_v57 = vpop.f32.mrf.mxu1  ;;  %7190 = vmatmul.mubr.bf16.vlgmr.msra.gmra.mxu1 %v8889_v20  ;;  %v8539_v29 = vcombine.high %v889_v26, %v897_v18  ;;  %v825_v0 = vld [vmem:[#allocation5 + $0x17a8] sm:$0xff] }
 0x2ed   :  { %v6905_v41 = vadd.f32 %v6904_v45, %v6864_v42  ;;  %7199 = vmatpush1.bf16.msra.mxu0 %v8346_v35  ;;  %7240 = vmatpush1.bf16.msra.mxu1 %v8602_v62  ;;  %v873_v35 = vld [vmem:[#allocation5 + $0x1928] sm:$0xff]  ;;  %v8538_v42 = vcombine.low %v889_v26, %v897_v18 }
 0x2ee   :  { %v6906_v51 = vpop.f32.mrf.mxu0  ;;  %7200 = vmatprep.subr.bf16.mxu0 %v8331_v38  ;;  %v6947_v54 = vpop.f32.mrf.mxu1  ;;  %7241 = vmatprep.subr.bf16.mxu1 %v8587_v43  ;;  %v881_v62 = vld [vmem:[#allocation5 + $0x1968] sm:$0xff]  ;;  %v8282_v38 = vcombine.low %v633_v14, %v641_v15  ;;  %v8267_v43 = vcombine.high %v617_v32, %v625_v37 }
 0x2ef   :  { %v6946_v55 = vadd.f32 %v6945_v57, %v6905_v41  ;;  %v6907_v53 = vadd.f32 %v6906_v51, %v6866_v48  ;;  %7230 = vmatprep.mubr.bf16.mxu0 %v8891_v28  ;;  %7271 = vmatprep.mubr.bf16.mxu1 %v8894_v31  ;;  %v8523_v44 = vcombine.high %v873_v35, %v881_v62  ;;  %v609_v45 = vld [vmem:[#allocation5 + $0x10e8] sm:$0xff] }
 0x2f0   :  { %v6908_v30 = vpop.f32.mrf.mxu0  ;;  %v6949_v23 = vpop.f32.mrf.mxu1  ;;  %v8266_v48 = vcombine.low %v617_v32, %v625_v37  ;;  %v8522_v41 = vcombine.low %v873_v35, %v881_v62  ;;  %v8251_v57 = vcombine.high %v601_v33, %v609_v45  ;;  %v585_v51 = vld [vmem:[#allocation5 + $0x1028] sm:$0xff] }
 0x2f1   :  { %v6948_v3 = vadd.f32 %v6947_v54, %v6907_v53  ;;  %7201 = vmatpush1.bf16.msra.mxu0 %v8330_v49  ;;  %7242 = vmatpush1.bf16.msra.mxu1 %v8586_v40  ;;  %v7614_v9 = vmax.f32 %v6946_v55, 0.0  ;;  %v8507_v49 = vcombine.high %v857_v46, %v865_v47  ;;  %v593_v40 = vld [vmem:[#allocation5 + $0x1068] sm:$0xff]  ;;  %v8250_v53 = vcombine.low %v601_v33, %v609_v45 }
 0x2f2   :  { %v6909_v6 = vpop.f32.mrf.mxu0  ;;  %7202 = vmatprep.subr.bf16.mxu0 %v8315_v52  ;;  %v6950_v12 = vpop.f32.mrf.mxu1  ;;  %7243 = vmatprep.subr.bf16.mxu1 %v8571_v56  ;;  %v841_v52 = vld [vmem:[#allocation5 + $0x1828] sm:$0xff]  ;;  %v8506_v54 = vcombine.low %v857_v46, %v865_v47  ;;  %v8235_v56 = vcombine.high %v585_v51, %v593_v40 }
 0x2f3   :  { %v7615_v11 = vmax.f32 %v6948_v3, 0.0  ;;  %v849_v55 = vld [vmem:[#allocation5 + $0x1868] sm:$0xff]  ;;  %v8234_v3 = vcombine.low %v585_v51, %v593_v40  ;;  %v8731_v6 = vcombine.high %v1081_v17, %v1089_v1 }
 0x2f4   :  { %v8491_v63 = vcombine.high %v841_v52, %v849_v55  ;;  %v833_v30 = vld [vmem:[#allocation5 + $0x17e8] sm:$0xff]  ;;  %v8490_v23 = vcombine.low %v841_v52, %v849_v55 }
 0x2f5   :  { %v8747_v19 = vpack.c.bf16 %v7615_v11, %v7614_v9  ;;  %7203 = vmatpush1.bf16.msra.mxu0 %v8314_v5  ;;  %7244 = vmatpush1.bf16.msra.mxu1 %v8570_v21  ;;  %v8475_v5 = vcombine.high %v825_v0, %v833_v30  ;;  %v809_v21 = vld [vmem:[#allocation5 + $0x1728] sm:$0xff]  ;;  %v8474_v12 = vcombine.low %v825_v0, %v833_v30 }
 0x2f6   :  { %7204 = vmatprep.subr.bf16.mxu0 %v8299_v8  ;;  %7245 = vmatprep.subr.bf16.mxu1 %v8555_v13  ;;  %v817_v8 = vld [vmem:[#allocation5 + $0x1768] sm:$0xff]  ;;  %v8730_v13 = vcombine.low %v1081_v17, %v1089_v1 }
 0x2f7   :  { %7691 = vst [vmem:[#allocation8 + $0x18] sm:$0xff] %v8747_v19  ;;  %v1065_v9 = vld [vmem:[#allocation5 + $0x1f28] sm:$0xff]  ;;  %v8459_v14 = vcombine.high %v809_v21, %v817_v8 }
 0x2f8   :  { %v1073_v11 = vld [vmem:[#allocation5 + $0x1f68] sm:$0xff] }
 0x2f9   :  { %7205 = vmatpush1.bf16.msra.mxu0 %v8298_v22  ;;  %7246 = vmatpush1.bf16.msra.mxu1 %v8554_v25  ;;  %v8715_v15 = vcombine.high %v1065_v9, %v1073_v11  ;;  %v793_v26 = vld [vmem:[#allocation5 + $0x16a8] sm:$0xff]  ;;  %v8458_v25 = vcombine.low %v809_v21, %v817_v8 }
 0x2fa   :  { %7206 = vmatprep.subr.bf16.mxu0 %v8283_v27  ;;  %7247 = vmatprep.subr.bf16.mxu1 %v8539_v29  ;;  %v801_v18 = vld [vmem:[#allocation5 + $0x16e8] sm:$0xff]  ;;  %v8714_v27 = vcombine.low %v1065_v9, %v1073_v11 }
 0x2fb   :  { %v1049_v19 = vld [vmem:[#allocation5 + $0x1ea8] sm:$0xff]  ;;  %v8443_v29 = vcombine.high %v793_v26, %v801_v18 }
 0x2fc   :  { %v1057_v22 = vld [vmem:[#allocation5 + $0x1ee8] sm:$0xff] }
 0x2fd   :  { %7207 = vmatpush1.bf16.msra.mxu0 %v8282_v38  ;;  %7248 = vmatpush1.bf16.msra.mxu1 %v8538_v42  ;;  %v8699_v32 = vcombine.high %v1049_v19, %v1057_v22  ;;  %v777_v37 = vld [vmem:[#allocation5 + $0x1628] sm:$0xff]  ;;  %v8442_v42 = vcombine.low %v793_v26, %v801_v18  ;;  %v186_v18 = vld [vmem:[#allocation5 + $0x3b0] sm:$0xff] }
 0x2fe   :  { %7208 = vmatprep.subr.bf16.mxu0 %v8267_v43  ;;  %7249 = vmatprep.subr.bf16.mxu1 %v8523_v44  ;;  %v785_v35 = vld [vmem:[#allocation5 + $0x1668] sm:$0xff]  ;;  %v8698_v43 = vcombine.low %v1049_v19, %v1057_v22  ;;  %v194_v19 = vld [vmem:[#allocation5 + $0x3f0] sm:$0xff] }
 0x2ff   :  { %v1033_v62 = vld [vmem:[#allocation5 + $0x1e28] sm:$0xff]  ;;  %v8427_v44 = vcombine.high %v777_v37, %v785_v35  ;;  %v442_v22 = vld [vmem:[#allocation5 + $0xbb0] sm:$0xff] }
 0x300   :  { %v1041_v38 = vld [vmem:[#allocation5 + $0x1e68] sm:$0xff] }
 0x301   :  { %7209 = vmatpush1.bf16.msra.mxu0 %v8266_v48  ;;  %7250 = vmatpush1.bf16.msra.mxu1 %v8522_v41  ;;  %v8683_v33 = vcombine.high %v1033_v62, %v1041_v38  ;;  %v761_v45 = vld [vmem:[#allocation5 + $0x15a8] sm:$0xff]  ;;  %v8426_v41 = vcombine.low %v777_v37, %v785_v35  ;;  %v170_v35 = vld [vmem:[#allocation5 + $0x330] sm:$0xff] }
 0x302   :  { %7210 = vmatprep.subr.bf16.mxu0 %v8251_v57  ;;  %7251 = vmatprep.subr.bf16.mxu1 %v8507_v49  ;;  %v769_v46 = vld [vmem:[#allocation5 + $0x15e8] sm:$0xff]  ;;  %v8682_v57 = vcombine.low %v1033_v62, %v1041_v38  ;;  %v178_v62 = vld [vmem:[#allocation5 + $0x370] sm:$0xff] }
 0x303   :  { %v1017_v47 = vld [vmem:[#allocation5 + $0x1da8] sm:$0xff]  ;;  %v8411_v49 = vcombine.high %v761_v45, %v769_v46  ;;  %v426_v38 = vld [vmem:[#allocation5 + $0xb30] sm:$0xff] }
 0x304   :  { %v1025_v48 = vld [vmem:[#allocation5 + $0x1de8] sm:$0xff] }
 0x305   :  { %7211 = vmatpush1.bf16.msra.mxu0 %v8250_v53  ;;  %7252 = vmatpush1.bf16.msra.mxu1 %v8506_v54  ;;  %v8667_v51 = vcombine.high %v1017_v47, %v1025_v48  ;;  %v745_v40 = vld [vmem:[#allocation5 + $0x1528] sm:$0xff]  ;;  %v8410_v54 = vcombine.low %v761_v45, %v769_v46  ;;  %v154_v46 = vld [vmem:[#allocation5 + $0x2b0] sm:$0xff] }
 0x306   :  { %7212 = vmatprep.subr.bf16.mxu0 %v8235_v56  ;;  %7253 = vmatprep.subr.bf16.mxu1 %v8491_v63  ;;  %v753_v52 = vld [vmem:[#allocation5 + $0x1568] sm:$0xff]  ;;  %v8666_v56 = vcombine.low %v1017_v47, %v1025_v48  ;;  %v162_v47 = vld [vmem:[#allocation5 + $0x2f0] sm:$0xff] }
 0x307   :  { %v1001_v55 = vld [vmem:[#allocation5 + $0x1d28] sm:$0xff]  ;;  %v8395_v63 = vcombine.high %v745_v40, %v753_v52 }
 0x308   :  { %v1009_v53 = vld [vmem:[#allocation5 + $0x1d68] sm:$0xff] }
 0x309   :  { %7213 = vmatpush1.bf16.msra.mxu0 %v8234_v3  ;;  %7254 = vmatpush1.bf16.msra.mxu1 %v8490_v23  ;;  %v8651_v0 = vcombine.high %v1001_v55, %v1009_v53  ;;  %v729_v30 = vld [vmem:[#allocation5 + $0x14a8] sm:$0xff]  ;;  %v8394_v23 = vcombine.low %v745_v40, %v753_v52 }
 0x30a   :  { %7214 = vmatprep.subr.bf16.mxu0 %v8475_v5  ;;  %7255 = vmatprep.subr.bf16.mxu1 %v8731_v6  ;;  %v737_v17 = vld [vmem:[#allocation5 + $0x14e8] sm:$0xff]  ;;  %v8650_v5 = vcombine.low %v1001_v55, %v1009_v53  ;;  %v7805_v55 = vcombine.high %v154_v46, %v162_v47 }
 0x30b   :  { %v985_v1 = vld [vmem:[#allocation5 + $0x1ca8] sm:$0xff]  ;;  %v8379_v6 = vcombine.high %v729_v30, %v737_v17 }
 0x30c   :  { %v993_v3 = vld [vmem:[#allocation5 + $0x1ce8] sm:$0xff] }
 0x30d   :  { %7215 = vmatpush2.bf16.msra.mxu0 %v8474_v12  ;;  %7256 = vmatpush2.bf16.msra.mxu1 %v8730_v13  ;;  %v8635_v21 = vcombine.high %v985_v1, %v993_v3  ;;  %v713_v8 = vld [vmem:[#allocation5 + $0x1428] sm:$0xff]  ;;  %v8378_v13 = vcombine.low %v729_v30, %v737_v17  ;;  %v394_v30 = vld [vmem:[#allocation5 + $0xa30] sm:$0xff] }
 0x30e   :  { %7216 = vmatprep.subr.bf16.mxu0 %v8459_v14  ;;  %7257 = vmatprep.subr.bf16.mxu1 %v8715_v15  ;;  %v721_v9 = vld [vmem:[#allocation5 + $0x1468] sm:$0xff]  ;;  %v8634_v14 = vcombine.low %v985_v1, %v993_v3  ;;  %v402_v17 = vld [vmem:[#allocation5 + $0xa70] sm:$0xff]  ;;  %v7804_v3 = vcombine.low %v154_v46, %v162_v47 }
 0x30f   :  { %v969_v11 = vld [vmem:[#allocation5 + $0x1c28] sm:$0xff]  ;;  %v8363_v15 = vcombine.high %v713_v8, %v721_v9  ;;  %v74_v47 = vld [vmem:[#allocation5 + $0x30] sm:$0xff] }
 0x310   :  { %v977_v12 = vld [vmem:[#allocation5 + $0x1c68] sm:$0xff] }
 0x311   :  { %7217 = vmatpush2.bf16.msra.mxu0 %v8458_v25  ;;  %7258 = vmatpush2.bf16.msra.mxu1 %v8714_v27  ;;  %v8619_v26 = vcombine.high %v969_v11, %v977_v12  ;;  %v450_v25 = vld [vmem:[#allocation5 + $0xbf0] sm:$0xff]  ;;  %v8362_v27 = vcombine.low %v713_v8, %v721_v9  ;;  %v8045_v8 = vcombine.high %v394_v30, %v402_v17 }
 0x312   :  { %7218 = vmatprep.subr.bf16.mxu0 %v8443_v29  ;;  %7259 = vmatprep.subr.bf16.mxu1 %v8699_v32  ;;  %v8618_v29 = vcombine.low %v969_v11, %v977_v12  ;;  %v7837_v32 = vcombine.high %v186_v18, %v194_v19  ;;  %v8093_v37 = vcombine.high %v442_v22, %v450_v25  ;;  %v122_v9 = vld [vmem:[#allocation5 + $0x1b0] sm:$0xff] }
 0x313   :  { %v130_v11 = vld [vmem:[#allocation5 + $0x1f0] sm:$0xff] }
 0x314   :  { %v378_v12 = vld [vmem:[#allocation5 + $0x9b0] sm:$0xff] }
 0x315   :  { %7219 = vmatpush2.bf16.msra.mxu0 %v8442_v42  ;;  %7260 = vmatpush2.bf16.msra.mxu1 %v8698_v43  ;;  %v434_v42 = vld [vmem:[#allocation5 + $0xb70] sm:$0xff]  ;;  %v7836_v43 = vcombine.low %v186_v18, %v194_v19 }
 0x316   :  { %7220 = vmatprep.subr.bf16.mxu0 %v8427_v44  ;;  %7261 = vmatprep.subr.bf16.mxu1 %v8683_v33  ;;  %v8092_v44 = vcombine.low %v442_v22, %v450_v25  ;;  %v7821_v33 = vcombine.high %v170_v35, %v178_v62  ;;  %v8077_v45 = vcombine.high %v426_v38, %v434_v42  ;;  %v106_v19 = vld [vmem:[#allocation5 + $0x130] sm:$0xff] }
 0x317   :  { %v8076_v52 = vcombine.low %v426_v38, %v434_v42  ;;  %v114_v22 = vld [vmem:[#allocation5 + $0x170] sm:$0xff] }
 0x318   :  { %v362_v25 = vld [vmem:[#allocation5 + $0x930] sm:$0xff] }
 0x319   :  { %7221 = vmatpush2.bf16.msra.mxu0 %v8426_v41  ;;  %7262 = vmatpush2.bf16.msra.mxu1 %v8682_v57  ;;  %v410_v41 = vld [vmem:[#allocation5 + $0xab0] sm:$0xff] }
 0x31a   :  { %7222 = vmatprep.subr.bf16.mxu0 %v8411_v49  ;;  %7263 = vmatprep.subr.bf16.mxu1 %v8667_v51  ;;  %v418_v57 = vld [vmem:[#allocation5 + $0xaf0] sm:$0xff]  ;;  %v7820_v51 = vcombine.low %v170_v35, %v178_v62 }
 0x31b   :  { %v90_v62 = vld [vmem:[#allocation5 + $0xb0] sm:$0xff] }
 0x31c   :  { %v98_v38 = vld [vmem:[#allocation5 + $0xf0] sm:$0xff] }
 0x31d   :  { %7223 = vmatpush2.bf16.msra.mxu0 %v8410_v54  ;;  %7264 = vmatpush2.bf16.msra.mxu1 %v8666_v56  ;;  %v8061_v54 = vcombine.high %v410_v41, %v418_v57  ;;  %v138_v56 = vld [vmem:[#allocation5 + $0x230] sm:$0xff] }
 0x31e   :  { %7224 = vmatprep.subr.bf16.mxu0 %v8395_v63  ;;  %7265 = vmatprep.subr.bf16.mxu1 %v8651_v0  ;;  %v146_v63 = vld [vmem:[#allocation5 + $0x270] sm:$0xff] }
 0x31f   :  { %v346_v42 = vld [vmem:[#allocation5 + $0x8b0] sm:$0xff] }
 0x321   :  { %7225 = vmatpush2.bf16.msra.mxu0 %v8394_v23  ;;  %7266 = vmatpush2.bf16.msra.mxu1 %v8650_v5  ;;  %v8060_v5 = vcombine.low %v410_v41, %v418_v57  ;;  %v82_v41 = vld [vmem:[#allocation5 + $0x70] sm:$0xff] }
 0x322   :  { %7226 = vmatprep.subr.bf16.mxu0 %v8379_v6  ;;  %7267 = vmatprep.subr.bf16.mxu1 %v8635_v21  ;;  %v7789_v6 = vcombine.high %v138_v56, %v146_v63  ;;  %v330_v57 = vld [vmem:[#allocation5 + $0x830] sm:$0xff] }
 0x325   :  { %7227 = vmatpush2.bf16.msra.mxu0 %v8378_v13  ;;  %7268 = vmatpush2.bf16.msra.mxu1 %v8634_v14  ;;  %v386_v13 = vld [vmem:[#allocation5 + $0x9f0] sm:$0xff]  ;;  %v7788_v14 = vcombine.low %v138_v56, %v146_v63 }
 0x326   :  { %7228 = vmatprep.subr.bf16.mxu0 %v8363_v15  ;;  %7269 = vmatprep.subr.bf16.mxu1 %v8619_v26  ;;  %v8044_v15 = vcombine.low %v394_v30, %v402_v17  ;;  %v7773_v26 = vcombine.high %v122_v9, %v130_v11  ;;  %v8029_v18 = vcombine.high %v378_v12, %v386_v13  ;;  %v314_v63 = vld [vmem:[#allocation5 + $0x7b0] sm:$0xff] }
 0x327   :  { %v570_v30 = vld [vmem:[#allocation5 + $0xfb0] sm:$0xff] }
 0x328   :  { %v578_v17 = vld [vmem:[#allocation5 + $0xff0] sm:$0xff] }
 0x329   :  { %7229 = vmatpush2.bf16.msra.mxu0 %v8362_v27  ;;  %7270 = vmatpush2.bf16.msra.mxu1 %v8618_v29  ;;  %v370_v27 = vld [vmem:[#allocation5 + $0x970] sm:$0xff]  ;;  %v7772_v29 = vcombine.low %v122_v9, %v130_v11 }
 0x32a   :  { %7280 = vmatprep.subr.bf16.mxu0 %v7837_v32  ;;  %7321 = vmatprep.subr.bf16.mxu1 %v8093_v37  ;;  %v8028_v32 = vcombine.low %v378_v12, %v386_v13  ;;  %v7757_v37 = vcombine.high %v106_v19, %v114_v22  ;;  %v8013_v35 = vcombine.high %v362_v25, %v370_v27  ;;  %v562_v9 = vld [vmem:[#allocation5 + $0xf70] sm:$0xff] }
 0x32b   :  { %v8220_v12 = vcombine.low %v570_v30, %v578_v17 }
 0x32c   :  { %v9029_v48 = vpop.f32.mrf.mxu0  ;;  %7231 = vmatmul.mubr.bf16.vlgmr.msra.gmra.mxu0 %v8899_v36  ;;  %v9032_v49 = vpop.f32.mrf.mxu1  ;;  %7272 = vmatmul.mubr.bf16.vlgmr.msra.gmra.mxu1 %v8901_v39 }
 0x32d   :  { %7281 = vmatpush1.bf16.msra.mxu0 %v7836_v43  ;;  %7322 = vmatpush1.bf16.msra.mxu1 %v8092_v44  ;;  %v354_v43 = vld [vmem:[#allocation5 + $0x8f0] sm:$0xff]  ;;  %v7756_v44 = vcombine.low %v106_v19, %v114_v22 }
 0x32e   :  { %v9035_v40 = vpop.f32.mrf.mxu0  ;;  %7282 = vmatprep.subr.bf16.mxu0 %v7821_v33  ;;  %v9037_v53 = vpop.f32.mrf.mxu1  ;;  %7323 = vmatprep.subr.bf16.mxu1 %v8077_v45  ;;  %v8012_v33 = vcombine.low %v362_v25, %v370_v27  ;;  %v7741_v45 = vcombine.high %v90_v62, %v98_v38  ;;  %v7997_v46 = vcombine.high %v346_v42, %v354_v43  ;;  %v546_v19 = vld [vmem:[#allocation5 + $0xef0] sm:$0xff] }
 0x32f   :  { %7312 = vmatprep.mubr.bf16.mxu0 %v8881_v58  ;;  %7353 = vmatprep.mubr.bf16.mxu1 %v8883_v59 }
 0x330   :  { %v6990_v0 = vpop.f32.mrf.mxu0  ;;  %v7031_v1 = vpop.f32.mrf.mxu1 }
 0x331   :  { %7283 = vmatpush1.bf16.msra.mxu0 %v7820_v51  ;;  %7324 = vmatpush1.bf16.msra.mxu1 %v8076_v52  ;;  %v338_v51 = vld [vmem:[#allocation5 + $0x870] sm:$0xff]  ;;  %v7740_v52 = vcombine.low %v90_v62, %v98_v38  ;;  %v7724_v1 = vcombine.low %v74_v47, %v82_v41 }
 0x332   :  { %v6991_v23 = vpop.f32.mrf.mxu0  ;;  %7284 = vmatprep.subr.bf16.mxu0 %v7805_v55  ;;  %v7032_v21 = vpop.f32.mrf.mxu1  ;;  %7325 = vmatprep.subr.bf16.mxu1 %v8061_v54  ;;  %v7996_v55 = vcombine.low %v346_v42, %v354_v43  ;;  %v7725_v54 = vcombine.high %v74_v47, %v82_v41  ;;  %v7981_v56 = vcombine.high %v330_v57, %v338_v51  ;;  %v322_v0 = vld [vmem:[#allocation5 + $0x7f0] sm:$0xff] }
 0x333   :  { %v7965_v23 = vcombine.high %v314_v63, %v322_v0  ;;  %v306_v21 = vld [vmem:[#allocation5 + $0x770] sm:$0xff]  ;;  %v7964_v11 = vcombine.low %v314_v63, %v322_v0 }
 0x334   :  { %v530_v62 = vld [vmem:[#allocation5 + $0xe70] sm:$0xff] }
 0x335   :  { %7285 = vmatpush1.bf16.msra.mxu0 %v7804_v3  ;;  %7326 = vmatpush1.bf16.msra.mxu1 %v8060_v5  ;;  %v7980_v3 = vcombine.low %v330_v57, %v338_v51  ;;  %v8221_v5 = vcombine.high %v570_v30, %v578_v17  ;;  %v514_v47 = vld [vmem:[#allocation5 + $0xdf0] sm:$0xff] }
 0x336   :  { %7286 = vmatprep.subr.bf16.mxu0 %v7789_v6  ;;  %7327 = vmatprep.subr.bf16.mxu1 %v8045_v8  ;;  %v298_v6 = vld [vmem:[#allocation5 + $0x730] sm:$0xff] }
 0x337   :  { %v554_v8 = vld [vmem:[#allocation5 + $0xf30] sm:$0xff]  ;;  %v7949_v13 = vcombine.high %v298_v6, %v306_v21  ;;  %v7948_v22 = vcombine.low %v298_v6, %v306_v21 }
 0x338   :  { %v8204_v25 = vcombine.low %v554_v8, %v562_v9  ;;  %v498_v63 = vld [vmem:[#allocation5 + $0xd70] sm:$0xff] }
 0x339   :  { %7287 = vmatpush1.bf16.msra.mxu0 %v7788_v14  ;;  %7328 = vmatpush1.bf16.msra.mxu1 %v8044_v15  ;;  %v8205_v14 = vcombine.high %v554_v8, %v562_v9  ;;  %v282_v15 = vld [vmem:[#allocation5 + $0x6b0] sm:$0xff] }
 0x33a   :  { %7288 = vmatprep.subr.bf16.mxu0 %v7773_v26  ;;  %7329 = vmatprep.subr.bf16.mxu1 %v8029_v18  ;;  %v290_v26 = vld [vmem:[#allocation5 + $0x6f0] sm:$0xff] }
 0x33b   :  { %v538_v18 = vld [vmem:[#allocation5 + $0xeb0] sm:$0xff]  ;;  %v7933_v27 = vcombine.high %v282_v15, %v290_v26  ;;  %v7932_v38 = vcombine.low %v282_v15, %v290_v26 }
 0x33c   :  { %v8188_v42 = vcombine.low %v538_v18, %v546_v19  ;;  %v482_v6 = vld [vmem:[#allocation5 + $0xcf0] sm:$0xff] }
 0x33d   :  { %7289 = vmatpush1.bf16.msra.mxu0 %v7772_v29  ;;  %7330 = vmatpush1.bf16.msra.mxu1 %v8028_v32  ;;  %v8189_v29 = vcombine.high %v538_v18, %v546_v19  ;;  %v266_v32 = vld [vmem:[#allocation5 + $0x630] sm:$0xff] }
 0x33e   :  { %7290 = vmatprep.subr.bf16.mxu0 %v7757_v37  ;;  %7331 = vmatprep.subr.bf16.mxu1 %v8013_v35  ;;  %v274_v37 = vld [vmem:[#allocation5 + $0x670] sm:$0xff] }
 0x33f   :  { %v522_v35 = vld [vmem:[#allocation5 + $0xe30] sm:$0xff]  ;;  %v7917_v43 = vcombine.high %v266_v32, %v274_v37  ;;  %v7916_v41 = vcombine.low %v266_v32, %v274_v37 }
 0x340   :  { %v8172_v57 = vcombine.low %v522_v35, %v530_v62  ;;  %v458_v15 = vld [vmem:[#allocation5 + $0xc30] sm:$0xff] }
 0x341   :  { %7291 = vmatpush1.bf16.msra.mxu0 %v7756_v44  ;;  %7332 = vmatpush1.bf16.msra.mxu1 %v8012_v33  ;;  %v8173_v44 = vcombine.high %v522_v35, %v530_v62  ;;  %v250_v33 = vld [vmem:[#allocation5 + $0x5b0] sm:$0xff] }
 0x342   :  { %7292 = vmatprep.subr.bf16.mxu0 %v7741_v45  ;;  %7333 = vmatprep.subr.bf16.mxu1 %v7997_v46  ;;  %v258_v45 = vld [vmem:[#allocation5 + $0x5f0] sm:$0xff] }
 0x343   :  { %v506_v46 = vld [vmem:[#allocation5 + $0xdb0] sm:$0xff]  ;;  %v7901_v51 = vcombine.high %v250_v33, %v258_v45  ;;  %v7900_v0 = vcombine.low %v250_v33, %v258_v45 }
 0x344   :  { %v8156_v30 = vcombine.low %v506_v46, %v514_v47  ;;  %v466_v26 = vld [vmem:[#allocation5 + $0xc70] sm:$0xff] }
 0x345   :  { %7293 = vmatpush1.bf16.msra.mxu0 %v7740_v52  ;;  %7334 = vmatpush1.bf16.msra.mxu1 %v7996_v55  ;;  %v8157_v52 = vcombine.high %v506_v46, %v514_v47  ;;  %v234_v55 = vld [vmem:[#allocation5 + $0x530] sm:$0xff] }
 0x346   :  { %7294 = vmatprep.subr.bf16.mxu0 %v7725_v54  ;;  %7335 = vmatprep.subr.bf16.mxu1 %v7981_v56  ;;  %v242_v54 = vld [vmem:[#allocation5 + $0x570] sm:$0xff] }
 0x347   :  { %v490_v56 = vld [vmem:[#allocation5 + $0xd30] sm:$0xff]  ;;  %v7885_v17 = vcombine.high %v234_v55, %v242_v54  ;;  %v7884_v21 = vcombine.low %v234_v55, %v242_v54 }
 0x348   :  { %v8140_v8 = vcombine.low %v490_v56, %v498_v63  ;;  %v706_v32 = vld [vmem:[#allocation5 + $0x13f0] sm:$0xff] }
 0x349   :  { %7295 = vmatpush1.bf16.msra.mxu0 %v7724_v1  ;;  %7336 = vmatpush1.bf16.msra.mxu1 %v7980_v3  ;;  %v8141_v1 = vcombine.high %v490_v56, %v498_v63  ;;  %v218_v3 = vld [vmem:[#allocation5 + $0x4b0] sm:$0xff] }
 0x34a   :  { %7296 = vmatprep.subr.bf16.mxu0 %v7965_v23  ;;  %7337 = vmatprep.subr.bf16.mxu1 %v8221_v5  ;;  %v226_v23 = vld [vmem:[#allocation5 + $0x4f0] sm:$0xff] }
 0x34b   :  { %v474_v5 = vld [vmem:[#allocation5 + $0xcb0] sm:$0xff]  ;;  %v7869_v9 = vcombine.high %v218_v3, %v226_v23  ;;  %v7868_v18 = vcombine.low %v218_v3, %v226_v23 }
 0x34c   :  { %v8124_v19 = vcombine.low %v474_v5, %v482_v6  ;;  %v954_v37 = vld [vmem:[#allocation5 + $0x1bb0] sm:$0xff] }
 0x34d   :  { %7297 = vmatpush2.bf16.msra.mxu0 %v7964_v11  ;;  %7338 = vmatpush2.bf16.msra.mxu1 %v8220_v12  ;;  %v8125_v11 = vcombine.high %v474_v5, %v482_v6  ;;  %v202_v12 = vld [vmem:[#allocation5 + $0x430] sm:$0xff] }
 0x34e   :  { %7298 = vmatprep.subr.bf16.mxu0 %v7949_v13  ;;  %7339 = vmatprep.subr.bf16.mxu1 %v8205_v14  ;;  %v210_v13 = vld [vmem:[#allocation5 + $0x470] sm:$0xff]  ;;  %v9041_v14 = vld [vmem:[#allocation7 + $0x8] sm:$0xff] }
 0x34f   :  { %v962_v35 = vld [vmem:[#allocation5 + $0x1bf0] sm:$0xff]  ;;  %v1135_v62 = vrot.slane %v9041_v14, %v1102_v34 }
 0x350   :  { %v682_v33 = vld [vmem:[#allocation5 + $0x1330] sm:$0xff]  ;;  %v8604_v34 = vcombine.low %v954_v37, %v962_v35 }
 0x351   :  { %7299 = vmatpush2.bf16.msra.mxu0 %v7948_v22  ;;  %7340 = vmatpush2.bf16.msra.mxu1 %v8204_v25  ;;  %v7853_v22 = vcombine.high %v202_v12, %v210_v13  ;;  %v1131_v25 = vrot.slane %v9041_v14, %v1098_v24  ;;  %v8605_v24 = vcombine.high %v954_v37, %v962_v35  ;;  %v690_v45 = vld [vmem:[#allocation5 + $0x1370] sm:$0xff] }
 0x352   :  { %7300 = vmatprep.subr.bf16.mxu0 %v7933_v27  ;;  %7341 = vmatprep.subr.bf16.mxu1 %v8189_v29  ;;  %v8109_v27 = vcombine.high %v458_v15, %v466_v26  ;;  %v698_v29 = vld [vmem:[#allocation5 + $0x13b0] sm:$0xff] }
 0x353   :  { %v938_v46 = vld [vmem:[#allocation5 + $0x1b30] sm:$0xff] }
 0x354   :  { %v946_v47 = vld [vmem:[#allocation5 + $0x1b70] sm:$0xff] }
 0x355   :  { %7301 = vmatpush2.bf16.msra.mxu0 %v7932_v38  ;;  %7342 = vmatpush2.bf16.msra.mxu1 %v8188_v42  ;;  %v7852_v38 = vcombine.low %v202_v12, %v210_v13  ;;  %v8108_v42 = vcombine.low %v458_v15, %v466_v26  ;;  %v8589_v55 = vcombine.high %v938_v46, %v946_v47  ;;  %v666_v54 = vld [vmem:[#allocation5 + $0x12b0] sm:$0xff] }
 0x356   :  { %7302 = vmatprep.subr.bf16.mxu0 %v7917_v43  ;;  %7343 = vmatprep.subr.bf16.mxu1 %v8173_v44  ;;  %v8349_v43 = vcombine.high %v698_v29, %v706_v32  ;;  %v6987_v44 = vadd.f32 %v9029_v48, %v1131_v25  ;;  %v674_v48 = vld [vmem:[#allocation5 + $0x12f0] sm:$0xff] }
 0x357   :  { %v922_v63 = vld [vmem:[#allocation5 + $0x1ab0] sm:$0xff]  ;;  %v8317_v23 = vcombine.high %v666_v54, %v674_v48 }
 0x358   :  { %v906_v12 = vld [vmem:[#allocation5 + $0x1a30] sm:$0xff] }
 0x359   :  { %7303 = vmatpush2.bf16.msra.mxu0 %v7916_v41  ;;  %7344 = vmatpush2.bf16.msra.mxu1 %v8172_v57  ;;  %v6989_v41 = vadd.f32 %v9035_v40, %v1135_v62  ;;  %v8348_v57 = vcombine.low %v698_v29, %v706_v32  ;;  %v914_v13 = vld [vmem:[#allocation5 + $0x1a70] sm:$0xff] }
 0x35a   :  { %7304 = vmatprep.subr.bf16.mxu0 %v7901_v51  ;;  %7345 = vmatprep.subr.bf16.mxu1 %v8157_v52  ;;  %v8333_v51 = vcombine.high %v682_v33, %v690_v45  ;;  %v7028_v52 = vadd.f32 %v9032_v49, %v6987_v44  ;;  %v8588_v49 = vcombine.low %v938_v46, %v946_v47  ;;  %v634_v35 = vld [vmem:[#allocation5 + $0x11b0] sm:$0xff] }
 0x35b   :  { %v8557_v37 = vcombine.high %v906_v12, %v914_v13  ;;  %v642_v62 = vld [vmem:[#allocation5 + $0x11f0] sm:$0xff] }
 0x35c   :  { %v618_v46 = vld [vmem:[#allocation5 + $0x1130] sm:$0xff] }
 0x35d   :  { %7305 = vmatpush2.bf16.msra.mxu0 %v7900_v0  ;;  %7346 = vmatpush2.bf16.msra.mxu1 %v8156_v30  ;;  %v930_v0 = vld [vmem:[#allocation5 + $0x1af0] sm:$0xff]  ;;  %v7030_v30 = vadd.f32 %v9037_v53, %v6989_v41 }
 0x35e   :  { %7306 = vmatprep.subr.bf16.mxu0 %v7885_v17  ;;  %7347 = vmatprep.subr.bf16.mxu1 %v8141_v1  ;;  %v8332_v1 = vcombine.low %v682_v33, %v690_v45  ;;  %v8285_v33 = vcombine.high %v634_v35, %v642_v62  ;;  %v626_v47 = vld [vmem:[#allocation5 + $0x1170] sm:$0xff] }
 0x35f   :  { %v874_v41 = vld [vmem:[#allocation5 + $0x1930] sm:$0xff] }
 0x361   :  { %7307 = vmatpush2.bf16.msra.mxu0 %v7884_v21  ;;  %7348 = vmatpush2.bf16.msra.mxu1 %v8140_v8  ;;  %v8573_v8 = vcombine.high %v922_v63, %v930_v0 }
 0x362   :  { %7308 = vmatprep.subr.bf16.mxu0 %v7869_v9  ;;  %7349 = vmatprep.subr.bf16.mxu1 %v8125_v11  ;;  %v650_v9 = vld [vmem:[#allocation5 + $0x1230] sm:$0xff] }
 0x363   :  { %v658_v11 = vld [vmem:[#allocation5 + $0x1270] sm:$0xff] }
 0x364   :  { %v8301_v25 = vcombine.high %v650_v9, %v658_v11  ;;  %v8300_v44 = vcombine.low %v650_v9, %v658_v11  ;;  %v826_v9 = vld [vmem:[#allocation5 + $0x17b0] sm:$0xff] }
 0x365   :  { %7309 = vmatpush2.bf16.msra.mxu0 %v7868_v18  ;;  %7350 = vmatpush2.bf16.msra.mxu1 %v8124_v19  ;;  %v8316_v18 = vcombine.low %v666_v54, %v674_v48  ;;  %v602_v54 = vld [vmem:[#allocation5 + $0x10b0] sm:$0xff] }
 0x366   :  { %7310 = vmatprep.subr.bf16.mxu0 %v7853_v22  ;;  %7351 = vmatprep.subr.bf16.mxu1 %v8109_v27  ;;  %v8572_v22 = vcombine.low %v922_v63, %v930_v0  ;;  %v610_v48 = vld [vmem:[#allocation5 + $0x10f0] sm:$0xff]  ;;  %v8268_v0 = vcombine.low %v618_v46, %v626_v47 }
 0x367   :  { %v866_v63 = vld [vmem:[#allocation5 + $0x18f0] sm:$0xff] }
 0x368   :  { %v834_v11 = vld [vmem:[#allocation5 + $0x17f0] sm:$0xff] }
 0x369   :  { %7311 = vmatpush2.bf16.msra.mxu0 %v7852_v38  ;;  %7352 = vmatpush2.bf16.msra.mxu1 %v8108_v42  ;;  %v890_v38 = vld [vmem:[#allocation5 + $0x19b0] sm:$0xff] }
 0x36a   :  { %7362 = vmatprep.subr.bf16.mxu0 %v8349_v43  ;;  %7403 = vmatprep.subr.bf16.mxu1 %v8605_v24  ;;  %v898_v42 = vld [vmem:[#allocation5 + $0x19f0] sm:$0xff]  ;;  %v8556_v24 = vcombine.low %v906_v12, %v914_v13 }
 0x36b   :  { %v8541_v45 = vcombine.high %v890_v38, %v898_v42  ;;  %v1090_v12 = vld [vmem:[#allocation5 + $0x1ff0] sm:$0xff] }
 0x36c   :  { %v7068_v56 = vpop.f32.mrf.mxu0  ;;  %7313 = vmatmul.mubr.bf16.vlgmr.msra.gmra.mxu0 %v8887_v16  ;;  %v7109_v17 = vpop.f32.mrf.mxu1  ;;  %7354 = vmatmul.mubr.bf16.vlgmr.msra.gmra.mxu1 %v8889_v20 }
 0x36d   :  { %v7069_v40 = vadd.f32 %v7068_v56, %v7028_v52  ;;  %7363 = vmatpush1.bf16.msra.mxu0 %v8348_v57  ;;  %7404 = vmatpush1.bf16.msra.mxu1 %v8604_v34  ;;  %v882_v57 = vld [vmem:[#allocation5 + $0x1970] sm:$0xff]  ;;  %v8284_v34 = vcombine.low %v634_v35, %v642_v62  ;;  %v8269_v52 = vcombine.high %v618_v46, %v626_v47 }
 0x36e   :  { %v7070_v3 = vpop.f32.mrf.mxu0  ;;  %7364 = vmatprep.subr.bf16.mxu0 %v8333_v51  ;;  %v7111_v21 = vpop.f32.mrf.mxu1  ;;  %7405 = vmatprep.subr.bf16.mxu1 %v8589_v55  ;;  %v8540_v51 = vcombine.low %v890_v38, %v898_v42  ;;  %v8525_v55 = vcombine.high %v874_v41, %v882_v57  ;;  %v858_v56 = vld [vmem:[#allocation5 + $0x18b0] sm:$0xff] }
 0x36f   :  { %v7110_v5 = vadd.f32 %v7109_v17, %v7069_v40  ;;  %v7071_v6 = vadd.f32 %v7070_v3, %v7030_v30  ;;  %7394 = vmatprep.mubr.bf16.mxu0 %v8891_v28  ;;  %7435 = vmatprep.mubr.bf16.mxu1 %v8894_v31  ;;  %v8524_v30 = vcombine.low %v874_v41, %v882_v57  ;;  %v594_v3 = vld [vmem:[#allocation5 + $0x1070] sm:$0xff] }
 0x370   :  { %v7072_v53 = vpop.f32.mrf.mxu0  ;;  %v7113_v26 = vpop.f32.mrf.mxu1  ;;  %v8253_v40 = vcombine.high %v602_v54, %v610_v48  ;;  %v8509_v17 = vcombine.high %v858_v56, %v866_v63  ;;  %v794_v62 = vld [vmem:[#allocation5 + $0x16b0] sm:$0xff] }
 0x371   :  { %v7112_v15 = vadd.f32 %v7111_v21, %v7071_v6  ;;  %7365 = vmatpush1.bf16.msra.mxu0 %v8332_v1  ;;  %7406 = vmatpush1.bf16.msra.mxu1 %v8588_v49  ;;  %v7616_v27 = vmax.f32 %v7110_v5, 0.0  ;;  %v586_v1 = vld [vmem:[#allocation5 + $0x1030] sm:$0xff]  ;;  %v8252_v5 = vcombine.low %v602_v54, %v610_v48  ;;  %v8508_v6 = vcombine.low %v858_v56, %v866_v63 }
 0x372   :  { %v7073_v19 = vpop.f32.mrf.mxu0  ;;  %7366 = vmatprep.subr.bf16.mxu0 %v8317_v23  ;;  %v7114_v32 = vpop.f32.mrf.mxu1  ;;  %7407 = vmatprep.subr.bf16.mxu1 %v8573_v8  ;;  %v842_v49 = vld [vmem:[#allocation5 + $0x1830] sm:$0xff]  ;;  %v8237_v21 = vcombine.high %v586_v1, %v594_v3  ;;  %v8236_v13 = vcombine.low %v586_v1, %v594_v3  ;;  %v8477_v26 = vcombine.high %v826_v9, %v834_v11 }
 0x373   :  { %v7617_v29 = vmax.f32 %v7112_v15, 0.0  ;;  %v850_v23 = vld [vmem:[#allocation5 + $0x1870] sm:$0xff] }
 0x374   :  { %v8493_v8 = vcombine.high %v842_v49, %v850_v23  ;;  %v1082_v53 = vld [vmem:[#allocation5 + $0x1fb0] sm:$0xff]  ;;  %v8492_v15 = vcombine.low %v842_v49, %v850_v23 }
 0x375   :  { %v8748_v43 = vpack.c.bf16 %v7617_v29, %v7616_v27  ;;  %7367 = vmatpush1.bf16.msra.mxu0 %v8316_v18  ;;  %7408 = vmatpush1.bf16.msra.mxu1 %v8572_v22  ;;  %v8733_v18 = vcombine.high %v1082_v53, %v1090_v12  ;;  %v810_v19 = vld [vmem:[#allocation5 + $0x1730] sm:$0xff]  ;;  %v8476_v29 = vcombine.low %v826_v9, %v834_v11 }
 0x376   :  { %7368 = vmatprep.subr.bf16.mxu0 %v8301_v25  ;;  %7409 = vmatprep.subr.bf16.mxu1 %v8557_v37  ;;  %v818_v22 = vld [vmem:[#allocation5 + $0x1770] sm:$0xff]  ;;  %v8732_v32 = vcombine.low %v1082_v53, %v1090_v12 }
 0x377   :  { %7692 = vst [vmem:[#allocation8 + $0x20] sm:$0xff] %v8748_v43  ;;  %v1066_v25 = vld [vmem:[#allocation5 + $0x1f30] sm:$0xff]  ;;  %v8461_v37 = vcombine.high %v810_v19, %v818_v22 }
 0x378   :  { %v1074_v27 = vld [vmem:[#allocation5 + $0x1f70] sm:$0xff] }
 0x379   :  { %7369 = vmatpush1.bf16.msra.mxu0 %v8300_v44  ;;  %7410 = vmatpush1.bf16.msra.mxu1 %v8556_v24  ;;  %v8717_v35 = vcombine.high %v1066_v25, %v1074_v27  ;;  %v802_v38 = vld [vmem:[#allocation5 + $0x16f0] sm:$0xff]  ;;  %v8460_v44 = vcombine.low %v810_v19, %v818_v22  ;;  %v8716_v24 = vcombine.low %v1066_v25, %v1074_v27 }
 0x37a   :  { %7370 = vmatprep.subr.bf16.mxu0 %v8285_v33  ;;  %7411 = vmatprep.subr.bf16.mxu1 %v8541_v45  ;;  %v1050_v42 = vld [vmem:[#allocation5 + $0x1eb0] sm:$0xff]  ;;  %v8445_v33 = vcombine.high %v794_v62, %v802_v38 }
 0x37b   :  { %v1058_v43 = vld [vmem:[#allocation5 + $0x1ef0] sm:$0xff] }
 0x37c   :  { %v8701_v45 = vcombine.high %v1050_v42, %v1058_v43  ;;  %v778_v46 = vld [vmem:[#allocation5 + $0x1630] sm:$0xff] }
 0x37d   :  { %7371 = vmatpush1.bf16.msra.mxu0 %v8284_v34  ;;  %7412 = vmatpush1.bf16.msra.mxu1 %v8540_v51  ;;  %v786_v47 = vld [vmem:[#allocation5 + $0x1670] sm:$0xff]  ;;  %v8444_v34 = vcombine.low %v794_v62, %v802_v38  ;;  %v8700_v51 = vcombine.low %v1050_v42, %v1058_v43  ;;  %v187_v62 = vld [vmem:[#allocation5 + $0x3b8] sm:$0xff] }
 0x37e   :  { %7372 = vmatprep.subr.bf16.mxu0 %v8269_v52  ;;  %7413 = vmatprep.subr.bf16.mxu1 %v8525_v55  ;;  %v1034_v41 = vld [vmem:[#allocation5 + $0x1e30] sm:$0xff]  ;;  %v8429_v52 = vcombine.high %v778_v46, %v786_v47  ;;  %v195_v38 = vld [vmem:[#allocation5 + $0x3f8] sm:$0xff] }
 0x37f   :  { %v1042_v57 = vld [vmem:[#allocation5 + $0x1e70] sm:$0xff]  ;;  %v443_v42 = vld [vmem:[#allocation5 + $0xbb8] sm:$0xff] }
 0x380   :  { %v8685_v55 = vcombine.high %v1034_v41, %v1042_v57  ;;  %v762_v54 = vld [vmem:[#allocation5 + $0x15b0] sm:$0xff]  ;;  %v451_v43 = vld [vmem:[#allocation5 + $0xbf8] sm:$0xff] }
 0x381   :  { %7373 = vmatpush1.bf16.msra.mxu0 %v8268_v0  ;;  %7414 = vmatpush1.bf16.msra.mxu1 %v8524_v30  ;;  %v770_v48 = vld [vmem:[#allocation5 + $0x15f0] sm:$0xff]  ;;  %v8428_v0 = vcombine.low %v778_v46, %v786_v47  ;;  %v8684_v30 = vcombine.low %v1034_v41, %v1042_v57  ;;  %v171_v46 = vld [vmem:[#allocation5 + $0x338] sm:$0xff] }
 0x382   :  { %7374 = vmatprep.subr.bf16.mxu0 %v8253_v40  ;;  %7415 = vmatprep.subr.bf16.mxu1 %v8509_v17  ;;  %v1018_v56 = vld [vmem:[#allocation5 + $0x1db0] sm:$0xff]  ;;  %v8413_v40 = vcombine.high %v762_v54, %v770_v48  ;;  %v179_v47 = vld [vmem:[#allocation5 + $0x378] sm:$0xff] }
 0x383   :  { %v1026_v63 = vld [vmem:[#allocation5 + $0x1df0] sm:$0xff]  ;;  %v427_v41 = vld [vmem:[#allocation5 + $0xb38] sm:$0xff] }
 0x384   :  { %v8669_v17 = vcombine.high %v1018_v56, %v1026_v63  ;;  %v746_v1 = vld [vmem:[#allocation5 + $0x1530] sm:$0xff]  ;;  %v435_v57 = vld [vmem:[#allocation5 + $0xb78] sm:$0xff] }
 0x385   :  { %7375 = vmatpush1.bf16.msra.mxu0 %v8252_v5  ;;  %7416 = vmatpush1.bf16.msra.mxu1 %v8508_v6  ;;  %v754_v3 = vld [vmem:[#allocation5 + $0x1570] sm:$0xff]  ;;  %v8412_v5 = vcombine.low %v762_v54, %v770_v48  ;;  %v8668_v6 = vcombine.low %v1018_v56, %v1026_v63  ;;  %v155_v54 = vld [vmem:[#allocation5 + $0x2b8] sm:$0xff] }
 0x386   :  { %7376 = vmatprep.subr.bf16.mxu0 %v8237_v21  ;;  %7417 = vmatprep.subr.bf16.mxu1 %v8493_v8  ;;  %v1002_v49 = vld [vmem:[#allocation5 + $0x1d30] sm:$0xff]  ;;  %v8397_v21 = vcombine.high %v746_v1, %v754_v3  ;;  %v163_v48 = vld [vmem:[#allocation5 + $0x2f8] sm:$0xff] }
 0x387   :  { %v1010_v23 = vld [vmem:[#allocation5 + $0x1d70] sm:$0xff]  ;;  %v411_v63 = vld [vmem:[#allocation5 + $0xab8] sm:$0xff] }
 0x388   :  { %v8653_v8 = vcombine.high %v1002_v49, %v1010_v23  ;;  %v730_v9 = vld [vmem:[#allocation5 + $0x14b0] sm:$0xff] }
 0x389   :  { %7377 = vmatpush1.bf16.msra.mxu0 %v8236_v13  ;;  %7418 = vmatpush1.bf16.msra.mxu1 %v8492_v15  ;;  %v738_v11 = vld [vmem:[#allocation5 + $0x14f0] sm:$0xff]  ;;  %v8396_v13 = vcombine.low %v746_v1, %v754_v3  ;;  %v8652_v15 = vcombine.low %v1002_v49, %v1010_v23  ;;  %v8078_v1 = vcombine.low %v427_v41, %v435_v57 }
 0x38a   :  { %7378 = vmatprep.subr.bf16.mxu0 %v8477_v26  ;;  %7419 = vmatprep.subr.bf16.mxu1 %v8733_v18  ;;  %v986_v53 = vld [vmem:[#allocation5 + $0x1cb0] sm:$0xff]  ;;  %v8381_v26 = vcombine.high %v730_v9, %v738_v11  ;;  %v7807_v3 = vcombine.high %v155_v54, %v163_v48 }
 0x38b   :  { %v994_v12 = vld [vmem:[#allocation5 + $0x1cf0] sm:$0xff] }
 0x38c   :  { %v8637_v18 = vcombine.high %v986_v53, %v994_v12  ;;  %v714_v19 = vld [vmem:[#allocation5 + $0x1430] sm:$0xff] }
 0x38d   :  { %7379 = vmatpush2.bf16.msra.mxu0 %v8476_v29  ;;  %7420 = vmatpush2.bf16.msra.mxu1 %v8732_v32  ;;  %v722_v22 = vld [vmem:[#allocation5 + $0x1470] sm:$0xff]  ;;  %v8380_v29 = vcombine.low %v730_v9, %v738_v11  ;;  %v8636_v32 = vcombine.low %v986_v53, %v994_v12  ;;  %v403_v9 = vld [vmem:[#allocation5 + $0xa78] sm:$0xff]  ;;  %v7806_v53 = vcombine.low %v155_v54, %v163_v48 }
 0x38e   :  { %7380 = vmatprep.subr.bf16.mxu0 %v8461_v37  ;;  %7421 = vmatprep.subr.bf16.mxu1 %v8717_v35  ;;  %v970_v25 = vld [vmem:[#allocation5 + $0x1c30] sm:$0xff]  ;;  %v8365_v37 = vcombine.high %v714_v19, %v722_v22  ;;  %v331_v54 = vld [vmem:[#allocation5 + $0x838] sm:$0xff] }
 0x38f   :  { %v978_v27 = vld [vmem:[#allocation5 + $0x1c70] sm:$0xff]  ;;  %v339_v48 = vld [vmem:[#allocation5 + $0x878] sm:$0xff] }
 0x390   :  { %v8621_v35 = vcombine.high %v970_v25, %v978_v27 }
 0x391   :  { %7381 = vmatpush2.bf16.msra.mxu0 %v8460_v44  ;;  %7422 = vmatpush2.bf16.msra.mxu1 %v8716_v24  ;;  %v8364_v44 = vcombine.low %v714_v19, %v722_v22  ;;  %v8620_v24 = vcombine.low %v970_v25, %v978_v27  ;;  %v123_v19 = vld [vmem:[#allocation5 + $0x1b8] sm:$0xff] }
 0x392   :  { %7382 = vmatprep.subr.bf16.mxu0 %v8445_v33  ;;  %7423 = vmatprep.subr.bf16.mxu1 %v8701_v45  ;;  %v7839_v33 = vcombine.high %v187_v62, %v195_v38  ;;  %v8095_v45 = vcombine.high %v443_v42, %v451_v43  ;;  %v131_v22 = vld [vmem:[#allocation5 + $0x1f8] sm:$0xff] }
 0x393   :  { %v379_v25 = vld [vmem:[#allocation5 + $0x9b8] sm:$0xff] }
 0x395   :  { %7383 = vmatpush2.bf16.msra.mxu0 %v8444_v34  ;;  %7424 = vmatpush2.bf16.msra.mxu1 %v8700_v51  ;;  %v7838_v34 = vcombine.low %v187_v62, %v195_v38  ;;  %v8094_v51 = vcombine.low %v443_v42, %v451_v43  ;;  %v363_v62 = vld [vmem:[#allocation5 + $0x938] sm:$0xff]  ;;  %v7774_v42 = vcombine.low %v123_v19, %v131_v22 }
 0x396   :  { %7384 = vmatprep.subr.bf16.mxu0 %v8429_v52  ;;  %7425 = vmatprep.subr.bf16.mxu1 %v8685_v55  ;;  %v7823_v52 = vcombine.high %v171_v46, %v179_v47  ;;  %v8079_v55 = vcombine.high %v427_v41, %v435_v57  ;;  %v371_v38 = vld [vmem:[#allocation5 + $0x978] sm:$0xff] }
 0x397   :  { %v8014_v57 = vcombine.low %v363_v62, %v371_v38 }
 0x399   :  { %7385 = vmatpush2.bf16.msra.mxu0 %v8428_v0  ;;  %7426 = vmatpush2.bf16.msra.mxu1 %v8684_v30  ;;  %v419_v0 = vld [vmem:[#allocation5 + $0xaf8] sm:$0xff] }
 0x39a   :  { %7386 = vmatprep.subr.bf16.mxu0 %v8413_v40  ;;  %7427 = vmatprep.subr.bf16.mxu1 %v8669_v17  ;;  %v7822_v40 = vcombine.low %v171_v46, %v179_v47  ;;  %v8063_v23 = vcombine.high %v411_v63, %v419_v0  ;;  %v347_v46 = vld [vmem:[#allocation5 + $0x8b8] sm:$0xff] }
 0x39b   :  { %v355_v47 = vld [vmem:[#allocation5 + $0x8f8] sm:$0xff] }
 0x39d   :  { %7387 = vmatpush2.bf16.msra.mxu0 %v8412_v5  ;;  %7428 = vmatpush2.bf16.msra.mxu1 %v8668_v6  ;;  %v139_v5 = vld [vmem:[#allocation5 + $0x238] sm:$0xff] }
 0x39e   :  { %7388 = vmatprep.subr.bf16.mxu0 %v8397_v21  ;;  %7429 = vmatprep.subr.bf16.mxu1 %v8653_v8  ;;  %v147_v6 = vld [vmem:[#allocation5 + $0x278] sm:$0xff] }
 0x39f   :  { %v395_v8 = vld [vmem:[#allocation5 + $0xa38] sm:$0xff]  ;;  %v7790_v27 = vcombine.low %v139_v5, %v147_v6 }
 0x3a1   :  { %7389 = vmatpush2.bf16.msra.mxu0 %v8396_v13  ;;  %7430 = vmatpush2.bf16.msra.mxu1 %v8652_v15  ;;  %v8062_v13 = vcombine.low %v411_v63, %v419_v0  ;;  %v7791_v15 = vcombine.high %v139_v5, %v147_v6  ;;  %v7998_v0 = vcombine.low %v347_v46, %v355_v47  ;;  %v571_v5 = vld [vmem:[#allocation5 + $0xfb8] sm:$0xff] }
 0x3a2   :  { %7390 = vmatprep.subr.bf16.mxu0 %v8381_v26  ;;  %7431 = vmatprep.subr.bf16.mxu1 %v8637_v18  ;;  %v8047_v18 = vcombine.high %v395_v8, %v403_v9  ;;  %v579_v6 = vld [vmem:[#allocation5 + $0xff8] sm:$0xff] }
 0x3a5   :  { %7391 = vmatpush2.bf16.msra.mxu0 %v8380_v29  ;;  %7432 = vmatpush2.bf16.msra.mxu1 %v8636_v32  ;;  %v7775_v29 = vcombine.high %v123_v19, %v131_v22 }
 0x3a6   :  { %7392 = vmatprep.subr.bf16.mxu0 %v8365_v37  ;;  %7433 = vmatprep.subr.bf16.mxu1 %v8621_v35  ;;  %v107_v37 = vld [vmem:[#allocation5 + $0x138] sm:$0xff] }
 0x3a7   :  { %v115_v35 = vld [vmem:[#allocation5 + $0x178] sm:$0xff] }
 0x3a8   :  { %v7758_v41 = vcombine.low %v107_v37, %v115_v35 }
 0x3a9   :  { %7393 = vmatpush2.bf16.msra.mxu0 %v8364_v44  ;;  %7434 = vmatpush2.bf16.msra.mxu1 %v8620_v24  ;;  %v7759_v44 = vcombine.high %v107_v37, %v115_v35  ;;  %v8015_v24 = vcombine.high %v363_v62, %v371_v38  ;;  %v267_v62 = vld [vmem:[#allocation5 + $0x638] sm:$0xff] }
 0x3aa   :  { %7444 = vmatprep.subr.bf16.mxu0 %v7839_v33  ;;  %7485 = vmatprep.subr.bf16.mxu1 %v8095_v45  ;;  %v91_v33 = vld [vmem:[#allocation5 + $0xb8] sm:$0xff] }
 0x3ab   :  { %v99_v45 = vld [vmem:[#allocation5 + $0xf8] sm:$0xff] }
 0x3ac   :  { %v9057_v56 = vpop.f32.mrf.mxu0  ;;  %7395 = vmatmul.mubr.bf16.vlgmr.msra.gmra.mxu0 %v8899_v36  ;;  %v9060_v30 = vpop.f32.mrf.mxu1  ;;  %7436 = vmatmul.mubr.bf16.vlgmr.msra.gmra.mxu1 %v8901_v39  ;;  %v7742_v63 = vcombine.low %v91_v33, %v99_v45  ;;  %v275_v38 = vld [vmem:[#allocation5 + $0x678] sm:$0xff] }
 0x3ad   :  { %7445 = vmatpush1.bf16.msra.mxu0 %v7838_v34  ;;  %7486 = vmatpush1.bf16.msra.mxu1 %v8094_v51  ;;  %v7743_v34 = vcombine.high %v91_v33, %v99_v45  ;;  %v7999_v51 = vcombine.high %v347_v46, %v355_v47  ;;  %v7919_v33 = vcombine.high %v267_v62, %v275_v38  ;;  %v251_v46 = vld [vmem:[#allocation5 + $0x5b8] sm:$0xff] }
 0x3ae   :  { %v9063_v17 = vpop.f32.mrf.mxu0  ;;  %7446 = vmatprep.subr.bf16.mxu0 %v7823_v52  ;;  %v9065_v49 = vpop.f32.mrf.mxu1  ;;  %7487 = vmatprep.subr.bf16.mxu1 %v8079_v55  ;;  %v75_v52 = vld [vmem:[#allocation5 + $0x38] sm:$0xff] }
 0x3af   :  { %7476 = vmatprep.mubr.bf16.mxu0 %v8881_v58  ;;  %7517 = vmatprep.mubr.bf16.mxu1 %v8883_v59  ;;  %v387_v58 = vld [vmem:[#allocation5 + $0x9f8] sm:$0xff]  ;;  %v8046_v59 = vcombine.low %v395_v8, %v403_v9  ;;  %v7982_v8 = vcombine.low %v331_v54, %v339_v48 }
 0x3b0   :  { %v7154_v21 = vpop.f32.mrf.mxu0  ;;  %v7195_v11 = vpop.f32.mrf.mxu1  ;;  %v8031_v32 = vcombine.high %v379_v25, %v387_v58  ;;  %v8030_v43 = vcombine.low %v379_v25, %v387_v58  ;;  %v83_v55 = vld [vmem:[#allocation5 + $0x78] sm:$0xff] }
 0x3b1   :  { %7447 = vmatpush1.bf16.msra.mxu0 %v7822_v40  ;;  %7488 = vmatpush1.bf16.msra.mxu1 %v8078_v1  ;;  %v7727_v40 = vcombine.high %v75_v52, %v83_v55  ;;  %v7983_v1 = vcombine.high %v331_v54, %v339_v48  ;;  %v7726_v21 = vcombine.low %v75_v52, %v83_v55  ;;  %v283_v25 = vld [vmem:[#allocation5 + $0x6b8] sm:$0xff] }
 0x3b2   :  { %v7155_v12 = vpop.f32.mrf.mxu0  ;;  %7448 = vmatprep.subr.bf16.mxu0 %v7807_v3  ;;  %v7196_v26 = vpop.f32.mrf.mxu1  ;;  %7489 = vmatprep.subr.bf16.mxu1 %v8063_v23  ;;  %v315_v3 = vld [vmem:[#allocation5 + $0x7b8] sm:$0xff]  ;;  %v8223_v11 = vcombine.high %v571_v5, %v579_v6 }
 0x3b3   :  { %v323_v23 = vld [vmem:[#allocation5 + $0x7f8] sm:$0xff] }
 0x3b4   :  { %v7967_v9 = vcombine.high %v315_v3, %v323_v23  ;;  %v307_v12 = vld [vmem:[#allocation5 + $0x778] sm:$0xff]  ;;  %v7966_v26 = vcombine.low %v315_v3, %v323_v23 }
 0x3b5   :  { %7449 = vmatpush1.bf16.msra.mxu0 %v7806_v53  ;;  %7490 = vmatpush1.bf16.msra.mxu1 %v8062_v13  ;;  %v299_v53 = vld [vmem:[#allocation5 + $0x738] sm:$0xff] }
 0x3b6   :  { %7450 = vmatprep.subr.bf16.mxu0 %v7791_v15  ;;  %7491 = vmatprep.subr.bf16.mxu1 %v8047_v18  ;;  %v555_v13 = vld [vmem:[#allocation5 + $0xf38] sm:$0xff]  ;;  %v8222_v18 = vcombine.low %v571_v5, %v579_v6  ;;  %v7951_v19 = vcombine.high %v299_v53, %v307_v12 }
 0x3b7   :  { %v563_v15 = vld [vmem:[#allocation5 + $0xf78] sm:$0xff] }
 0x3b8   :  { %v8207_v22 = vcombine.high %v555_v13, %v563_v15  ;;  %v291_v58 = vld [vmem:[#allocation5 + $0x6f8] sm:$0xff] }
 0x3b9   :  { %7451 = vmatpush1.bf16.msra.mxu0 %v7790_v27  ;;  %7492 = vmatpush1.bf16.msra.mxu1 %v8046_v59  ;;  %v539_v27 = vld [vmem:[#allocation5 + $0xeb8] sm:$0xff]  ;;  %v7935_v37 = vcombine.high %v283_v25, %v291_v58 }
 0x3ba   :  { %7452 = vmatprep.subr.bf16.mxu0 %v7775_v29  ;;  %7493 = vmatprep.subr.bf16.mxu1 %v8031_v32  ;;  %v547_v59 = vld [vmem:[#allocation5 + $0xef8] sm:$0xff]  ;;  %v7950_v29 = vcombine.low %v299_v53, %v307_v12  ;;  %v8206_v32 = vcombine.low %v555_v13, %v563_v15 }
 0x3bb   :  { %v8191_v35 = vcombine.high %v539_v27, %v547_v59  ;;  %v259_v47 = vld [vmem:[#allocation5 + $0x5f8] sm:$0xff] }
 0x3bc   :  { %v7903_v52 = vcombine.high %v251_v46, %v259_v47  ;;  %v235_v54 = vld [vmem:[#allocation5 + $0x538] sm:$0xff] }
 0x3bd   :  { %7453 = vmatpush1.bf16.msra.mxu0 %v7774_v42  ;;  %7494 = vmatpush1.bf16.msra.mxu1 %v8030_v43  ;;  %v523_v42 = vld [vmem:[#allocation5 + $0xe38] sm:$0xff] }
 0x3be   :  { %7454 = vmatprep.subr.bf16.mxu0 %v7759_v44  ;;  %7495 = vmatprep.subr.bf16.mxu1 %v8015_v24  ;;  %v531_v43 = vld [vmem:[#allocation5 + $0xe78] sm:$0xff]  ;;  %v7934_v44 = vcombine.low %v283_v25, %v291_v58  ;;  %v8190_v24 = vcombine.low %v539_v27, %v547_v59  ;;  %v1139_v58 = vrot.slane %v9041_v14, %v1106_v2 }
 0x3bf   :  { %v8175_v45 = vcombine.high %v523_v42, %v531_v43  ;;  %v243_v48 = vld [vmem:[#allocation5 + $0x578] sm:$0xff] }
 0x3c0   :  { %v7887_v3 = vcombine.high %v235_v54, %v243_v48  ;;  %v219_v5 = vld [vmem:[#allocation5 + $0x4b8] sm:$0xff] }
 0x3c1   :  { %7455 = vmatpush1.bf16.msra.mxu0 %v7758_v41  ;;  %7496 = vmatpush1.bf16.msra.mxu1 %v8014_v57  ;;  %v507_v41 = vld [vmem:[#allocation5 + $0xdb8] sm:$0xff] }
 0x3c2   :  { %7456 = vmatprep.subr.bf16.mxu0 %v7743_v34  ;;  %7497 = vmatprep.subr.bf16.mxu1 %v7999_v51  ;;  %v515_v57 = vld [vmem:[#allocation5 + $0xdf8] sm:$0xff]  ;;  %v7918_v34 = vcombine.low %v267_v62, %v275_v38  ;;  %v8174_v51 = vcombine.low %v523_v42, %v531_v43  ;;  %v7151_v43 = vadd.f32 %v9057_v56, %v1139_v58 }
 0x3c3   :  { %v8159_v55 = vcombine.high %v507_v41, %v515_v57  ;;  %v227_v6 = vld [vmem:[#allocation5 + $0x4f8] sm:$0xff] }
 0x3c4   :  { %v7871_v53 = vcombine.high %v219_v5, %v227_v6  ;;  %v203_v13 = vld [vmem:[#allocation5 + $0x438] sm:$0xff] }
 0x3c5   :  { %7457 = vmatpush1.bf16.msra.mxu0 %v7742_v63  ;;  %7498 = vmatpush1.bf16.msra.mxu1 %v7998_v0  ;;  %v491_v63 = vld [vmem:[#allocation5 + $0xd38] sm:$0xff] }
 0x3c6   :  { %7458 = vmatprep.subr.bf16.mxu0 %v7727_v40  ;;  %7499 = vmatprep.subr.bf16.mxu1 %v7983_v1  ;;  %v499_v0 = vld [vmem:[#allocation5 + $0xd78] sm:$0xff]  ;;  %v7902_v40 = vcombine.low %v251_v46, %v259_v47  ;;  %v8158_v1 = vcombine.low %v507_v41, %v515_v57  ;;  %v7192_v41 = vadd.f32 %v9060_v30, %v7151_v43 }
 0x3c7   :  { %v8143_v23 = vcombine.high %v491_v63, %v499_v0  ;;  %v211_v15 = vld [vmem:[#allocation5 + $0x478] sm:$0xff] }
 0x3c8   :  { %v7855_v25 = vcombine.high %v203_v13, %v211_v15  ;;  %v699_v59 = vld [vmem:[#allocation5 + $0x13b8] sm:$0xff]  ;;  %v7854_v62 = vcombine.low %v203_v13, %v211_v15 }
 0x3c9   :  { %7459 = vmatpush1.bf16.msra.mxu0 %v7726_v21  ;;  %7500 = vmatpush1.bf16.msra.mxu1 %v7982_v8  ;;  %v475_v21 = vld [vmem:[#allocation5 + $0xcb8] sm:$0xff] }
 0x3ca   :  { %7460 = vmatprep.subr.bf16.mxu0 %v7967_v9  ;;  %7501 = vmatprep.subr.bf16.mxu1 %v8223_v11  ;;  %v483_v8 = vld [vmem:[#allocation5 + $0xcf8] sm:$0xff]  ;;  %v7886_v9 = vcombine.low %v235_v54, %v243_v48  ;;  %v8142_v11 = vcombine.low %v491_v63, %v499_v0 }
 0x3cb   :  { %v8127_v12 = vcombine.high %v475_v21, %v483_v8  ;;  %v675_v56 = vld [vmem:[#allocation5 + $0x12f8] sm:$0xff] }
 0x3cc   :  { %v899_v58 = vld [vmem:[#allocation5 + $0x19f8] sm:$0xff] }
 0x3cd   :  { %7461 = vmatpush2.bf16.msra.mxu0 %v7966_v26  ;;  %7502 = vmatpush2.bf16.msra.mxu1 %v8222_v18  ;;  %v459_v26 = vld [vmem:[#allocation5 + $0xc38] sm:$0xff] }
 0x3ce   :  { %7462 = vmatprep.subr.bf16.mxu0 %v7951_v19  ;;  %7503 = vmatprep.subr.bf16.mxu1 %v8207_v22  ;;  %v467_v18 = vld [vmem:[#allocation5 + $0xc78] sm:$0xff]  ;;  %v7870_v19 = vcombine.low %v219_v5, %v227_v6  ;;  %v8126_v22 = vcombine.low %v475_v21, %v483_v8 }
 0x3cf   :  { %v8111_v27 = vcombine.high %v459_v26, %v467_v18  ;;  %v8110_v38 = vcombine.low %v459_v26, %v467_v18  ;;  %v651_v5 = vld [vmem:[#allocation5 + $0x1238] sm:$0xff] }
 0x3d0   :  { %v659_v6 = vld [vmem:[#allocation5 + $0x1278] sm:$0xff] }
 0x3d1   :  { %7463 = vmatpush2.bf16.msra.mxu0 %v7950_v29  ;;  %7504 = vmatpush2.bf16.msra.mxu1 %v8206_v32  ;;  %v707_v29 = vld [vmem:[#allocation5 + $0x13f8] sm:$0xff]  ;;  %v8303_v13 = vcombine.high %v651_v5, %v659_v6 }
 0x3d2   :  { %7464 = vmatprep.subr.bf16.mxu0 %v7935_v37  ;;  %7505 = vmatprep.subr.bf16.mxu1 %v8191_v35  ;;  %v955_v32 = vld [vmem:[#allocation5 + $0x1bb8] sm:$0xff]  ;;  %v1143_v35 = vrot.slane %v9041_v14, %v1110_v7  ;;  %v8351_v42 = vcombine.high %v699_v59, %v707_v29  ;;  %v8350_v47 = vcombine.low %v699_v59, %v707_v29 }
 0x3d3   :  { %v963_v37 = vld [vmem:[#allocation5 + $0x1bf8] sm:$0xff] }
 0x3d4   :  { %v8607_v2 = vcombine.high %v955_v32, %v963_v37  ;;  %v7153_v46 = vadd.f32 %v9063_v17, %v1143_v35  ;;  %v8606_v7 = vcombine.low %v955_v32, %v963_v37  ;;  %v907_v21 = vld [vmem:[#allocation5 + $0x1a38] sm:$0xff] }
 0x3d5   :  { %7465 = vmatpush2.bf16.msra.mxu0 %v7934_v44  ;;  %7506 = vmatpush2.bf16.msra.mxu1 %v8190_v24  ;;  %v683_v44 = vld [vmem:[#allocation5 + $0x1338] sm:$0xff] }
 0x3d6   :  { %7466 = vmatprep.subr.bf16.mxu0 %v7919_v33  ;;  %7507 = vmatprep.subr.bf16.mxu1 %v8175_v45  ;;  %v691_v24 = vld [vmem:[#allocation5 + $0x1378] sm:$0xff]  ;;  %v7194_v54 = vadd.f32 %v9065_v49, %v7153_v46 }
 0x3d7   :  { %v939_v33 = vld [vmem:[#allocation5 + $0x1b38] sm:$0xff]  ;;  %v8335_v14 = vcombine.high %v683_v44, %v691_v24  ;;  %v8334_v63 = vcombine.low %v683_v44, %v691_v24 }
 0x3d8   :  { %v947_v45 = vld [vmem:[#allocation5 + $0x1b78] sm:$0xff] }
 0x3d9   :  { %7467 = vmatpush2.bf16.msra.mxu0 %v7918_v34  ;;  %7508 = vmatpush2.bf16.msra.mxu1 %v8174_v51  ;;  %v8591_v57 = vcombine.high %v939_v33, %v947_v45  ;;  %v667_v34 = vld [vmem:[#allocation5 + $0x12b8] sm:$0xff]  ;;  %v8590_v30 = vcombine.low %v939_v33, %v947_v45 }
 0x3da   :  { %7468 = vmatprep.subr.bf16.mxu0 %v7903_v52  ;;  %7509 = vmatprep.subr.bf16.mxu1 %v8159_v55  ;;  %v923_v52 = vld [vmem:[#allocation5 + $0x1ab8] sm:$0xff] }
 0x3db   :  { %v931_v55 = vld [vmem:[#allocation5 + $0x1af8] sm:$0xff] }
 0x3dc   :  { %v915_v8 = vld [vmem:[#allocation5 + $0x1a78] sm:$0xff] }
 0x3dd   :  { %7469 = vmatpush2.bf16.msra.mxu0 %v7902_v40  ;;  %7510 = vmatpush2.bf16.msra.mxu1 %v8158_v1  ;;  %v8319_v40 = vcombine.high %v667_v34, %v675_v56  ;;  %v8558_v59 = vcombine.low %v907_v21, %v915_v8  ;;  %v619_v37 = vld [vmem:[#allocation5 + $0x1138] sm:$0xff] }
 0x3de   :  { %7470 = vmatprep.subr.bf16.mxu0 %v7887_v3  ;;  %7511 = vmatprep.subr.bf16.mxu1 %v8143_v23  ;;  %v627_v35 = vld [vmem:[#allocation5 + $0x1178] sm:$0xff] }
 0x3df   :  { %v603_v24 = vld [vmem:[#allocation5 + $0x10b8] sm:$0xff] }
 0x3e0   :  { %v611_v33 = vld [vmem:[#allocation5 + $0x10f8] sm:$0xff] }
 0x3e1   :  { %7471 = vmatpush2.bf16.msra.mxu0 %v7886_v9  ;;  %7512 = vmatpush2.bf16.msra.mxu1 %v8142_v11  ;;  %v8318_v11 = vcombine.low %v667_v34, %v675_v56  ;;  %v859_v45 = vld [vmem:[#allocation5 + $0x18b8] sm:$0xff] }
 0x3e2   :  { %7472 = vmatprep.subr.bf16.mxu0 %v7871_v53  ;;  %7513 = vmatprep.subr.bf16.mxu1 %v8127_v12  ;;  %v8574_v12 = vcombine.low %v923_v52, %v931_v55  ;;  %v867_v46 = vld [vmem:[#allocation5 + $0x18f8] sm:$0xff] }
 0x3e3   :  { %v595_v34 = vld [vmem:[#allocation5 + $0x1078] sm:$0xff] }
 0x3e4   :  { %v843_v56 = vld [vmem:[#allocation5 + $0x1838] sm:$0xff] }
 0x3e5   :  { %7473 = vmatpush2.bf16.msra.mxu0 %v7870_v19  ;;  %7514 = vmatpush2.bf16.msra.mxu1 %v8126_v22  ;;  %v8559_v19 = vcombine.high %v907_v21, %v915_v8  ;;  %v643_v22 = vld [vmem:[#allocation5 + $0x11f8] sm:$0xff] }
 0x3e6   :  { %7474 = vmatprep.subr.bf16.mxu0 %v7855_v25  ;;  %7515 = vmatprep.subr.bf16.mxu1 %v8111_v27  ;;  %v891_v25 = vld [vmem:[#allocation5 + $0x19b8] sm:$0xff] }
 0x3e7   :  { %v8543_v32 = vcombine.high %v891_v25, %v899_v58  ;;  %v8542_v43 = vcombine.low %v891_v25, %v899_v58  ;;  %v1035_v25 = vld [vmem:[#allocation5 + $0x1e38] sm:$0xff] }
 0x3e8   :  { %v1043_v58 = vld [vmem:[#allocation5 + $0x1e78] sm:$0xff] }
 0x3e9   :  { %7475 = vmatpush2.bf16.msra.mxu0 %v7854_v62  ;;  %7516 = vmatpush2.bf16.msra.mxu1 %v8110_v38  ;;  %v875_v62 = vld [vmem:[#allocation5 + $0x1938] sm:$0xff] }
 0x3ea   :  { %7526 = vmatprep.subr.bf16.mxu0 %v8351_v42  ;;  %7567 = vmatprep.subr.bf16.mxu1 %v8607_v2  ;;  %v883_v38 = vld [vmem:[#allocation5 + $0x1978] sm:$0xff]  ;;  %v8271_v2 = vcombine.high %v619_v37, %v627_v35 }
 0x3eb   :  { %v8527_v44 = vcombine.high %v875_v62, %v883_v38 }
 0x3ec   :  { %v7232_v51 = vpop.f32.mrf.mxu0  ;;  %7477 = vmatmul.mubr.bf16.vlgmr.msra.gmra.mxu0 %v8887_v16  ;;  %v7273_v48 = vpop.f32.mrf.mxu1  ;;  %7518 = vmatmul.mubr.bf16.vlgmr.msra.gmra.mxu1 %v8889_v20  ;;  %v8575_v16 = vcombine.high %v923_v52, %v931_v55  ;;  %v8254_v52 = vcombine.low %v603_v24, %v611_v33  ;;  %v8510_v55 = vcombine.low %v859_v45, %v867_v46 }
 0x3ed   :  { %v7233_v17 = vadd.f32 %v7232_v51, %v7192_v41  ;;  %7527 = vmatpush1.bf16.msra.mxu0 %v8350_v47  ;;  %7568 = vmatpush1.bf16.msra.mxu1 %v8606_v7  ;;  %v8270_v47 = vcombine.low %v619_v37, %v627_v35  ;;  %v8526_v7 = vcombine.low %v875_v62, %v883_v38  ;;  %v851_v51 = vld [vmem:[#allocation5 + $0x1878] sm:$0xff] }
 0x3ee   :  { %v7234_v0 = vpop.f32.mrf.mxu0  ;;  %7528 = vmatprep.subr.bf16.mxu0 %v8335_v14  ;;  %v7275_v23 = vpop.f32.mrf.mxu1  ;;  %7569 = vmatprep.subr.bf16.mxu1 %v8591_v57  ;;  %v8255_v14 = vcombine.high %v603_v24, %v611_v33  ;;  %v8511_v41 = vcombine.high %v859_v45, %v867_v46  ;;  %v587_v57 = vld [vmem:[#allocation5 + $0x1038] sm:$0xff] }
 0x3ef   :  { %v7274_v1 = vadd.f32 %v7273_v48, %v7233_v17  ;;  %v7235_v3 = vadd.f32 %v7234_v0, %v7194_v54  ;;  %7558 = vmatprep.mubr.bf16.mxu0 %v8891_v28  ;;  %7599 = vmatprep.mubr.bf16.mxu1 %v8894_v31  ;;  %v635_v28 = vld [vmem:[#allocation5 + $0x11b8] sm:$0xff]  ;;  %v8302_v31 = vcombine.low %v651_v5, %v659_v6 }
 0x3f0   :  { %v7236_v49 = vpop.f32.mrf.mxu0  ;;  %v7277_v9 = vpop.f32.mrf.mxu1  ;;  %v8287_v29 = vcombine.high %v635_v28, %v643_v22  ;;  %v8286_v42 = vcombine.low %v635_v28, %v643_v22  ;;  %v8239_v54 = vcombine.high %v587_v57, %v595_v34  ;;  %v8495_v17 = vcombine.high %v843_v56, %v851_v51  ;;  %v827_v48 = vld [vmem:[#allocation5 + $0x17b8] sm:$0xff] }
 0x3f1   :  { %v7276_v20 = vadd.f32 %v7275_v23, %v7235_v3  ;;  %7529 = vmatpush1.bf16.msra.mxu0 %v8334_v63  ;;  %7570 = vmatpush1.bf16.msra.mxu1 %v8590_v30  ;;  %v7618_v15 = vmax.f32 %v7274_v1, 0.0  ;;  %v835_v63 = vld [vmem:[#allocation5 + $0x17f8] sm:$0xff]  ;;  %v8494_v1 = vcombine.low %v843_v56, %v851_v51 }
 0x3f2   :  { %v7237_v53 = vpop.f32.mrf.mxu0  ;;  %7530 = vmatprep.subr.bf16.mxu0 %v8319_v40  ;;  %v7278_v18 = vpop.f32.mrf.mxu1  ;;  %7571 = vmatprep.subr.bf16.mxu1 %v8575_v16  ;;  %v1083_v0 = vld [vmem:[#allocation5 + $0x1fb8] sm:$0xff]  ;;  %v8238_v40 = vcombine.low %v587_v57, %v595_v34  ;;  %v8479_v3 = vcombine.high %v827_v48, %v835_v63  ;;  %v8478_v21 = vcombine.low %v827_v48, %v835_v63 }
 0x3f3   :  { %v7619_v26 = vmax.f32 %v7276_v20, 0.0  ;;  %v1091_v30 = vld [vmem:[#allocation5 + $0x1ff8] sm:$0xff] }
 0x3f4   :  { %v8735_v23 = vcombine.high %v1083_v0, %v1091_v30  ;;  %v811_v16 = vld [vmem:[#allocation5 + $0x1738] sm:$0xff]  ;;  %v8734_v8 = vcombine.low %v1083_v0, %v1091_v30 }
 0x3f5   :  { %v8749_v27 = vpack.c.bf16 %v7619_v26, %v7618_v15  ;;  %7531 = vmatpush1.bf16.msra.mxu0 %v8318_v11  ;;  %7572 = vmatpush1.bf16.msra.mxu1 %v8574_v12  ;;  %v819_v5 = vld [vmem:[#allocation5 + $0x1778] sm:$0xff] }
 0x3f6   :  { %7532 = vmatprep.subr.bf16.mxu0 %v8303_v13  ;;  %7573 = vmatprep.subr.bf16.mxu1 %v8559_v19  ;;  %v1067_v6 = vld [vmem:[#allocation5 + $0x1f38] sm:$0xff]  ;;  %v8463_v20 = vcombine.high %v811_v16, %v819_v5  ;;  %v8462_v15 = vcombine.low %v811_v16, %v819_v5 }
 0x3f7   :  { %7693 = vst [vmem:[#allocation8 + $0x28] sm:$0xff] %v8749_v27  ;;  %v1075_v49 = vld [vmem:[#allocation5 + $0x1f78] sm:$0xff] }
 0x3f8   :  { %v8719_v9 = vcombine.high %v1067_v6, %v1075_v49  ;;  %v795_v11 = vld [vmem:[#allocation5 + $0x16b8] sm:$0xff]  ;;  %v8718_v26 = vcombine.low %v1067_v6, %v1075_v49 }
 0x3f9   :  { %7533 = vmatpush1.bf16.msra.mxu0 %v8302_v31  ;;  %7574 = vmatpush1.bf16.msra.mxu1 %v8558_v59  ;;  %v803_v53 = vld [vmem:[#allocation5 + $0x16f8] sm:$0xff] }
 0x3fa   :  { %7534 = vmatprep.subr.bf16.mxu0 %v8287_v29  ;;  %7575 = vmatprep.subr.bf16.mxu1 %v8543_v32  ;;  %v1051_v12 = vld [vmem:[#allocation5 + $0x1eb8] sm:$0xff]  ;;  %v8447_v18 = vcombine.high %v795_v11, %v803_v53  ;;  %v8446_v27 = vcombine.low %v795_v11, %v803_v53  ;;  %v8687_v29 = vcombine.high %v1035_v25, %v1043_v58  ;;  %v8759_v53 = vld [vmem:[#allocation7 + $0x8] sm:$0xff] }
 0x3fb   :  { %v1059_v13 = vld [vmem:[#allocation5 + $0x1ef8] sm:$0xff] }
 0x3fc   :  { %v8703_v19 = vcombine.high %v1051_v12, %v1059_v13  ;;  %v779_v28 = vld [vmem:[#allocation5 + $0x1638] sm:$0xff]  ;;  %v8702_v31 = vcombine.low %v1051_v12, %v1059_v13  ;;  %v1147_v12 = vrot.slane %v8759_v53, %v1114_v50  ;;  %v1151_v13 = vrot.slane %v8759_v53, %v1118_v60 }
 0x3fd   :  { %7535 = vmatpush1.bf16.msra.mxu0 %v8286_v42  ;;  %7576 = vmatpush1.bf16.msra.mxu1 %v8542_v43  ;;  %v787_v22 = vld [vmem:[#allocation5 + $0x1678] sm:$0xff]  ;;  %v8686_v42 = vcombine.low %v1035_v25, %v1043_v58 }
 0x3fe   :  { %7536 = vmatprep.subr.bf16.mxu0 %v8271_v2  ;;  %7577 = vmatprep.subr.bf16.mxu1 %v8527_v44  ;;  %v8431_v59 = vcombine.high %v779_v28, %v787_v22  ;;  %v763_v32 = vld [vmem:[#allocation5 + $0x15b8] sm:$0xff]  ;;  %v8430_v38 = vcombine.low %v779_v28, %v787_v22 }
 0x3ff   :  { %v771_v37 = vld [vmem:[#allocation5 + $0x15f8] sm:$0xff] }
 0x400   :  { %v1019_v35 = vld [vmem:[#allocation5 + $0x1db8] sm:$0xff]  ;;  %v8415_v43 = vcombine.high %v763_v32, %v771_v37  ;;  %v8414_v46 = vcombine.low %v763_v32, %v771_v37 }
 0x401   :  { %7537 = vmatpush1.bf16.msra.mxu0 %v8270_v47  ;;  %7578 = vmatpush1.bf16.msra.mxu1 %v8526_v7  ;;  %v1027_v62 = vld [vmem:[#allocation5 + $0x1df8] sm:$0xff] }
 0x402   :  { %7538 = vmatprep.subr.bf16.mxu0 %v8255_v14  ;;  %7579 = vmatprep.subr.bf16.mxu1 %v8511_v41  ;;  %v8671_v2 = vcombine.high %v1019_v35, %v1027_v62  ;;  %v747_v44 = vld [vmem:[#allocation5 + $0x1538] sm:$0xff]  ;;  %v8670_v47 = vcombine.low %v1019_v35, %v1027_v62 }
 0x403   :  { %v755_v24 = vld [vmem:[#allocation5 + $0x1578] sm:$0xff] }
 0x404   :  { %v1003_v33 = vld [vmem:[#allocation5 + $0x1d38] sm:$0xff]  ;;  %v8399_v7 = vcombine.high %v747_v44, %v755_v24  ;;  %v8398_v51 = vcombine.low %v747_v44, %v755_v24 }
 0x405   :  { %7539 = vmatpush1.bf16.msra.mxu0 %v8254_v52  ;;  %7580 = vmatpush1.bf16.msra.mxu1 %v8510_v55  ;;  %v1011_v45 = vld [vmem:[#allocation5 + $0x1d78] sm:$0xff] }
 0x406   :  { %7540 = vmatprep.subr.bf16.mxu0 %v8239_v54  ;;  %7581 = vmatprep.subr.bf16.mxu1 %v8495_v17  ;;  %v8655_v14 = vcombine.high %v1003_v33, %v1011_v45  ;;  %v731_v41 = vld [vmem:[#allocation5 + $0x14b8] sm:$0xff]  ;;  %v8654_v52 = vcombine.low %v1003_v33, %v1011_v45  ;;  %v1155_v45 = vrot.slane %v8759_v53, %v1122_v61 }
 0x407   :  { %v739_v57 = vld [vmem:[#allocation5 + $0x14f8] sm:$0xff] }
 0x408   :  { %v987_v34 = vld [vmem:[#allocation5 + $0x1cb8] sm:$0xff]  ;;  %v8383_v55 = vcombine.high %v731_v41, %v739_v57  ;;  %v8382_v30 = vcombine.low %v731_v41, %v739_v57 }
 0x409   :  { %7541 = vmatpush1.bf16.msra.mxu0 %v8238_v40  ;;  %7582 = vmatpush1.bf16.msra.mxu1 %v8494_v1  ;;  %v995_v56 = vld [vmem:[#allocation5 + $0x1cf8] sm:$0xff] }
 0x40a   :  { %7542 = vmatprep.subr.bf16.mxu0 %v8479_v3  ;;  %7583 = vmatprep.subr.bf16.mxu1 %v8735_v23  ;;  %v8639_v54 = vcombine.high %v987_v34, %v995_v56  ;;  %v715_v17 = vld [vmem:[#allocation5 + $0x1438] sm:$0xff]  ;;  %v8638_v40 = vcombine.low %v987_v34, %v995_v56 }
 0x40b   :  { %v723_v48 = vld [vmem:[#allocation5 + $0x1478] sm:$0xff] }
 0x40c   :  { %v971_v63 = vld [vmem:[#allocation5 + $0x1c38] sm:$0xff]  ;;  %v8367_v1 = vcombine.high %v715_v17, %v723_v48  ;;  %v8366_v23 = vcombine.low %v715_v17, %v723_v48 }
 0x40d   :  { %7543 = vmatpush2.bf16.msra.mxu0 %v8478_v21  ;;  %7584 = vmatpush2.bf16.msra.mxu1 %v8734_v8  ;;  %v979_v0 = vld [vmem:[#allocation5 + $0x1c78] sm:$0xff] }
 0x40e   :  { %7544 = vmatprep.subr.bf16.mxu0 %v8463_v20  ;;  %7585 = vmatprep.subr.bf16.mxu1 %v8719_v9  ;;  %v8623_v3 = vcombine.high %v971_v63, %v979_v0  ;;  %v8622_v16 = vcombine.low %v971_v63, %v979_v0 }
 0x411   :  { %7545 = vmatpush2.bf16.msra.mxu0 %v8462_v15  ;;  %7586 = vmatpush2.bf16.msra.mxu1 %v8718_v26 }
 0x412   :  { %7546 = vmatprep.subr.bf16.mxu0 %v8447_v18  ;;  %7587 = vmatprep.subr.bf16.mxu1 %v8703_v19 }
 0x415   :  { %7547 = vmatpush2.bf16.msra.mxu0 %v8446_v27  ;;  %7588 = vmatpush2.bf16.msra.mxu1 %v8702_v31 }
 0x416   :  { %7548 = vmatprep.subr.bf16.mxu0 %v8431_v59  ;;  %7589 = vmatprep.subr.bf16.mxu1 %v8687_v29 }
 0x419   :  { %7549 = vmatpush2.bf16.msra.mxu0 %v8430_v38  ;;  %7590 = vmatpush2.bf16.msra.mxu1 %v8686_v42 }
 0x41a   :  { %7550 = vmatprep.subr.bf16.mxu0 %v8415_v43  ;;  %7591 = vmatprep.subr.bf16.mxu1 %v8671_v2 }
 0x41d   :  { %7551 = vmatpush2.bf16.msra.mxu0 %v8414_v46  ;;  %7592 = vmatpush2.bf16.msra.mxu1 %v8670_v47  ;;  %v1159_v46 = vrot.slane %v8759_v53, %v1126_v4 }
 0x41e   :  { %7552 = vmatprep.subr.bf16.mxu0 %v8399_v7  ;;  %7593 = vmatprep.subr.bf16.mxu1 %v8655_v14 }
 0x421   :  { %7553 = vmatpush2.bf16.msra.mxu0 %v8398_v51  ;;  %7594 = vmatpush2.bf16.msra.mxu1 %v8654_v52 }
 0x422   :  { %7554 = vmatprep.subr.bf16.mxu0 %v8383_v55  ;;  %7595 = vmatprep.subr.bf16.mxu1 %v8639_v54 }
 0x425   :  { %7555 = vmatpush2.bf16.msra.mxu0 %v8382_v30  ;;  %7596 = vmatpush2.bf16.msra.mxu1 %v8638_v40 }
 0x426   :  { %7556 = vmatprep.subr.bf16.mxu0 %v8367_v1  ;;  %7597 = vmatprep.subr.bf16.mxu1 %v8623_v3 }
 0x429   :  { %7557 = vmatpush2.bf16.msra.mxu0 %v8366_v23  ;;  %7598 = vmatpush2.bf16.msra.mxu1 %v8622_v16 }
 0x42c   :  { %v7314_v5 = vpop.f32.mrf.mxu0  ;;  %7559 = vmatmul.mubr.bf16.vlgmr.msra.gmra.mxu0 %v8899_v36  ;;  %v7355_v6 = vpop.f32.mrf.mxu1  ;;  %7600 = vmatmul.mubr.bf16.vlgmr.msra.gmra.mxu1 %v8901_v39 }
 0x42d   :  { %v7315_v15 = vadd.f32 %v7314_v5, %v1147_v12 }
 0x42e   :  { %v7316_v49 = vpop.f32.mrf.mxu0  ;;  %v7357_v21 = vpop.f32.mrf.mxu1 }
 0x42f   :  { %v7317_v26 = vadd.f32 %v7316_v49, %v1151_v13  ;;  %v7356_v18 = vadd.f32 %v7355_v6, %v7315_v15 }
 0x430   :  { %v7318_v8 = vpop.f32.mrf.mxu0  ;;  %v7359_v20 = vpop.f32.mrf.mxu1 }
 0x431   :  { %v7358_v19 = vadd.f32 %v7357_v21, %v7317_v26 }
 0x432   :  { %v7319_v9 = vpop.f32.mrf.mxu0  ;;  %v7360_v11 = vpop.f32.mrf.mxu1 }
 0x46c   :  { %v7396_v36 = vpop.f32.mrf.mxu0  ;;  %v7437_v39 = vpop.f32.mrf.mxu1 }
 0x46d   :  { %v7397_v28 = vadd.f32 %v7396_v36, %v7356_v18 }
 0x46e   :  { %v7398_v22 = vpop.f32.mrf.mxu0  ;;  %v7439_v27 = vpop.f32.mrf.mxu1 }
 0x46f   :  { %v7438_v25 = vadd.f32 %v7437_v39, %v7397_v28  ;;  %v7399_v58 = vadd.f32 %v7398_v22, %v7358_v19 }
 0x470   :  { %v7400_v31 = vpop.f32.mrf.mxu0  ;;  %v7441_v29 = vpop.f32.mrf.mxu1 }
 0x471   :  { %v7440_v59 = vadd.f32 %v7439_v27, %v7399_v58  ;;  %v7620_v37 = vmax.f32 %v7438_v25, 0.0 }
 0x472   :  { %v7401_v32 = vpop.f32.mrf.mxu0  ;;  %v7442_v35 = vpop.f32.mrf.mxu1 }
 0x473   :  { %v7621_v50 = vmax.f32 %v7440_v59, 0.0 }
 0x475   :  { %v8750_v62 = vpack.c.bf16 %v7621_v50, %v7620_v37 }
 0x477   :  { %7694 = vst [vmem:[#allocation8 + $0x30] sm:$0xff] %v8750_v62 }
 0x4ac   :  { %v7478_v60 = vpop.f32.mrf.mxu0  ;;  %v7519_v38 = vpop.f32.mrf.mxu1 }
 0x4ad   :  { %v7479_v47 = vadd.f32 %v7478_v60, %v1155_v45 }
 0x4ae   :  { %v7480_v42 = vpop.f32.mrf.mxu0  ;;  %v7521_v43 = vpop.f32.mrf.mxu1 }
 0x4af   :  { %v7481_v7 = vadd.f32 %v7480_v42, %v1159_v46  ;;  %v7520_v14 = vadd.f32 %v7519_v38, %v7479_v47 }
 0x4b0   :  { %v7482_v2 = vpop.f32.mrf.mxu0  ;;  %v7523_v44 = vpop.f32.mrf.mxu1 }
 0x4b1   :  { %v7522_v57 = vadd.f32 %v7521_v43, %v7481_v7 }
 0x4b2   :  { %v7483_v24 = vpop.f32.mrf.mxu0  ;;  %v7524_v33 = vpop.f32.mrf.mxu1 }
 0x4ec   :  { %v7560_v41 = vpop.f32.mrf.mxu0  ;;  %v7601_v56 = vpop.f32.mrf.mxu1 }
 0x4ed   :  { %v7561_v34 = vadd.f32 %v7560_v41, %v7520_v14 }
 0x4ee   :  { %v7562_v51 = vpop.f32.mrf.mxu0  ;;  %v7603_v54 = vpop.f32.mrf.mxu1 }
 0x4ef   :  { %v7602_v52 = vadd.f32 %v7601_v56, %v7561_v34  ;;  %v7563_v55 = vadd.f32 %v7562_v51, %v7522_v57 }
 0x4f0   :  { %v7564_v17 = vpop.f32.mrf.mxu0  ;;  %v7605_v63 = vpop.f32.mrf.mxu1 }
 0x4f1   :  { %v7604_v48 = vadd.f32 %v7603_v54, %v7563_v55  ;;  %v7622_v61 = vmax.f32 %v7602_v52, 0.0 }
 0x4f2   :  { %v7565_v0 = vpop.f32.mrf.mxu0  ;;  %v7606_v4 = vpop.f32.mrf.mxu1 }
 0x4f3   :  { %v7623_v10 = vmax.f32 %v7604_v48, 0.0 }
 0x4f5   :  { %v8751_v30 = vpack.c.bf16 %v7623_v10, %v7622_v61 }
 0x4f7   :  { %7695 = vst [vmem:[#allocation8 + $0x38] sm:$0xff] %v8751_v30 }
 0x4f8   :  { %8831 = shalt.err (!%p8828_p5)
}
 0x4f9   :  { %7705 = dma.vmem_to_hbm [thread:$0]  %s7703_s2, 1024, %s9099_s3, [#allocation4]  }
 0x4fa   :  { %8844 = dma.done.wait [#allocation4], 1024  }
 0x4fb   :  { %8845 = vsyncadd [#allocation4], 4294966272 }
 0x4fc   :  { %7709 = vsyncpa [#allocation3], 1 }
 0x4fd   :  { %7710 = vsyncpa [#allocation6], 1 }
 0x4fe   :  { %7711 = vsyncpa [#allocation4], 1 }

</bundles_post_ra>
